<compile_context>
chip_gen: v7x
topology: tpu7x:2x2x1
jax: 0.10.0
libtpu: 0.0.40
codegen_flags: <defaults>
</compile_context>

<pallas_src>
import jax
import jax.numpy as jnp
from jax.experimental import pallas as pl
from jax.experimental.pallas import tpu as pltpu


def _round_up(x, m):
    return (x + m - 1) // m * m


# ----------------------------------------------------------------------------
# Conv2d(3x3, pad=1) + folded BatchNorm + ReLU  (optionally + MaxPool2d((1,2)))
# ----------------------------------------------------------------------------
def _fold_bn(w, bias, gamma, beta, mean, var, eps=1e-5):
    """Fold conv bias + eval-mode BN into the conv weights / a per-channel shift."""
    cout, cin = w.shape[0], w.shape[1]
    scale = gamma / jnp.sqrt(var + eps)
    # PyTorch [Cout, Cin, kh, kw] -> [kh, kw, Cin, Cout] (scale folded) -> [9*Cin, Cout]
    w_mat = (jnp.transpose(w, (2, 3, 1, 0)) * scale).reshape(9 * cin, cout)
    shift = (beta + scale * (bias - mean)).astype(jnp.float32).reshape(1, cout)
    return w_mat.astype(jnp.bfloat16), shift


def make_conv_kernel(t, wcols, cin, cout):
    # "Flat" 3x3 conv: the padded plane [t+2, wcols, cin] is flattened row-major
    # to [(t+2)*wcols, cin]; each tap (kh, kw) is a contiguous row-slice matmul
    # against a [cin, cout] weight slab -> pure MXU work, no in-kernel reshapes.
    rows = t * wcols

    def kernel(x_ref, w_ref, shift_ref, o_ref):
        acc = jnp.zeros((rows, cout), jnp.float32)
        for kh in range(3):
            for kw in range(3):
                start = kh * wcols + kw
                win = x_ref[0, start:start + rows, :].astype(jnp.bfloat16)
                wk = w_ref[(kh * 3 + kw) * cin:(kh * 3 + kw + 1) * cin, :]
                acc = acc + jnp.dot(win, wk, preferred_element_type=jnp.float32)
        o_ref[0] = jnp.maximum(acc + shift_ref[...], 0.0)

    return kernel


def make_conv_pool_kernel(t, wcols, cin, cout):
    # Same flat formulation on even/odd-column deinterleaved planes (width
    # wcols = F//2 + 1).  The two parities are exactly the two MaxPool((1,2))
    # candidates, so the pool is a single elementwise max in the epilogue.
    rows = t * wcols

    def kernel(xe_ref, xo_ref, w_ref, shift_ref, o_ref):
        def accumulate(taps):
            acc = jnp.zeros((rows, cout), jnp.float32)
            for kh in range(3):
                for kw in range(3):
                    src, off = taps[kw]
                    start = kh * wcols + off
                    win = src[0, start:start + rows, :].astype(jnp.bfloat16)
                    wk = w_ref[(kh * 3 + kw) * cin:(kh * 3 + kw + 1) * cin, :]
                    acc = acc + jnp.dot(win, wk, preferred_element_type=jnp.float32)
            return jnp.maximum(acc + shift_ref[...], 0.0)

        even = accumulate(((xe_ref, 0), (xo_ref, 0), (xe_ref, 1)))  # output cols 0,2,...
        odd = accumulate(((xo_ref, 0), (xe_ref, 1), (xo_ref, 1)))   # output cols 1,3,...
        o_ref[0] = jnp.maximum(even, odd)                           # fused MaxPool2d((1,2))

    return kernel


def conv_bn_relu(x, w, bias, gamma, beta, mean, var, *, pool):
    # x: [B, T, F, Cin] channels-last.  Returns [B, T, F(/2), Cout] f32.
    b, t, f, cin = x.shape
    cout = w.shape[0]
    w_mat, shift = _fold_bn(w, bias, gamma, beta, mean, var)
    xp = jnp.pad(x, ((0, 0), (1, 1), (1, 1), (0, 0)))  # spatial zero-pad

    def flatten(z, wcols):
        # Flatten the padded plane row-major and add slack rows so every tap's
        # contiguous slice stays in bounds (slack only feeds garbage output
        # positions that are dropped below).
        return jnp.pad(z.reshape(b, (t + 2) * wcols, cin), ((0, 0), (0, 8), (0, 0)))

    if pool:
        fh, wcols = f // 2, f // 2 + 1
        xe = flatten(xp[:, :, 0::2, :], wcols)   # even padded mel columns
        xo = flatten(xp[:, :, 1::2, :], wcols)   # odd padded mel columns
        kernel = make_conv_pool_kernel(t, wcols, cin, cout)
        inputs = (xe, xo, w_mat, shift)
        n_planes, f_keep = 2, fh
    else:
        wcols = f + 2
        kernel = make_conv_kernel(t, wcols, cin, cout)
        inputs = (flatten(xp, wcols), w_mat, shift)
        n_planes, f_keep = 1, f

    rows = t * wcols
    plane_spec = pl.BlockSpec((1, (t + 2) * wcols + 8, cin), lambda i: (i, 0, 0))
    # TODO(synk): for very long T the whole per-batch plane sits in one block;
    # production sizes would additionally tile T (with a 1-row halo).
    out = pl.pallas_call(
        kernel,
        out_shape=jax.ShapeDtypeStruct((b, rows, cout), jnp.float32),
        grid=(b,),
        in_specs=[plane_spec] * n_planes + [
            pl.BlockSpec((9 * cin, cout), lambda i: (0, 0)),
            pl.BlockSpec((1, cout), lambda i: (0, 0)),
        ],
        out_specs=pl.BlockSpec((1, rows, cout), lambda i: (i, 0, 0)),
        compiler_params=pltpu.CompilerParams(dimension_semantics=("parallel",)),
    )(*inputs)
    # drop the horizontal-padding garbage columns, back to [B, T, F', Cout]
    return out.reshape(b, t, wcols, cout)[:, :, :f_keep, :]


# ----------------------------------------------------------------------------
# Grid-tiled dense layer:  y = x @ W + b   (bf16 MXU operands, f32 accumulate)
# ----------------------------------------------------------------------------
def linear_kernel(x_ref, w_ref, b_ref, o_ref):
    o_ref[...] = (
        jnp.dot(x_ref[...].astype(jnp.bfloat16), w_ref[...],
                preferred_element_type=jnp.float32)
        + b_ref[...]
    )


def linear(x2d, w, b, *, block_m=256):
    # Rows tiled over a parallel grid axis; N padded to a multiple of 128 so
    # output stores are lane-dense; result sliced back wrapper-side.
    m, k = x2d.shape
    n = w.shape[1]
    mp = _round_up(m, 8)
    tm = min(block_m, mp)
    mp = _round_up(mp, tm)
    npad = _round_up(n, 128)
    xp = jnp.pad(x2d, ((0, mp - m), (0, 0)))
    wp = jnp.pad(w, ((0, 0), (0, npad - n))).astype(jnp.bfloat16)
    bp = jnp.pad(b.astype(jnp.float32), (0, npad - n)).reshape(1, npad)
    out = pl.pallas_call(
        linear_kernel,
        out_shape=jax.ShapeDtypeStruct((mp, npad), jnp.float32),
        grid=(mp // tm,),
        in_specs=[
            pl.BlockSpec((tm, k), lambda i: (i, 0)),
            pl.BlockSpec((k, npad), lambda i: (0, 0)),
            pl.BlockSpec((1, npad), lambda i: (0, 0)),
        ],
        out_specs=pl.BlockSpec((tm, npad), lambda i: (i, 0)),
        compiler_params=pltpu.CompilerParams(dimension_semantics=("parallel",)),
    )(xp, wp, bp)
    return out[:m, :n]


# ----------------------------------------------------------------------------
# Fused bidirectional LSTM recurrence (PyTorch gate order i, f, g, o).
# The x@Wih+b projections are precomputed; each grid step does forward step i
# and backward step T-1-i.  h/c state lives in VMEM scratch across steps.
# ----------------------------------------------------------------------------
def make_bilstm_kernel(hid):
    def kernel(gf_ref, gb_ref, whf_ref, whb_ref, of_ref, ob_ref, hf, cf, hb, cb):
        @pl.when(pl.program_id(0) == 0)
        def _():
            hf[...] = jnp.zeros_like(hf)
            cf[...] = jnp.zeros_like(cf)
            hb[...] = jnp.zeros_like(hb)
            cb[...] = jnp.zeros_like(cb)

        def cell(g_in, h_prev, c_prev, whh_ref):
            # g_in already holds x_t @ Wih + (b_ih + b_hh); only the recurrent
            # matmul remains on the sequential critical path.
            gates = g_in + jnp.dot(h_prev.astype(jnp.bfloat16), whh_ref[...],
                                   preferred_element_type=jnp.float32)
            i_g = jax.nn.sigmoid(gates[:, 0:hid])
            f_g = jax.nn.sigmoid(gates[:, hid:2 * hid])
            g_g = jnp.tanh(gates[:, 2 * hid:3 * hid])
            o_g = jax.nn.sigmoid(gates[:, 3 * hid:4 * hid])
            c_new = f_g * c_prev + i_g * g_g
            h_new = o_g * jnp.tanh(c_new)
            return h_new, c_new

        h_new, c_new = cell(gf_ref[0], hf[...], cf[...], whf_ref)
        hf[...] = h_new
        cf[...] = c_new
        of_ref[0] = h_new

        h_new, c_new = cell(gb_ref[0], hb[...], cb[...], whb_ref)
        hb[...] = h_new
        cb[...] = c_new
        ob_ref[0] = h_new

    return kernel


def bilstm(gates_f, gates_b, whh_f, whh_b):
    # gates_*: [T, B, 4H] f32 (precomputed x@Wih + b); whh_*: [H, 4H].
    t, bsz, g4 = gates_f.shape
    hid = g4 // 4
    fwd_idx = lambda i: (i, 0, 0)
    bwd_idx = lambda i: (t - 1 - i, 0, 0)
    const2 = lambda i: (0, 0)
    hf, hb = pl.pallas_call(
        make_bilstm_kernel(hid),
        out_shape=(jax.ShapeDtypeStruct((t, bsz, hid), jnp.float32),
                   jax.ShapeDtypeStruct((t, bsz, hid), jnp.float32)),
        grid=(t,),
        in_specs=[
            pl.BlockSpec((1, bsz, g4), fwd_idx),
            pl.BlockSpec((1, bsz, g4), bwd_idx),
            pl.BlockSpec((hid, g4), const2),
            pl.BlockSpec((hid, g4), const2),
        ],
        out_specs=(pl.BlockSpec((1, bsz, hid), fwd_idx),
                   pl.BlockSpec((1, bsz, hid), bwd_idx)),
        scratch_shapes=[pltpu.VMEM((bsz, hid), jnp.float32)] * 4,  # h_f, c_f, h_b, c_b
        compiler_params=pltpu.CompilerParams(dimension_semantics=("arbitrary",)),
    )(gates_f, gates_b, whh_f.astype(jnp.bfloat16), whh_b.astype(jnp.bfloat16))
    return hf, hb


# ----------------------------------------------------------------------------
# Full forward pass: ConvStack -> BiLSTM -> Linear(39)
# ----------------------------------------------------------------------------
def phoneme_recognition_forward(data, p):
    # data: [B, 1, T, n_mels]  (NCHW layout the PyTorch module receives)
    bsz, _, t, f = data.shape

    # ---- ConvStack.cnn (channels-last inside the kernels) ----
    x = jnp.transpose(data, (0, 2, 3, 1))                       # [B, T, F, 1]
    x = conv_bn_relu(x, p['conv0_w'], p['conv0_b'], p['bn0_gamma'],
                     p['bn0_beta'], p['bn0_mean'], p['bn0_var'], pool=False)
    x = conv_bn_relu(x, p['conv1_w'], p['conv1_b'], p['bn1_gamma'],
                     p['bn1_beta'], p['bn1_mean'], p['bn1_var'], pool=True)
    # Dropout(0.25): identity at inference
    x = conv_bn_relu(x, p['conv2_w'], p['conv2_b'], p['bn2_gamma'],
                     p['bn2_beta'], p['bn2_mean'], p['bn2_var'], pool=True)
    # Dropout(0.25): identity at inference
    c2, f4 = x.shape[3], x.shape[2]                             # [B, T, F/4, C2]

    # ---- ConvStack.fc ----
    # PyTorch does x.transpose(1,2).flatten(-2): [B,C,T,F] -> [B,T,C*F]
    # (channel-major).  Our activation is already [B,T,F/4,C]; instead of
    # transposing it at runtime we permute the fc weight rows once.
    ms = p['cfc_w'].shape[1]
    cfc_w = p['cfc_w'].reshape(c2, f4, ms).transpose(1, 0, 2).reshape(f4 * c2, ms)
    x = linear(x.reshape(bsz * t, f4 * c2), cfc_w, p['cfc_b'])
    x = x.reshape(bsz, t, ms)
    # Dropout(0.5): identity at inference

    # ---- BiLSTM(model_size, model_size // 2) ----
    hid = ms // 2
    x_tm = jnp.transpose(x, (1, 0, 2)).reshape(t * bsz, ms)     # time-major rows
    # hoisted input projection for BOTH directions in one tiled matmul
    w_in = jnp.concatenate([p['lstm_fwd_wih'], p['lstm_bwd_wih']], axis=1)
    b_in = jnp.concatenate([p['lstm_fwd_b'], p['lstm_bwd_b']], axis=0)
    gates = linear(x_tm, w_in, b_in).reshape(t, bsz, 8 * hid)
    hf, hb = bilstm(gates[..., :4 * hid], gates[..., 4 * hid:],
                    p['lstm_fwd_whh'], p['lstm_bwd_whh'])
    h = jnp.concatenate([hf, hb], axis=-1)                      # [T, B, ms]

    # ---- final fc: Linear(model_size, 39) ----
    out = linear(h.reshape(t * bsz, ms), p['fc_w'], p['fc_b'])
    return jnp.transpose(out.reshape(t, bsz, 39), (1, 0, 2))    # [B, T, 39]


# ----------------------------------------------------------------------------
# Deterministic synthetic parameters (shapes implied by the module __init__).
# Dense / LSTM weights are stored [in, out] (transposed from PyTorch); the LSTM
# bias is the combined b_ih + b_hh, as real checkpoints would be converted.
# ----------------------------------------------------------------------------
def init_params(key, n_mels, model_complexity):
    ms = model_complexity * 16            # model_size
    c1, c2 = ms // 16, ms // 8
    hid = ms // 2
    keys = iter(jax.random.split(key, 32))

    def nrm(shape, s=0.1):
        return (s * jax.random.normal(next(keys), shape)).astype(jnp.float32)

    p = {}
    for name, (co, ci) in (('0', (c1, 1)), ('1', (c1, c1)), ('2', (c2, c1))):
        p[f'conv{name}_w'] = nrm((co, ci, 3, 3))
        p[f'conv{name}_b'] = nrm((co,))
        p[f'bn{name}_gamma'] = 1.0 + nrm((co,))
        p[f'bn{name}_beta'] = nrm((co,))
        p[f'bn{name}_mean'] = nrm((co,))
        p[f'bn{name}_var'] = 1.0 + jnp.abs(nrm((co,)))
    p['cfc_w'] = nrm((c2 * (n_mels // 4), ms))   # rows are channel-major (PyTorch order)
    p['cfc_b'] = nrm((ms,))
    for d in ('fwd', 'bwd'):
        p[f'lstm_{d}_wih'] = nrm((ms, 4 * hid))
        p[f'lstm_{d}_whh'] = nrm((hid, 4 * hid))
        p[f'lstm_{d}_b'] = nrm((4 * hid,))       # b_ih + b_hh combined
    p['fc_w'] = nrm((ms, 39))
    p['fc_b'] = nrm((39,))
    return p


if __name__ == "__main__":
    # TODO(synk): FeatureExtractor (mel frontend) and CrossEntropyLoss are not part
    # of forward(); the kernels consume mel features [B, 1, T, n_mels] directly.
    config = {'n_mels': 16, 'model_complexity': 2}   # model_size = 32
    B, T = 2, 8

    key = jax.random.PRNGKey(0)
    k_in, k_p = jax.random.split(key)
    data = jax.random.normal(k_in, (B, 1, T, config['n_mels']), dtype=jnp.float32)
    params = init_params(k_p, config['n_mels'], config['model_complexity'])

    fwd = jax.jit(phoneme_recognition_forward)
    out = fwd(data, params)
    out = jax.block_until_ready(out)
    assert out.shape == (B, T, 39), out.shape
    assert jnp.all(jnp.isfinite(out))
    print("KERNEL_OK")
</pallas_src>

<mosaic_0001>
module attributes {stable_mosaic.version = 11 : i64} {
  func.func @kernel(%arg0: i32, %arg1: memref<1x188x1xf32, #tpu.memory_space<vmem>>, %arg2: memref<9x2xbf16, #tpu.memory_space<vmem>>, %arg3: memref<1x2xf32, #tpu.memory_space<vmem>>, %arg4: memref<1x144x2xf32, #tpu.memory_space<vmem>>) attributes {dimension_semantics = [#tpu.dimension_semantics<parallel>], iteration_bounds = array<i64: 2>, scalar_prefetch = 0 : i64, scratch_operands = 0 : i64, tpu.core_type = #tpu.core_type<tc>, window_params = [{transform_indices = @transform_0, window_bounds = array<i64: 1, 188, 1>}, {pipeline_mode = #tpu.pipeline_mode<synchronous>, transform_indices = @transform_1, window_bounds = array<i64: 9, 2>}, {pipeline_mode = #tpu.pipeline_mode<synchronous>, transform_indices = @transform_2, window_bounds = array<i64: 1, 2>}, {transform_indices = @transform_3, window_bounds = array<i64: 1, 144, 2>}]} {
    %cst = arith.constant 0.000000e+00 : f32
    %0 = vector.broadcast %cst : f32 to vector<144x2xf32>
    %c0 = arith.constant 0 : index
    %c0_0 = arith.constant 0 : index
    %c0_1 = arith.constant 0 : index
    %1 = vector.load %arg1[%c0, %c0_0, %c0_1] : memref<1x188x1xf32, #tpu.memory_space<vmem>>, vector<1x144x1xf32>
    %2 = vector.shape_cast %1 : vector<1x144x1xf32> to vector<144x1xf32>
    %3 = arith.truncf %2 : vector<144x1xf32> to vector<144x1xbf16>
    %c0_2 = arith.constant 0 : index
    %c0_3 = arith.constant 0 : index
    %4 = vector.load %arg2[%c0_2, %c0_3] : memref<9x2xbf16, #tpu.memory_space<vmem>>, vector<1x2xbf16>
    %cst_4 = arith.constant dense<0.000000e+00> : vector<144x2xf32>
    %5 = tpu.matmul %3, %4, %cst_4 {dimension_numbers = #tpu.dot_dimension_numbers<[1], [0], [0], [1], [0, 0, 1, 1], [], []>} : vector<144x1xbf16>, vector<1x2xbf16>, vector<144x2xf32> -> vector<144x2xf32>
    %6 = arith.addf %0, %5 : vector<144x2xf32>
    %c0_5 = arith.constant 0 : index
    %c1 = arith.constant 1 : index
    %c0_6 = arith.constant 0 : index
    %7 = vector.load %arg1[%c0_5, %c1, %c0_6] : memref<1x188x1xf32, #tpu.memory_space<vmem>>, vector<1x144x1xf32>
    %8 = vector.shape_cast %7 : vector<1x144x1xf32> to vector<144x1xf32>
    %9 = arith.truncf %8 : vector<144x1xf32> to vector<144x1xbf16>
    %c1_7 = arith.constant 1 : index
    %c0_8 = arith.constant 0 : index
    %10 = vector.load %arg2[%c1_7, %c0_8] : memref<9x2xbf16, #tpu.memory_space<vmem>>, vector<1x2xbf16>
    %cst_9 = arith.constant dense<0.000000e+00> : vector<144x2xf32>
    %11 = tpu.matmul %9, %10, %cst_9 {dimension_numbers = #tpu.dot_dimension_numbers<[1], [0], [0], [1], [0, 0, 1, 1], [], []>} : vector<144x1xbf16>, vector<1x2xbf16>, vector<144x2xf32> -> vector<144x2xf32>
    %12 = arith.addf %6, %11 : vector<144x2xf32>
    %c0_10 = arith.constant 0 : index
    %c2 = arith.constant 2 : index
    %c0_11 = arith.constant 0 : index
    %13 = vector.load %arg1[%c0_10, %c2, %c0_11] : memref<1x188x1xf32, #tpu.memory_space<vmem>>, vector<1x144x1xf32>
    %14 = vector.shape_cast %13 : vector<1x144x1xf32> to vector<144x1xf32>
    %15 = arith.truncf %14 : vector<144x1xf32> to vector<144x1xbf16>
    %c2_12 = arith.constant 2 : index
    %c0_13 = arith.constant 0 : index
    %16 = vector.load %arg2[%c2_12, %c0_13] : memref<9x2xbf16, #tpu.memory_space<vmem>>, vector<1x2xbf16>
    %cst_14 = arith.constant dense<0.000000e+00> : vector<144x2xf32>
    %17 = tpu.matmul %15, %16, %cst_14 {dimension_numbers = #tpu.dot_dimension_numbers<[1], [0], [0], [1], [0, 0, 1, 1], [], []>} : vector<144x1xbf16>, vector<1x2xbf16>, vector<144x2xf32> -> vector<144x2xf32>
    %18 = arith.addf %12, %17 : vector<144x2xf32>
    %c0_15 = arith.constant 0 : index
    %c18 = arith.constant 18 : index
    %c0_16 = arith.constant 0 : index
    %19 = vector.load %arg1[%c0_15, %c18, %c0_16] : memref<1x188x1xf32, #tpu.memory_space<vmem>>, vector<1x144x1xf32>
    %20 = vector.shape_cast %19 : vector<1x144x1xf32> to vector<144x1xf32>
    %21 = arith.truncf %20 : vector<144x1xf32> to vector<144x1xbf16>
    %c3 = arith.constant 3 : index
    %c0_17 = arith.constant 0 : index
    %22 = vector.load %arg2[%c3, %c0_17] : memref<9x2xbf16, #tpu.memory_space<vmem>>, vector<1x2xbf16>
    %cst_18 = arith.constant dense<0.000000e+00> : vector<144x2xf32>
    %23 = tpu.matmul %21, %22, %cst_18 {dimension_numbers = #tpu.dot_dimension_numbers<[1], [0], [0], [1], [0, 0, 1, 1], [], []>} : vector<144x1xbf16>, vector<1x2xbf16>, vector<144x2xf32> -> vector<144x2xf32>
    %24 = arith.addf %18, %23 : vector<144x2xf32>
    %c0_19 = arith.constant 0 : index
    %c19 = arith.constant 19 : index
    %c0_20 = arith.constant 0 : index
    %25 = vector.load %arg1[%c0_19, %c19, %c0_20] : memref<1x188x1xf32, #tpu.memory_space<vmem>>, vector<1x144x1xf32>
    %26 = vector.shape_cast %25 : vector<1x144x1xf32> to vector<144x1xf32>
    %27 = arith.truncf %26 : vector<144x1xf32> to vector<144x1xbf16>
    %c4 = arith.constant 4 : index
    %c0_21 = arith.constant 0 : index
    %28 = vector.load %arg2[%c4, %c0_21] : memref<9x2xbf16, #tpu.memory_space<vmem>>, vector<1x2xbf16>
    %cst_22 = arith.constant dense<0.000000e+00> : vector<144x2xf32>
    %29 = tpu.matmul %27, %28, %cst_22 {dimension_numbers = #tpu.dot_dimension_numbers<[1], [0], [0], [1], [0, 0, 1, 1], [], []>} : vector<144x1xbf16>, vector<1x2xbf16>, vector<144x2xf32> -> vector<144x2xf32>
    %30 = arith.addf %24, %29 : vector<144x2xf32>
    %c0_23 = arith.constant 0 : index
    %c20 = arith.constant 20 : index
    %c0_24 = arith.constant 0 : index
    %31 = vector.load %arg1[%c0_23, %c20, %c0_24] : memref<1x188x1xf32, #tpu.memory_space<vmem>>, vector<1x144x1xf32>
    %32 = vector.shape_cast %31 : vector<1x144x1xf32> to vector<144x1xf32>
    %33 = arith.truncf %32 : vector<144x1xf32> to vector<144x1xbf16>
    %c5 = arith.constant 5 : index
    %c0_25 = arith.constant 0 : index
    %34 = vector.load %arg2[%c5, %c0_25] : memref<9x2xbf16, #tpu.memory_space<vmem>>, vector<1x2xbf16>
    %cst_26 = arith.constant dense<0.000000e+00> : vector<144x2xf32>
    %35 = tpu.matmul %33, %34, %cst_26 {dimension_numbers = #tpu.dot_dimension_numbers<[1], [0], [0], [1], [0, 0, 1, 1], [], []>} : vector<144x1xbf16>, vector<1x2xbf16>, vector<144x2xf32> -> vector<144x2xf32>
    %36 = arith.addf %30, %35 : vector<144x2xf32>
    %c0_27 = arith.constant 0 : index
    %c36 = arith.constant 36 : index
    %c0_28 = arith.constant 0 : index
    %37 = vector.load %arg1[%c0_27, %c36, %c0_28] : memref<1x188x1xf32, #tpu.memory_space<vmem>>, vector<1x144x1xf32>
    %38 = vector.shape_cast %37 : vector<1x144x1xf32> to vector<144x1xf32>
    %39 = arith.truncf %38 : vector<144x1xf32> to vector<144x1xbf16>
    %c6 = arith.constant 6 : index
    %c0_29 = arith.constant 0 : index
    %40 = vector.load %arg2[%c6, %c0_29] : memref<9x2xbf16, #tpu.memory_space<vmem>>, vector<1x2xbf16>
    %cst_30 = arith.constant dense<0.000000e+00> : vector<144x2xf32>
    %41 = tpu.matmul %39, %40, %cst_30 {dimension_numbers = #tpu.dot_dimension_numbers<[1], [0], [0], [1], [0, 0, 1, 1], [], []>} : vector<144x1xbf16>, vector<1x2xbf16>, vector<144x2xf32> -> vector<144x2xf32>
    %42 = arith.addf %36, %41 : vector<144x2xf32>
    %c0_31 = arith.constant 0 : index
    %c37 = arith.constant 37 : index
    %c0_32 = arith.constant 0 : index
    %43 = vector.load %arg1[%c0_31, %c37, %c0_32] : memref<1x188x1xf32, #tpu.memory_space<vmem>>, vector<1x144x1xf32>
    %44 = vector.shape_cast %43 : vector<1x144x1xf32> to vector<144x1xf32>
    %45 = arith.truncf %44 : vector<144x1xf32> to vector<144x1xbf16>
    %c7 = arith.constant 7 : index
    %c0_33 = arith.constant 0 : index
    %46 = vector.load %arg2[%c7, %c0_33] : memref<9x2xbf16, #tpu.memory_space<vmem>>, vector<1x2xbf16>
    %cst_34 = arith.constant dense<0.000000e+00> : vector<144x2xf32>
    %47 = tpu.matmul %45, %46, %cst_34 {dimension_numbers = #tpu.dot_dimension_numbers<[1], [0], [0], [1], [0, 0, 1, 1], [], []>} : vector<144x1xbf16>, vector<1x2xbf16>, vector<144x2xf32> -> vector<144x2xf32>
    %48 = arith.addf %42, %47 : vector<144x2xf32>
    %c0_35 = arith.constant 0 : index
    %c38 = arith.constant 38 : index
    %c0_36 = arith.constant 0 : index
    %49 = vector.load %arg1[%c0_35, %c38, %c0_36] : memref<1x188x1xf32, #tpu.memory_space<vmem>>, vector<1x144x1xf32>
    %50 = vector.shape_cast %49 : vector<1x144x1xf32> to vector<144x1xf32>
    %51 = arith.truncf %50 : vector<144x1xf32> to vector<144x1xbf16>
    %c8 = arith.constant 8 : index
    %c0_37 = arith.constant 0 : index
    %52 = vector.load %arg2[%c8, %c0_37] : memref<9x2xbf16, #tpu.memory_space<vmem>>, vector<1x2xbf16>
    %cst_38 = arith.constant dense<0.000000e+00> : vector<144x2xf32>
    %53 = tpu.matmul %51, %52, %cst_38 {dimension_numbers = #tpu.dot_dimension_numbers<[1], [0], [0], [1], [0, 0, 1, 1], [], []>} : vector<144x1xbf16>, vector<1x2xbf16>, vector<144x2xf32> -> vector<144x2xf32>
    %54 = arith.addf %48, %53 : vector<144x2xf32>
    %c0_39 = arith.constant 0 : index
    %c0_40 = arith.constant 0 : index
    %55 = vector.load %arg3[%c0_39, %c0_40] : memref<1x2xf32, #tpu.memory_space<vmem>>, vector<1x2xf32>
    %56 = vector.broadcast %55 : vector<1x2xf32> to vector<144x2xf32>
    %57 = arith.addf %54, %56 : vector<144x2xf32>
    %cst_41 = arith.constant 0.000000e+00 : f32
    %58 = vector.broadcast %cst_41 : f32 to vector<144x2xf32>
    %59 = arith.maximumf %57, %58 : vector<144x2xf32>
    %c0_42 = arith.constant 0 : index
    %c0_43 = arith.constant 0 : index
    %c0_44 = arith.constant 0 : index
    %60 = vector.load %arg4[%c0_42, %c0_43, %c0_44] : memref<1x144x2xf32, #tpu.memory_space<vmem>>, vector<1x144x2xf32>
    %61 = vector.shape_cast %60 : vector<1x144x2xf32> to vector<144x2xf32>
    %62 = vector.shape_cast %59 : vector<144x2xf32> to vector<1x144x2xf32>
    tpu.vector_store %arg4[%c0_42, %c0_43, %c0_44], %62 {strides = array<i32>} : memref<1x144x2xf32, #tpu.memory_space<vmem>>, vector<1x144x2xf32>,
    return
  }
  func.func @transform_0(%arg0: i32) -> (i32, i32, i32) {
    %c0_i32 = arith.constant 0 : i32
    %c0_i32_0 = arith.constant 0 : i32
    %c0_i32_1 = arith.constant 0 : i32
    return %arg0, %c0_i32, %c0_i32_0 : i32, i32, i32
  }
  func.func @transform_1(%arg0: i32) -> (i32, i32) {
    %c0_i32 = arith.constant 0 : i32
    %c0_i32_0 = arith.constant 0 : i32
    %c0_i32_1 = arith.constant 0 : i32
    return %c0_i32, %c0_i32_0 : i32, i32
  }
  func.func @transform_2(%arg0: i32) -> (i32, i32) {
    %c0_i32 = arith.constant 0 : i32
    %c0_i32_0 = arith.constant 0 : i32
    %c0_i32_1 = arith.constant 0 : i32
    return %c0_i32, %c0_i32_0 : i32, i32
  }
  func.func @transform_3(%arg0: i32) -> (i32, i32, i32) {
    %c0_i32 = arith.constant 0 : i32
    %c0_i32_0 = arith.constant 0 : i32
    %c0_i32_1 = arith.constant 0 : i32
    return %arg0, %c0_i32, %c0_i32_0 : i32, i32, i32
  }
}

module attributes {stable_mosaic.version = 11 : i64} {
  func.func @kernel(%arg0: i32, %arg1: memref<1x98x2xf32, #tpu.memory_space<vmem>>, %arg2: memref<1x98x2xf32, #tpu.memory_space<vmem>>, %arg3: memref<18x2xbf16, #tpu.memory_space<vmem>>, %arg4: memref<1x2xf32, #tpu.memory_space<vmem>>, %arg5: memref<1x72x2xf32, #tpu.memory_space<vmem>>) attributes {dimension_semantics = [#tpu.dimension_semantics<parallel>], iteration_bounds = array<i64: 2>, scalar_prefetch = 0 : i64, scratch_operands = 0 : i64, tpu.core_type = #tpu.core_type<tc>, window_params = [{transform_indices = @transform_0, window_bounds = array<i64: 1, 98, 2>}, {transform_indices = @transform_1, window_bounds = array<i64: 1, 98, 2>}, {pipeline_mode = #tpu.pipeline_mode<synchronous>, transform_indices = @transform_2, window_bounds = array<i64: 18, 2>}, {pipeline_mode = #tpu.pipeline_mode<synchronous>, transform_indices = @transform_3, window_bounds = array<i64: 1, 2>}, {transform_indices = @transform_4, window_bounds = array<i64: 1, 72, 2>}]} {
    %cst = arith.constant 0.000000e+00 : f32
    %0 = vector.broadcast %cst : f32 to vector<72x2xf32>
    %c0 = arith.constant 0 : index
    %c0_0 = arith.constant 0 : index
    %c0_1 = arith.constant 0 : index
    %1 = vector.load %arg1[%c0, %c0_0, %c0_1] : memref<1x98x2xf32, #tpu.memory_space<vmem>>, vector<1x72x2xf32>
    %2 = vector.shape_cast %1 : vector<1x72x2xf32> to vector<72x2xf32>
    %3 = arith.truncf %2 : vector<72x2xf32> to vector<72x2xbf16>
    %c0_2 = arith.constant 0 : index
    %c0_3 = arith.constant 0 : index
    %4 = vector.load %arg3[%c0_2, %c0_3] : memref<18x2xbf16, #tpu.memory_space<vmem>>, vector<2x2xbf16>
    %cst_4 = arith.constant dense<0.000000e+00> : vector<72x2xf32>
    %5 = tpu.matmul %3, %4, %cst_4 {dimension_numbers = #tpu.dot_dimension_numbers<[1], [0], [0], [1], [0, 0, 1, 1], [], []>} : vector<72x2xbf16>, vector<2x2xbf16>, vector<72x2xf32> -> vector<72x2xf32>
    %6 = arith.addf %0, %5 : vector<72x2xf32>
    %c0_5 = arith.constant 0 : index
    %c0_6 = arith.constant 0 : index
    %c0_7 = arith.constant 0 : index
    %7 = vector.load %arg2[%c0_5, %c0_6, %c0_7] : memref<1x98x2xf32, #tpu.memory_space<vmem>>, vector<1x72x2xf32>
    %8 = vector.shape_cast %7 : vector<1x72x2xf32> to vector<72x2xf32>
    %9 = arith.truncf %8 : vector<72x2xf32> to vector<72x2xbf16>
    %c2 = arith.constant 2 : index
    %c0_8 = arith.constant 0 : index
    %10 = vector.load %arg3[%c2, %c0_8] : memref<18x2xbf16, #tpu.memory_space<vmem>>, vector<2x2xbf16>
    %cst_9 = arith.constant dense<0.000000e+00> : vector<72x2xf32>
    %11 = tpu.matmul %9, %10, %cst_9 {dimension_numbers = #tpu.dot_dimension_numbers<[1], [0], [0], [1], [0, 0, 1, 1], [], []>} : vector<72x2xbf16>, vector<2x2xbf16>, vector<72x2xf32> -> vector<72x2xf32>
    %12 = arith.addf %6, %11 : vector<72x2xf32>
    %c0_10 = arith.constant 0 : index
    %c1 = arith.constant 1 : index
    %c0_11 = arith.constant 0 : index
    %13 = vector.load %arg1[%c0_10, %c1, %c0_11] : memref<1x98x2xf32, #tpu.memory_space<vmem>>, vector<1x72x2xf32>
    %14 = vector.shape_cast %13 : vector<1x72x2xf32> to vector<72x2xf32>
    %15 = arith.truncf %14 : vector<72x2xf32> to vector<72x2xbf16>
    %c4 = arith.constant 4 : index
    %c0_12 = arith.constant 0 : index
    %16 = vector.load %arg3[%c4, %c0_12] : memref<18x2xbf16, #tpu.memory_space<vmem>>, vector<2x2xbf16>
    %cst_13 = arith.constant dense<0.000000e+00> : vector<72x2xf32>
    %17 = tpu.matmul %15, %16, %cst_13 {dimension_numbers = #tpu.dot_dimension_numbers<[1], [0], [0], [1], [0, 0, 1, 1], [], []>} : vector<72x2xbf16>, vector<2x2xbf16>, vector<72x2xf32> -> vector<72x2xf32>
    %18 = arith.addf %12, %17 : vector<72x2xf32>
    %c0_14 = arith.constant 0 : index
    %c9 = arith.constant 9 : index
    %c0_15 = arith.constant 0 : index
    %19 = vector.load %arg1[%c0_14, %c9, %c0_15] : memref<1x98x2xf32, #tpu.memory_space<vmem>>, vector<1x72x2xf32>
    %20 = vector.shape_cast %19 : vector<1x72x2xf32> to vector<72x2xf32>
    %21 = arith.truncf %20 : vector<72x2xf32> to vector<72x2xbf16>
    %c6 = arith.constant 6 : index
    %c0_16 = arith.constant 0 : index
    %22 = vector.load %arg3[%c6, %c0_16] : memref<18x2xbf16, #tpu.memory_space<vmem>>, vector<2x2xbf16>
    %cst_17 = arith.constant dense<0.000000e+00> : vector<72x2xf32>
    %23 = tpu.matmul %21, %22, %cst_17 {dimension_numbers = #tpu.dot_dimension_numbers<[1], [0], [0], [1], [0, 0, 1, 1], [], []>} : vector<72x2xbf16>, vector<2x2xbf16>, vector<72x2xf32> -> vector<72x2xf32>
    %24 = arith.addf %18, %23 : vector<72x2xf32>
    %c0_18 = arith.constant 0 : index
    %c9_19 = arith.constant 9 : index
    %c0_20 = arith.constant 0 : index
    %25 = vector.load %arg2[%c0_18, %c9_19, %c0_20] : memref<1x98x2xf32, #tpu.memory_space<vmem>>, vector<1x72x2xf32>
    %26 = vector.shape_cast %25 : vector<1x72x2xf32> to vector<72x2xf32>
    %27 = arith.truncf %26 : vector<72x2xf32> to vector<72x2xbf16>
    %c8 = arith.constant 8 : index
    %c0_21 = arith.constant 0 : index
    %28 = vector.load %arg3[%c8, %c0_21] : memref<18x2xbf16, #tpu.memory_space<vmem>>, vector<2x2xbf16>
    %cst_22 = arith.constant dense<0.000000e+00> : vector<72x2xf32>
    %29 = tpu.matmul %27, %28, %cst_22 {dimension_numbers = #tpu.dot_dimension_numbers<[1], [0], [0], [1], [0, 0, 1, 1], [], []>} : vector<72x2xbf16>, vector<2x2xbf16>, vector<72x2xf32> -> vector<72x2xf32>
    %30 = arith.addf %24, %29 : vector<72x2xf32>
    %c0_23 = arith.constant 0 : index
    %c10 = arith.constant 10 : index
    %c0_24 = arith.constant 0 : index
    %31 = vector.load %arg1[%c0_23, %c10, %c0_24] : memref<1x98x2xf32, #tpu.memory_space<vmem>>, vector<1x72x2xf32>
    %32 = vector.shape_cast %31 : vector<1x72x2xf32> to vector<72x2xf32>
    %33 = arith.truncf %32 : vector<72x2xf32> to vector<72x2xbf16>
    %c10_25 = arith.constant 10 : index
    %c0_26 = arith.constant 0 : index
    %34 = vector.load %arg3[%c10_25, %c0_26] : memref<18x2xbf16, #tpu.memory_space<vmem>>, vector<2x2xbf16>
    %cst_27 = arith.constant dense<0.000000e+00> : vector<72x2xf32>
    %35 = tpu.matmul %33, %34, %cst_27 {dimension_numbers = #tpu.dot_dimension_numbers<[1], [0], [0], [1], [0, 0, 1, 1], [], []>} : vector<72x2xbf16>, vector<2x2xbf16>, vector<72x2xf32> -> vector<72x2xf32>
    %36 = arith.addf %30, %35 : vector<72x2xf32>
    %c0_28 = arith.constant 0 : index
    %c18 = arith.constant 18 : index
    %c0_29 = arith.constant 0 : index
    %37 = vector.load %arg1[%c0_28, %c18, %c0_29] : memref<1x98x2xf32, #tpu.memory_space<vmem>>, vector<1x72x2xf32>
    %38 = vector.shape_cast %37 : vector<1x72x2xf32> to vector<72x2xf32>
    %39 = arith.truncf %38 : vector<72x2xf32> to vector<72x2xbf16>
    %c12 = arith.constant 12 : index
    %c0_30 = arith.constant 0 : index
    %40 = vector.load %arg3[%c12, %c0_30] : memref<18x2xbf16, #tpu.memory_space<vmem>>, vector<2x2xbf16>
    %cst_31 = arith.constant dense<0.000000e+00> : vector<72x2xf32>
    %41 = tpu.matmul %39, %40, %cst_31 {dimension_numbers = #tpu.dot_dimension_numbers<[1], [0], [0], [1], [0, 0, 1, 1], [], []>} : vector<72x2xbf16>, vector<2x2xbf16>, vector<72x2xf32> -> vector<72x2xf32>
    %42 = arith.addf %36, %41 : vector<72x2xf32>
    %c0_32 = arith.constant 0 : index
    %c18_33 = arith.constant 18 : index
    %c0_34 = arith.constant 0 : index
    %43 = vector.load %arg2[%c0_32, %c18_33, %c0_34] : memref<1x98x2xf32, #tpu.memory_space<vmem>>, vector<1x72x2xf32>
    %44 = vector.shape_cast %43 : vector<1x72x2xf32> to vector<72x2xf32>
    %45 = arith.truncf %44 : vector<72x2xf32> to vector<72x2xbf16>
    %c14 = arith.constant 14 : index
    %c0_35 = arith.constant 0 : index
    %46 = vector.load %arg3[%c14, %c0_35] : memref<18x2xbf16, #tpu.memory_space<vmem>>, vector<2x2xbf16>
    %cst_36 = arith.constant dense<0.000000e+00> : vector<72x2xf32>
    %47 = tpu.matmul %45, %46, %cst_36 {dimension_numbers = #tpu.dot_dimension_numbers<[1], [0], [0], [1], [0, 0, 1, 1], [], []>} : vector<72x2xbf16>, vector<2x2xbf16>, vector<72x2xf32> -> vector<72x2xf32>
    %48 = arith.addf %42, %47 : vector<72x2xf32>
    %c0_37 = arith.constant 0 : index
    %c19 = arith.constant 19 : index
    %c0_38 = arith.constant 0 : index
    %49 = vector.load %arg1[%c0_37, %c19, %c0_38] : memref<1x98x2xf32, #tpu.memory_space<vmem>>, vector<1x72x2xf32>
    %50 = vector.shape_cast %49 : vector<1x72x2xf32> to vector<72x2xf32>
    %51 = arith.truncf %50 : vector<72x2xf32> to vector<72x2xbf16>
    %c16 = arith.constant 16 : index
    %c0_39 = arith.constant 0 : index
    %52 = vector.load %arg3[%c16, %c0_39] : memref<18x2xbf16, #tpu.memory_space<vmem>>, vector<2x2xbf16>
    %cst_40 = arith.constant dense<0.000000e+00> : vector<72x2xf32>
    %53 = tpu.matmul %51, %52, %cst_40 {dimension_numbers = #tpu.dot_dimension_numbers<[1], [0], [0], [1], [0, 0, 1, 1], [], []>} : vector<72x2xbf16>, vector<2x2xbf16>, vector<72x2xf32> -> vector<72x2xf32>
    %54 = arith.addf %48, %53 : vector<72x2xf32>
    %c0_41 = arith.constant 0 : index
    %c0_42 = arith.constant 0 : index
    %55 = vector.load %arg4[%c0_41, %c0_42] : memref<1x2xf32, #tpu.memory_space<vmem>>, vector<1x2xf32>
    %56 = vector.broadcast %55 : vector<1x2xf32> to vector<72x2xf32>
    %57 = arith.addf %54, %56 : vector<72x2xf32>
    %cst_43 = arith.constant 0.000000e+00 : f32
    %58 = vector.broadcast %cst_43 : f32 to vector<72x2xf32>
    %59 = arith.maximumf %57, %58 : vector<72x2xf32>
    %cst_44 = arith.constant 0.000000e+00 : f32
    %60 = vector.broadcast %cst_44 : f32 to vector<72x2xf32>
    %c0_45 = arith.constant 0 : index
    %c0_46 = arith.constant 0 : index
    %c0_47 = arith.constant 0 : index
    %61 = vector.load %arg2[%c0_45, %c0_46, %c0_47] : memref<1x98x2xf32, #tpu.memory_space<vmem>>, vector<1x72x2xf32>
    %62 = vector.shape_cast %61 : vector<1x72x2xf32> to vector<72x2xf32>
    %63 = arith.truncf %62 : vector<72x2xf32> to vector<72x2xbf16>
    %c0_48 = arith.constant 0 : index
    %c0_49 = arith.constant 0 : index
    %64 = vector.load %arg3[%c0_48, %c0_49] : memref<18x2xbf16, #tpu.memory_space<vmem>>, vector<2x2xbf16>
    %cst_50 = arith.constant dense<0.000000e+00> : vector<72x2xf32>
    %65 = tpu.matmul %63, %64, %cst_50 {dimension_numbers = #tpu.dot_dimension_numbers<[1], [0], [0], [1], [0, 0, 1, 1], [], []>} : vector<72x2xbf16>, vector<2x2xbf16>, vector<72x2xf32> -> vector<72x2xf32>
    %66 = arith.addf %60, %65 : vector<72x2xf32>
    %c0_51 = arith.constant 0 : index
    %c1_52 = arith.constant 1 : index
    %c0_53 = arith.constant 0 : index
    %67 = vector.load %arg1[%c0_51, %c1_52, %c0_53] : memref<1x98x2xf32, #tpu.memory_space<vmem>>, vector<1x72x2xf32>
    %68 = vector.shape_cast %67 : vector<1x72x2xf32> to vector<72x2xf32>
    %69 = arith.truncf %68 : vector<72x2xf32> to vector<72x2xbf16>
    %c2_54 = arith.constant 2 : index
    %c0_55 = arith.constant 0 : index
    %70 = vector.load %arg3[%c2_54, %c0_55] : memref<18x2xbf16, #tpu.memory_space<vmem>>, vector<2x2xbf16>
    %cst_56 = arith.constant dense<0.000000e+00> : vector<72x2xf32>
    %71 = tpu.matmul %69, %70, %cst_56 {dimension_numbers = #tpu.dot_dimension_numbers<[1], [0], [0], [1], [0, 0, 1, 1], [], []>} : vector<72x2xbf16>, vector<2x2xbf16>, vector<72x2xf32> -> vector<72x2xf32>
    %72 = arith.addf %66, %71 : vector<72x2xf32>
    %c0_57 = arith.constant 0 : index
    %c1_58 = arith.constant 1 : index
    %c0_59 = arith.constant 0 : index
    %73 = vector.load %arg2[%c0_57, %c1_58, %c0_59] : memref<1x98x2xf32, #tpu.memory_space<vmem>>, vector<1x72x2xf32>
    %74 = vector.shape_cast %73 : vector<1x72x2xf32> to vector<72x2xf32>
    %75 = arith.truncf %74 : vector<72x2xf32> to vector<72x2xbf16>
    %c4_60 = arith.constant 4 : index
    %c0_61 = arith.constant 0 : index
    %76 = vector.load %arg3[%c4_60, %c0_61] : memref<18x2xbf16, #tpu.memory_space<vmem>>, vector<2x2xbf16>
    %cst_62 = arith.constant dense<0.000000e+00> : vector<72x2xf32>
    %77 = tpu.matmul %75, %76, %cst_62 {dimension_numbers = #tpu.dot_dimension_numbers<[1], [0], [0], [1], [0, 0, 1, 1], [], []>} : vector<72x2xbf16>, vector<2x2xbf16>, vector<72x2xf32> -> vector<72x2xf32>
    %78 = arith.addf %72, %77 : vector<72x2xf32>
    %c0_63 = arith.constant 0 : index
    %c9_64 = arith.constant 9 : index
    %c0_65 = arith.constant 0 : index
    %79 = vector.load %arg2[%c0_63, %c9_64, %c0_65] : memref<1x98x2xf32, #tpu.memory_space<vmem>>, vector<1x72x2xf32>
    %80 = vector.shape_cast %79 : vector<1x72x2xf32> to vector<72x2xf32>
    %81 = arith.truncf %80 : vector<72x2xf32> to vector<72x2xbf16>
    %c6_66 = arith.constant 6 : index
    %c0_67 = arith.constant 0 : index
    %82 = vector.load %arg3[%c6_66, %c0_67] : memref<18x2xbf16, #tpu.memory_space<vmem>>, vector<2x2xbf16>
    %cst_68 = arith.constant dense<0.000000e+00> : vector<72x2xf32>
    %83 = tpu.matmul %81, %82, %cst_68 {dimension_numbers = #tpu.dot_dimension_numbers<[1], [0], [0], [1], [0, 0, 1, 1], [], []>} : vector<72x2xbf16>, vector<2x2xbf16>, vector<72x2xf32> -> vector<72x2xf32>
    %84 = arith.addf %78, %83 : vector<72x2xf32>
    %c0_69 = arith.constant 0 : index
    %c10_70 = arith.constant 10 : index
    %c0_71 = arith.constant 0 : index
    %85 = vector.load %arg1[%c0_69, %c10_70, %c0_71] : memref<1x98x2xf32, #tpu.memory_space<vmem>>, vector<1x72x2xf32>
    %86 = vector.shape_cast %85 : vector<1x72x2xf32> to vector<72x2xf32>
    %87 = arith.truncf %86 : vector<72x2xf32> to vector<72x2xbf16>
    %c8_72 = arith.constant 8 : index
    %c0_73 = arith.constant 0 : index
    %88 = vector.load %arg3[%c8_72, %c0_73] : memref<18x2xbf16, #tpu.memory_space<vmem>>, vector<2x2xbf16>
    %cst_74 = arith.constant dense<0.000000e+00> : vector<72x2xf32>
    %89 = tpu.matmul %87, %88, %cst_74 {dimension_numbers = #tpu.dot_dimension_numbers<[1], [0], [0], [1], [0, 0, 1, 1], [], []>} : vector<72x2xbf16>, vector<2x2xbf16>, vector<72x2xf32> -> vector<72x2xf32>
    %90 = arith.addf %84, %89 : vector<72x2xf32>
    %c0_75 = arith.constant 0 : index
    %c10_76 = arith.constant 10 : index
    %c0_77 = arith.constant 0 : index
    %91 = vector.load %arg2[%c0_75, %c10_76, %c0_77] : memref<1x98x2xf32, #tpu.memory_space<vmem>>, vector<1x72x2xf32>
    %92 = vector.shape_cast %91 : vector<1x72x2xf32> to vector<72x2xf32>
    %93 = arith.truncf %92 : vector<72x2xf32> to vector<72x2xbf16>
    %c10_78 = arith.constant 10 : index
    %c0_79 = arith.constant 0 : index
    %94 = vector.load %arg3[%c10_78, %c0_79] : memref<18x2xbf16, #tpu.memory_space<vmem>>, vector<2x2xbf16>
    %cst_80 = arith.constant dense<0.000000e+00> : vector<72x2xf32>
    %95 = tpu.matmul %93, %94, %cst_80 {dimension_numbers = #tpu.dot_dimension_numbers<[1], [0], [0], [1], [0, 0, 1, 1], [], []>} : vector<72x2xbf16>, vector<2x2xbf16>, vector<72x2xf32> -> vector<72x2xf32>
    %96 = arith.addf %90, %95 : vector<72x2xf32>
    %c0_81 = arith.constant 0 : index
    %c18_82 = arith.constant 18 : index
    %c0_83 = arith.constant 0 : index
    %97 = vector.load %arg2[%c0_81, %c18_82, %c0_83] : memref<1x98x2xf32, #tpu.memory_space<vmem>>, vector<1x72x2xf32>
    %98 = vector.shape_cast %97 : vector<1x72x2xf32> to vector<72x2xf32>
    %99 = arith.truncf %98 : vector<72x2xf32> to vector<72x2xbf16>
    %c12_84 = arith.constant 12 : index
    %c0_85 = arith.constant 0 : index
    %100 = vector.load %arg3[%c12_84, %c0_85] : memref<18x2xbf16, #tpu.memory_space<vmem>>, vector<2x2xbf16>
    %cst_86 = arith.constant dense<0.000000e+00> : vector<72x2xf32>
    %101 = tpu.matmul %99, %100, %cst_86 {dimension_numbers = #tpu.dot_dimension_numbers<[1], [0], [0], [1], [0, 0, 1, 1], [], []>} : vector<72x2xbf16>, vector<2x2xbf16>, vector<72x2xf32> -> vector<72x2xf32>
    %102 = arith.addf %96, %101 : vector<72x2xf32>
    %c0_87 = arith.constant 0 : index
    %c19_88 = arith.constant 19 : index
    %c0_89 = arith.constant 0 : index
    %103 = vector.load %arg1[%c0_87, %c19_88, %c0_89] : memref<1x98x2xf32, #tpu.memory_space<vmem>>, vector<1x72x2xf32>
    %104 = vector.shape_cast %103 : vector<1x72x2xf32> to vector<72x2xf32>
    %105 = arith.truncf %104 : vector<72x2xf32> to vector<72x2xbf16>
    %c14_90 = arith.constant 14 : index
    %c0_91 = arith.constant 0 : index
    %106 = vector.load %arg3[%c14_90, %c0_91] : memref<18x2xbf16, #tpu.memory_space<vmem>>, vector<2x2xbf16>
    %cst_92 = arith.constant dense<0.000000e+00> : vector<72x2xf32>
    %107 = tpu.matmul %105, %106, %cst_92 {dimension_numbers = #tpu.dot_dimension_numbers<[1], [0], [0], [1], [0, 0, 1, 1], [], []>} : vector<72x2xbf16>, vector<2x2xbf16>, vector<72x2xf32> -> vector<72x2xf32>
    %108 = arith.addf %102, %107 : vector<72x2xf32>
    %c0_93 = arith.constant 0 : index
    %c19_94 = arith.constant 19 : index
    %c0_95 = arith.constant 0 : index
    %109 = vector.load %arg2[%c0_93, %c19_94, %c0_95] : memref<1x98x2xf32, #tpu.memory_space<vmem>>, vector<1x72x2xf32>
    %110 = vector.shape_cast %109 : vector<1x72x2xf32> to vector<72x2xf32>
    %111 = arith.truncf %110 : vector<72x2xf32> to vector<72x2xbf16>
    %c16_96 = arith.constant 16 : index
    %c0_97 = arith.constant 0 : index
    %112 = vector.load %arg3[%c16_96, %c0_97] : memref<18x2xbf16, #tpu.memory_space<vmem>>, vector<2x2xbf16>
    %cst_98 = arith.constant dense<0.000000e+00> : vector<72x2xf32>
    %113 = tpu.matmul %111, %112, %cst_98 {dimension_numbers = #tpu.dot_dimension_numbers<[1], [0], [0], [1], [0, 0, 1, 1], [], []>} : vector<72x2xbf16>, vector<2x2xbf16>, vector<72x2xf32> -> vector<72x2xf32>
    %114 = arith.addf %108, %113 : vector<72x2xf32>
    %c0_99 = arith.constant 0 : index
    %c0_100 = arith.constant 0 : index
    %115 = vector.load %arg4[%c0_99, %c0_100] : memref<1x2xf32, #tpu.memory_space<vmem>>, vector<1x2xf32>
    %116 = vector.broadcast %115 : vector<1x2xf32> to vector<72x2xf32>
    %117 = arith.addf %114, %116 : vector<72x2xf32>
    %cst_101 = arith.constant 0.000000e+00 : f32
    %118 = vector.broadcast %cst_101 : f32 to vector<72x2xf32>
    %119 = arith.maximumf %117, %118 : vector<72x2xf32>
    %120 = arith.maximumf %59, %119 : vector<72x2xf32>
    %c0_102 = arith.constant 0 : index
    %c0_103 = arith.constant 0 : index
    %c0_104 = arith.constant 0 : index
    %121 = vector.load %arg5[%c0_102, %c0_103, %c0_104] : memref<1x72x2xf32, #tpu.memory_space<vmem>>, vector<1x72x2xf32>
    %122 = vector.shape_cast %121 : vector<1x72x2xf32> to vector<72x2xf32>
    %123 = vector.shape_cast %120 : vector<72x2xf32> to vector<1x72x2xf32>
    tpu.vector_store %arg5[%c0_102, %c0_103, %c0_104], %123 {strides = array<i32>} : memref<1x72x2xf32, #tpu.memory_space<vmem>>, vector<1x72x2xf32>,
    return
  }
  func.func @transform_0(%arg0: i32) -> (i32, i32, i32) {
    %c0_i32 = arith.constant 0 : i32
    %c0_i32_0 = arith.constant 0 : i32
    %c0_i32_1 = arith.constant 0 : i32
    return %arg0, %c0_i32, %c0_i32_0 : i32, i32, i32
  }
  func.func @transform_1(%arg0: i32) -> (i32, i32, i32) {
    %c0_i32 = arith.constant 0 : i32
    %c0_i32_0 = arith.constant 0 : i32
    %c0_i32_1 = arith.constant 0 : i32
    return %arg0, %c0_i32, %c0_i32_0 : i32, i32, i32
  }
  func.func @transform_2(%arg0: i32) -> (i32, i32) {
    %c0_i32 = arith.constant 0 : i32
    %c0_i32_0 = arith.constant 0 : i32
    %c0_i32_1 = arith.constant 0 : i32
    return %c0_i32, %c0_i32_0 : i32, i32
  }
  func.func @transform_3(%arg0: i32) -> (i32, i32) {
    %c0_i32 = arith.constant 0 : i32
    %c0_i32_0 = arith.constant 0 : i32
    %c0_i32_1 = arith.constant 0 : i32
    return %c0_i32, %c0_i32_0 : i32, i32
  }
  func.func @transform_4(%arg0: i32) -> (i32, i32, i32) {
    %c0_i32 = arith.constant 0 : i32
    %c0_i32_0 = arith.constant 0 : i32
    %c0_i32_1 = arith.constant 0 : i32
    return %arg0, %c0_i32, %c0_i32_0 : i32, i32, i32
  }
}

module attributes {stable_mosaic.version = 11 : i64} {
  func.func @kernel(%arg0: i32, %arg1: memref<1x58x2xf32, #tpu.memory_space<vmem>>, %arg2: memref<1x58x2xf32, #tpu.memory_space<vmem>>, %arg3: memref<18x4xbf16, #tpu.memory_space<vmem>>, %arg4: memref<1x4xf32, #tpu.memory_space<vmem>>, %arg5: memref<1x40x4xf32, #tpu.memory_space<vmem>>) attributes {dimension_semantics = [#tpu.dimension_semantics<parallel>], iteration_bounds = array<i64: 2>, scalar_prefetch = 0 : i64, scratch_operands = 0 : i64, tpu.core_type = #tpu.core_type<tc>, window_params = [{transform_indices = @transform_0, window_bounds = array<i64: 1, 58, 2>}, {transform_indices = @transform_1, window_bounds = array<i64: 1, 58, 2>}, {pipeline_mode = #tpu.pipeline_mode<synchronous>, transform_indices = @transform_2, window_bounds = array<i64: 18, 4>}, {pipeline_mode = #tpu.pipeline_mode<synchronous>, transform_indices = @transform_3, window_bounds = array<i64: 1, 4>}, {transform_indices = @transform_4, window_bounds = array<i64: 1, 40, 4>}]} {
    %cst = arith.constant 0.000000e+00 : f32
    %0 = vector.broadcast %cst : f32 to vector<40x4xf32>
    %c0 = arith.constant 0 : index
    %c0_0 = arith.constant 0 : index
    %c0_1 = arith.constant 0 : index
    %1 = vector.load %arg1[%c0, %c0_0, %c0_1] : memref<1x58x2xf32, #tpu.memory_space<vmem>>, vector<1x40x2xf32>
    %2 = vector.shape_cast %1 : vector<1x40x2xf32> to vector<40x2xf32>
    %3 = arith.truncf %2 : vector<40x2xf32> to vector<40x2xbf16>
    %c0_2 = arith.constant 0 : index
    %c0_3 = arith.constant 0 : index
    %4 = vector.load %arg3[%c0_2, %c0_3] : memref<18x4xbf16, #tpu.memory_space<vmem>>, vector<2x4xbf16>
    %cst_4 = arith.constant dense<0.000000e+00> : vector<40x4xf32>
    %5 = tpu.matmul %3, %4, %cst_4 {dimension_numbers = #tpu.dot_dimension_numbers<[1], [0], [0], [1], [0, 0, 1, 1], [], []>} : vector<40x2xbf16>, vector<2x4xbf16>, vector<40x4xf32> -> vector<40x4xf32>
    %6 = arith.addf %0, %5 : vector<40x4xf32>
    %c0_5 = arith.constant 0 : index
    %c0_6 = arith.constant 0 : index
    %c0_7 = arith.constant 0 : index
    %7 = vector.load %arg2[%c0_5, %c0_6, %c0_7] : memref<1x58x2xf32, #tpu.memory_space<vmem>>, vector<1x40x2xf32>
    %8 = vector.shape_cast %7 : vector<1x40x2xf32> to vector<40x2xf32>
    %9 = arith.truncf %8 : vector<40x2xf32> to vector<40x2xbf16>
    %c2 = arith.constant 2 : index
    %c0_8 = arith.constant 0 : index
    %10 = vector.load %arg3[%c2, %c0_8] : memref<18x4xbf16, #tpu.memory_space<vmem>>, vector<2x4xbf16>
    %cst_9 = arith.constant dense<0.000000e+00> : vector<40x4xf32>
    %11 = tpu.matmul %9, %10, %cst_9 {dimension_numbers = #tpu.dot_dimension_numbers<[1], [0], [0], [1], [0, 0, 1, 1], [], []>} : vector<40x2xbf16>, vector<2x4xbf16>, vector<40x4xf32> -> vector<40x4xf32>
    %12 = arith.addf %6, %11 : vector<40x4xf32>
    %c0_10 = arith.constant 0 : index
    %c1 = arith.constant 1 : index
    %c0_11 = arith.constant 0 : index
    %13 = vector.load %arg1[%c0_10, %c1, %c0_11] : memref<1x58x2xf32, #tpu.memory_space<vmem>>, vector<1x40x2xf32>
    %14 = vector.shape_cast %13 : vector<1x40x2xf32> to vector<40x2xf32>
    %15 = arith.truncf %14 : vector<40x2xf32> to vector<40x2xbf16>
    %c4 = arith.constant 4 : index
    %c0_12 = arith.constant 0 : index
    %16 = vector.load %arg3[%c4, %c0_12] : memref<18x4xbf16, #tpu.memory_space<vmem>>, vector<2x4xbf16>
    %cst_13 = arith.constant dense<0.000000e+00> : vector<40x4xf32>
    %17 = tpu.matmul %15, %16, %cst_13 {dimension_numbers = #tpu.dot_dimension_numbers<[1], [0], [0], [1], [0, 0, 1, 1], [], []>} : vector<40x2xbf16>, vector<2x4xbf16>, vector<40x4xf32> -> vector<40x4xf32>
    %18 = arith.addf %12, %17 : vector<40x4xf32>
    %c0_14 = arith.constant 0 : index
    %c5 = arith.constant 5 : index
    %c0_15 = arith.constant 0 : index
    %19 = vector.load %arg1[%c0_14, %c5, %c0_15] : memref<1x58x2xf32, #tpu.memory_space<vmem>>, vector<1x40x2xf32>
    %20 = vector.shape_cast %19 : vector<1x40x2xf32> to vector<40x2xf32>
    %21 = arith.truncf %20 : vector<40x2xf32> to vector<40x2xbf16>
    %c6 = arith.constant 6 : index
    %c0_16 = arith.constant 0 : index
    %22 = vector.load %arg3[%c6, %c0_16] : memref<18x4xbf16, #tpu.memory_space<vmem>>, vector<2x4xbf16>
    %cst_17 = arith.constant dense<0.000000e+00> : vector<40x4xf32>
    %23 = tpu.matmul %21, %22, %cst_17 {dimension_numbers = #tpu.dot_dimension_numbers<[1], [0], [0], [1], [0, 0, 1, 1], [], []>} : vector<40x2xbf16>, vector<2x4xbf16>, vector<40x4xf32> -> vector<40x4xf32>
    %24 = arith.addf %18, %23 : vector<40x4xf32>
    %c0_18 = arith.constant 0 : index
    %c5_19 = arith.constant 5 : index
    %c0_20 = arith.constant 0 : index
    %25 = vector.load %arg2[%c0_18, %c5_19, %c0_20] : memref<1x58x2xf32, #tpu.memory_space<vmem>>, vector<1x40x2xf32>
    %26 = vector.shape_cast %25 : vector<1x40x2xf32> to vector<40x2xf32>
    %27 = arith.truncf %26 : vector<40x2xf32> to vector<40x2xbf16>
    %c8 = arith.constant 8 : index
    %c0_21 = arith.constant 0 : index
    %28 = vector.load %arg3[%c8, %c0_21] : memref<18x4xbf16, #tpu.memory_space<vmem>>, vector<2x4xbf16>
    %cst_22 = arith.constant dense<0.000000e+00> : vector<40x4xf32>
    %29 = tpu.matmul %27, %28, %cst_22 {dimension_numbers = #tpu.dot_dimension_numbers<[1], [0], [0], [1], [0, 0, 1, 1], [], []>} : vector<40x2xbf16>, vector<2x4xbf16>, vector<40x4xf32> -> vector<40x4xf32>
    %30 = arith.addf %24, %29 : vector<40x4xf32>
    %c0_23 = arith.constant 0 : index
    %c6_24 = arith.constant 6 : index
    %c0_25 = arith.constant 0 : index
    %31 = vector.load %arg1[%c0_23, %c6_24, %c0_25] : memref<1x58x2xf32, #tpu.memory_space<vmem>>, vector<1x40x2xf32>
    %32 = vector.shape_cast %31 : vector<1x40x2xf32> to vector<40x2xf32>
    %33 = arith.truncf %32 : vector<40x2xf32> to vector<40x2xbf16>
    %c10 = arith.constant 10 : index
    %c0_26 = arith.constant 0 : index
    %34 = vector.load %arg3[%c10, %c0_26] : memref<18x4xbf16, #tpu.memory_space<vmem>>, vector<2x4xbf16>
    %cst_27 = arith.constant dense<0.000000e+00> : vector<40x4xf32>
    %35 = tpu.matmul %33, %34, %cst_27 {dimension_numbers = #tpu.dot_dimension_numbers<[1], [0], [0], [1], [0, 0, 1, 1], [], []>} : vector<40x2xbf16>, vector<2x4xbf16>, vector<40x4xf32> -> vector<40x4xf32>
    %36 = arith.addf %30, %35 : vector<40x4xf32>
    %c0_28 = arith.constant 0 : index
    %c10_29 = arith.constant 10 : index
    %c0_30 = arith.constant 0 : index
    %37 = vector.load %arg1[%c0_28, %c10_29, %c0_30] : memref<1x58x2xf32, #tpu.memory_space<vmem>>, vector<1x40x2xf32>
    %38 = vector.shape_cast %37 : vector<1x40x2xf32> to vector<40x2xf32>
    %39 = arith.truncf %38 : vector<40x2xf32> to vector<40x2xbf16>
    %c12 = arith.constant 12 : index
    %c0_31 = arith.constant 0 : index
    %40 = vector.load %arg3[%c12, %c0_31] : memref<18x4xbf16, #tpu.memory_space<vmem>>, vector<2x4xbf16>
    %cst_32 = arith.constant dense<0.000000e+00> : vector<40x4xf32>
    %41 = tpu.matmul %39, %40, %cst_32 {dimension_numbers = #tpu.dot_dimension_numbers<[1], [0], [0], [1], [0, 0, 1, 1], [], []>} : vector<40x2xbf16>, vector<2x4xbf16>, vector<40x4xf32> -> vector<40x4xf32>
    %42 = arith.addf %36, %41 : vector<40x4xf32>
    %c0_33 = arith.constant 0 : index
    %c10_34 = arith.constant 10 : index
    %c0_35 = arith.constant 0 : index
    %43 = vector.load %arg2[%c0_33, %c10_34, %c0_35] : memref<1x58x2xf32, #tpu.memory_space<vmem>>, vector<1x40x2xf32>
    %44 = vector.shape_cast %43 : vector<1x40x2xf32> to vector<40x2xf32>
    %45 = arith.truncf %44 : vector<40x2xf32> to vector<40x2xbf16>
    %c14 = arith.constant 14 : index
    %c0_36 = arith.constant 0 : index
    %46 = vector.load %arg3[%c14, %c0_36] : memref<18x4xbf16, #tpu.memory_space<vmem>>, vector<2x4xbf16>
    %cst_37 = arith.constant dense<0.000000e+00> : vector<40x4xf32>
    %47 = tpu.matmul %45, %46, %cst_37 {dimension_numbers = #tpu.dot_dimension_numbers<[1], [0], [0], [1], [0, 0, 1, 1], [], []>} : vector<40x2xbf16>, vector<2x4xbf16>, vector<40x4xf32> -> vector<40x4xf32>
    %48 = arith.addf %42, %47 : vector<40x4xf32>
    %c0_38 = arith.constant 0 : index
    %c11 = arith.constant 11 : index
    %c0_39 = arith.constant 0 : index
    %49 = vector.load %arg1[%c0_38, %c11, %c0_39] : memref<1x58x2xf32, #tpu.memory_space<vmem>>, vector<1x40x2xf32>
    %50 = vector.shape_cast %49 : vector<1x40x2xf32> to vector<40x2xf32>
    %51 = arith.truncf %50 : vector<40x2xf32> to vector<40x2xbf16>
    %c16 = arith.constant 16 : index
    %c0_40 = arith.constant 0 : index
    %52 = vector.load %arg3[%c16, %c0_40] : memref<18x4xbf16, #tpu.memory_space<vmem>>, vector<2x4xbf16>
    %cst_41 = arith.constant dense<0.000000e+00> : vector<40x4xf32>
    %53 = tpu.matmul %51, %52, %cst_41 {dimension_numbers = #tpu.dot_dimension_numbers<[1], [0], [0], [1], [0, 0, 1, 1], [], []>} : vector<40x2xbf16>, vector<2x4xbf16>, vector<40x4xf32> -> vector<40x4xf32>
    %54 = arith.addf %48, %53 : vector<40x4xf32>
    %c0_42 = arith.constant 0 : index
    %c0_43 = arith.constant 0 : index
    %55 = vector.load %arg4[%c0_42, %c0_43] : memref<1x4xf32, #tpu.memory_space<vmem>>, vector<1x4xf32>
    %56 = vector.broadcast %55 : vector<1x4xf32> to vector<40x4xf32>
    %57 = arith.addf %54, %56 : vector<40x4xf32>
    %cst_44 = arith.constant 0.000000e+00 : f32
    %58 = vector.broadcast %cst_44 : f32 to vector<40x4xf32>
    %59 = arith.maximumf %57, %58 : vector<40x4xf32>
    %cst_45 = arith.constant 0.000000e+00 : f32
    %60 = vector.broadcast %cst_45 : f32 to vector<40x4xf32>
    %c0_46 = arith.constant 0 : index
    %c0_47 = arith.constant 0 : index
    %c0_48 = arith.constant 0 : index
    %61 = vector.load %arg2[%c0_46, %c0_47, %c0_48] : memref<1x58x2xf32, #tpu.memory_space<vmem>>, vector<1x40x2xf32>
    %62 = vector.shape_cast %61 : vector<1x40x2xf32> to vector<40x2xf32>
    %63 = arith.truncf %62 : vector<40x2xf32> to vector<40x2xbf16>
    %c0_49 = arith.constant 0 : index
    %c0_50 = arith.constant 0 : index
    %64 = vector.load %arg3[%c0_49, %c0_50] : memref<18x4xbf16, #tpu.memory_space<vmem>>, vector<2x4xbf16>
    %cst_51 = arith.constant dense<0.000000e+00> : vector<40x4xf32>
    %65 = tpu.matmul %63, %64, %cst_51 {dimension_numbers = #tpu.dot_dimension_numbers<[1], [0], [0], [1], [0, 0, 1, 1], [], []>} : vector<40x2xbf16>, vector<2x4xbf16>, vector<40x4xf32> -> vector<40x4xf32>
    %66 = arith.addf %60, %65 : vector<40x4xf32>
    %c0_52 = arith.constant 0 : index
    %c1_53 = arith.constant 1 : index
    %c0_54 = arith.constant 0 : index
    %67 = vector.load %arg1[%c0_52, %c1_53, %c0_54] : memref<1x58x2xf32, #tpu.memory_space<vmem>>, vector<1x40x2xf32>
    %68 = vector.shape_cast %67 : vector<1x40x2xf32> to vector<40x2xf32>
    %69 = arith.truncf %68 : vector<40x2xf32> to vector<40x2xbf16>
    %c2_55 = arith.constant 2 : index
    %c0_56 = arith.constant 0 : index
    %70 = vector.load %arg3[%c2_55, %c0_56] : memref<18x4xbf16, #tpu.memory_space<vmem>>, vector<2x4xbf16>
    %cst_57 = arith.constant dense<0.000000e+00> : vector<40x4xf32>
    %71 = tpu.matmul %69, %70, %cst_57 {dimension_numbers = #tpu.dot_dimension_numbers<[1], [0], [0], [1], [0, 0, 1, 1], [], []>} : vector<40x2xbf16>, vector<2x4xbf16>, vector<40x4xf32> -> vector<40x4xf32>
    %72 = arith.addf %66, %71 : vector<40x4xf32>
    %c0_58 = arith.constant 0 : index
    %c1_59 = arith.constant 1 : index
    %c0_60 = arith.constant 0 : index
    %73 = vector.load %arg2[%c0_58, %c1_59, %c0_60] : memref<1x58x2xf32, #tpu.memory_space<vmem>>, vector<1x40x2xf32>
    %74 = vector.shape_cast %73 : vector<1x40x2xf32> to vector<40x2xf32>
    %75 = arith.truncf %74 : vector<40x2xf32> to vector<40x2xbf16>
    %c4_61 = arith.constant 4 : index
    %c0_62 = arith.constant 0 : index
    %76 = vector.load %arg3[%c4_61, %c0_62] : memref<18x4xbf16, #tpu.memory_space<vmem>>, vector<2x4xbf16>
    %cst_63 = arith.constant dense<0.000000e+00> : vector<40x4xf32>
    %77 = tpu.matmul %75, %76, %cst_63 {dimension_numbers = #tpu.dot_dimension_numbers<[1], [0], [0], [1], [0, 0, 1, 1], [], []>} : vector<40x2xbf16>, vector<2x4xbf16>, vector<40x4xf32> -> vector<40x4xf32>
    %78 = arith.addf %72, %77 : vector<40x4xf32>
    %c0_64 = arith.constant 0 : index
    %c5_65 = arith.constant 5 : index
    %c0_66 = arith.constant 0 : index
    %79 = vector.load %arg2[%c0_64, %c5_65, %c0_66] : memref<1x58x2xf32, #tpu.memory_space<vmem>>, vector<1x40x2xf32>
    %80 = vector.shape_cast %79 : vector<1x40x2xf32> to vector<40x2xf32>
    %81 = arith.truncf %80 : vector<40x2xf32> to vector<40x2xbf16>
    %c6_67 = arith.constant 6 : index
    %c0_68 = arith.constant 0 : index
    %82 = vector.load %arg3[%c6_67, %c0_68] : memref<18x4xbf16, #tpu.memory_space<vmem>>, vector<2x4xbf16>
    %cst_69 = arith.constant dense<0.000000e+00> : vector<40x4xf32>
    %83 = tpu.matmul %81, %82, %cst_69 {dimension_numbers = #tpu.dot_dimension_numbers<[1], [0], [0], [1], [0, 0, 1, 1], [], []>} : vector<40x2xbf16>, vector<2x4xbf16>, vector<40x4xf32> -> vector<40x4xf32>
    %84 = arith.addf %78, %83 : vector<40x4xf32>
    %c0_70 = arith.constant 0 : index
    %c6_71 = arith.constant 6 : index
    %c0_72 = arith.constant 0 : index
    %85 = vector.load %arg1[%c0_70, %c6_71, %c0_72] : memref<1x58x2xf32, #tpu.memory_space<vmem>>, vector<1x40x2xf32>
    %86 = vector.shape_cast %85 : vector<1x40x2xf32> to vector<40x2xf32>
    %87 = arith.truncf %86 : vector<40x2xf32> to vector<40x2xbf16>
    %c8_73 = arith.constant 8 : index
    %c0_74 = arith.constant 0 : index
    %88 = vector.load %arg3[%c8_73, %c0_74] : memref<18x4xbf16, #tpu.memory_space<vmem>>, vector<2x4xbf16>
    %cst_75 = arith.constant dense<0.000000e+00> : vector<40x4xf32>
    %89 = tpu.matmul %87, %88, %cst_75 {dimension_numbers = #tpu.dot_dimension_numbers<[1], [0], [0], [1], [0, 0, 1, 1], [], []>} : vector<40x2xbf16>, vector<2x4xbf16>, vector<40x4xf32> -> vector<40x4xf32>
    %90 = arith.addf %84, %89 : vector<40x4xf32>
    %c0_76 = arith.constant 0 : index
    %c6_77 = arith.constant 6 : index
    %c0_78 = arith.constant 0 : index
    %91 = vector.load %arg2[%c0_76, %c6_77, %c0_78] : memref<1x58x2xf32, #tpu.memory_space<vmem>>, vector<1x40x2xf32>
    %92 = vector.shape_cast %91 : vector<1x40x2xf32> to vector<40x2xf32>
    %93 = arith.truncf %92 : vector<40x2xf32> to vector<40x2xbf16>
    %c10_79 = arith.constant 10 : index
    %c0_80 = arith.constant 0 : index
    %94 = vector.load %arg3[%c10_79, %c0_80] : memref<18x4xbf16, #tpu.memory_space<vmem>>, vector<2x4xbf16>
    %cst_81 = arith.constant dense<0.000000e+00> : vector<40x4xf32>
    %95 = tpu.matmul %93, %94, %cst_81 {dimension_numbers = #tpu.dot_dimension_numbers<[1], [0], [0], [1], [0, 0, 1, 1], [], []>} : vector<40x2xbf16>, vector<2x4xbf16>, vector<40x4xf32> -> vector<40x4xf32>
    %96 = arith.addf %90, %95 : vector<40x4xf32>
    %c0_82 = arith.constant 0 : index
    %c10_83 = arith.constant 10 : index
    %c0_84 = arith.constant 0 : index
    %97 = vector.load %arg2[%c0_82, %c10_83, %c0_84] : memref<1x58x2xf32, #tpu.memory_space<vmem>>, vector<1x40x2xf32>
    %98 = vector.shape_cast %97 : vector<1x40x2xf32> to vector<40x2xf32>
    %99 = arith.truncf %98 : vector<40x2xf32> to vector<40x2xbf16>
    %c12_85 = arith.constant 12 : index
    %c0_86 = arith.constant 0 : index
    %100 = vector.load %arg3[%c12_85, %c0_86] : memref<18x4xbf16, #tpu.memory_space<vmem>>, vector<2x4xbf16>
    %cst_87 = arith.constant dense<0.000000e+00> : vector<40x4xf32>
    %101 = tpu.matmul %99, %100, %cst_87 {dimension_numbers = #tpu.dot_dimension_numbers<[1], [0], [0], [1], [0, 0, 1, 1], [], []>} : vector<40x2xbf16>, vector<2x4xbf16>, vector<40x4xf32> -> vector<40x4xf32>
    %102 = arith.addf %96, %101 : vector<40x4xf32>
    %c0_88 = arith.constant 0 : index
    %c11_89 = arith.constant 11 : index
    %c0_90 = arith.constant 0 : index
    %103 = vector.load %arg1[%c0_88, %c11_89, %c0_90] : memref<1x58x2xf32, #tpu.memory_space<vmem>>, vector<1x40x2xf32>
    %104 = vector.shape_cast %103 : vector<1x40x2xf32> to vector<40x2xf32>
    %105 = arith.truncf %104 : vector<40x2xf32> to vector<40x2xbf16>
    %c14_91 = arith.constant 14 : index
    %c0_92 = arith.constant 0 : index
    %106 = vector.load %arg3[%c14_91, %c0_92] : memref<18x4xbf16, #tpu.memory_space<vmem>>, vector<2x4xbf16>
    %cst_93 = arith.constant dense<0.000000e+00> : vector<40x4xf32>
    %107 = tpu.matmul %105, %106, %cst_93 {dimension_numbers = #tpu.dot_dimension_numbers<[1], [0], [0], [1], [0, 0, 1, 1], [], []>} : vector<40x2xbf16>, vector<2x4xbf16>, vector<40x4xf32> -> vector<40x4xf32>
    %108 = arith.addf %102, %107 : vector<40x4xf32>
    %c0_94 = arith.constant 0 : index
    %c11_95 = arith.constant 11 : index
    %c0_96 = arith.constant 0 : index
    %109 = vector.load %arg2[%c0_94, %c11_95, %c0_96] : memref<1x58x2xf32, #tpu.memory_space<vmem>>, vector<1x40x2xf32>
    %110 = vector.shape_cast %109 : vector<1x40x2xf32> to vector<40x2xf32>
    %111 = arith.truncf %110 : vector<40x2xf32> to vector<40x2xbf16>
    %c16_97 = arith.constant 16 : index
    %c0_98 = arith.constant 0 : index
    %112 = vector.load %arg3[%c16_97, %c0_98] : memref<18x4xbf16, #tpu.memory_space<vmem>>, vector<2x4xbf16>
    %cst_99 = arith.constant dense<0.000000e+00> : vector<40x4xf32>
    %113 = tpu.matmul %111, %112, %cst_99 {dimension_numbers = #tpu.dot_dimension_numbers<[1], [0], [0], [1], [0, 0, 1, 1], [], []>} : vector<40x2xbf16>, vector<2x4xbf16>, vector<40x4xf32> -> vector<40x4xf32>
    %114 = arith.addf %108, %113 : vector<40x4xf32>
    %c0_100 = arith.constant 0 : index
    %c0_101 = arith.constant 0 : index
    %115 = vector.load %arg4[%c0_100, %c0_101] : memref<1x4xf32, #tpu.memory_space<vmem>>, vector<1x4xf32>
    %116 = vector.broadcast %115 : vector<1x4xf32> to vector<40x4xf32>
    %117 = arith.addf %114, %116 : vector<40x4xf32>
    %cst_102 = arith.constant 0.000000e+00 : f32
    %118 = vector.broadcast %cst_102 : f32 to vector<40x4xf32>
    %119 = arith.maximumf %117, %118 : vector<40x4xf32>
    %120 = arith.maximumf %59, %119 : vector<40x4xf32>
    %c0_103 = arith.constant 0 : index
    %c0_104 = arith.constant 0 : index
    %c0_105 = arith.constant 0 : index
    %121 = vector.load %arg5[%c0_103, %c0_104, %c0_105] : memref<1x40x4xf32, #tpu.memory_space<vmem>>, vector<1x40x4xf32>
    %122 = vector.shape_cast %121 : vector<1x40x4xf32> to vector<40x4xf32>
    %123 = vector.shape_cast %120 : vector<40x4xf32> to vector<1x40x4xf32>
    tpu.vector_store %arg5[%c0_103, %c0_104, %c0_105], %123 {strides = array<i32>} : memref<1x40x4xf32, #tpu.memory_space<vmem>>, vector<1x40x4xf32>,
    return
  }
  func.func @transform_0(%arg0: i32) -> (i32, i32, i32) {
    %c0_i32 = arith.constant 0 : i32
    %c0_i32_0 = arith.constant 0 : i32
    %c0_i32_1 = arith.constant 0 : i32
    return %arg0, %c0_i32, %c0_i32_0 : i32, i32, i32
  }
  func.func @transform_1(%arg0: i32) -> (i32, i32, i32) {
    %c0_i32 = arith.constant 0 : i32
    %c0_i32_0 = arith.constant 0 : i32
    %c0_i32_1 = arith.constant 0 : i32
    return %arg0, %c0_i32, %c0_i32_0 : i32, i32, i32
  }
  func.func @transform_2(%arg0: i32) -> (i32, i32) {
    %c0_i32 = arith.constant 0 : i32
    %c0_i32_0 = arith.constant 0 : i32
    %c0_i32_1 = arith.constant 0 : i32
    return %c0_i32, %c0_i32_0 : i32, i32
  }
  func.func @transform_3(%arg0: i32) -> (i32, i32) {
    %c0_i32 = arith.constant 0 : i32
    %c0_i32_0 = arith.constant 0 : i32
    %c0_i32_1 = arith.constant 0 : i32
    return %c0_i32, %c0_i32_0 : i32, i32
  }
  func.func @transform_4(%arg0: i32) -> (i32, i32, i32) {
    %c0_i32 = arith.constant 0 : i32
    %c0_i32_0 = arith.constant 0 : i32
    %c0_i32_1 = arith.constant 0 : i32
    return %arg0, %c0_i32, %c0_i32_0 : i32, i32, i32
  }
}

module attributes {stable_mosaic.version = 11 : i64} {
  func.func @linear_kernel(%arg0: i32, %arg1: memref<16x16xf32, #tpu.memory_space<vmem>>, %arg2: memref<16x128xbf16, #tpu.memory_space<vmem>>, %arg3: memref<1x128xf32, #tpu.memory_space<vmem>>, %arg4: memref<16x128xf32, #tpu.memory_space<vmem>>) attributes {dimension_semantics = [#tpu.dimension_semantics<parallel>], iteration_bounds = array<i64: 1>, scalar_prefetch = 0 : i64, scratch_operands = 0 : i64, tpu.core_type = #tpu.core_type<tc>, window_params = [{transform_indices = @transform_0, window_bounds = array<i64: 16, 16>}, {pipeline_mode = #tpu.pipeline_mode<synchronous>, transform_indices = @transform_1, window_bounds = array<i64: 16, 128>}, {pipeline_mode = #tpu.pipeline_mode<synchronous>, transform_indices = @transform_2, window_bounds = array<i64: 1, 128>}, {transform_indices = @transform_3, window_bounds = array<i64: 16, 128>}]} {
    %c0 = arith.constant 0 : index
    %c0_0 = arith.constant 0 : index
    %0 = vector.load %arg1[%c0, %c0_0] : memref<16x16xf32, #tpu.memory_space<vmem>>, vector<16x16xf32>
    %1 = arith.truncf %0 : vector<16x16xf32> to vector<16x16xbf16>
    %c0_1 = arith.constant 0 : index
    %c0_2 = arith.constant 0 : index
    %2 = vector.load %arg2[%c0_1, %c0_2] : memref<16x128xbf16, #tpu.memory_space<vmem>>, vector<16x128xbf16>
    %cst = arith.constant dense<0.000000e+00> : vector<16x128xf32>
    %3 = tpu.matmul %1, %2, %cst {dimension_numbers = #tpu.dot_dimension_numbers<[1], [0], [0], [1], [0, 0, 1, 1], [], []>} : vector<16x16xbf16>, vector<16x128xbf16>, vector<16x128xf32> -> vector<16x128xf32>
    %c0_3 = arith.constant 0 : index
    %c0_4 = arith.constant 0 : index
    %4 = vector.load %arg3[%c0_3, %c0_4] : memref<1x128xf32, #tpu.memory_space<vmem>>, vector<1x128xf32>
    %5 = vector.broadcast %4 : vector<1x128xf32> to vector<16x128xf32>
    %6 = arith.addf %3, %5 : vector<16x128xf32>
    %c0_5 = arith.constant 0 : index
    %c0_6 = arith.constant 0 : index
    %7 = vector.load %arg4[%c0_5, %c0_6] : memref<16x128xf32, #tpu.memory_space<vmem>>, vector<16x128xf32>
    tpu.vector_store %arg4[%c0_5, %c0_6], %6 {strides = array<i32>} : memref<16x128xf32, #tpu.memory_space<vmem>>, vector<16x128xf32>,
    return
  }
  func.func @transform_0(%arg0: i32) -> (i32, i32) {
    %c0_i32 = arith.constant 0 : i32
    %c0_i32_0 = arith.constant 0 : i32
    return %arg0, %c0_i32 : i32, i32
  }
  func.func @transform_1(%arg0: i32) -> (i32, i32) {
    %c0_i32 = arith.constant 0 : i32
    %c0_i32_0 = arith.constant 0 : i32
    %c0_i32_1 = arith.constant 0 : i32
    return %c0_i32, %c0_i32_0 : i32, i32
  }
  func.func @transform_2(%arg0: i32) -> (i32, i32) {
    %c0_i32 = arith.constant 0 : i32
    %c0_i32_0 = arith.constant 0 : i32
    %c0_i32_1 = arith.constant 0 : i32
    return %c0_i32, %c0_i32_0 : i32, i32
  }
  func.func @transform_3(%arg0: i32) -> (i32, i32) {
    %c0_i32 = arith.constant 0 : i32
    %c0_i32_0 = arith.constant 0 : i32
    return %arg0, %c0_i32 : i32, i32
  }
}

module attributes {stable_mosaic.version = 11 : i64} {
  func.func @linear_kernel(%arg0: i32, %arg1: memref<16x32xf32, #tpu.memory_space<vmem>>, %arg2: memref<32x128xbf16, #tpu.memory_space<vmem>>, %arg3: memref<1x128xf32, #tpu.memory_space<vmem>>, %arg4: memref<16x128xf32, #tpu.memory_space<vmem>>) attributes {dimension_semantics = [#tpu.dimension_semantics<parallel>], iteration_bounds = array<i64: 1>, scalar_prefetch = 0 : i64, scratch_operands = 0 : i64, tpu.core_type = #tpu.core_type<tc>, window_params = [{transform_indices = @transform_0, window_bounds = array<i64: 16, 32>}, {pipeline_mode = #tpu.pipeline_mode<synchronous>, transform_indices = @transform_1, window_bounds = array<i64: 32, 128>}, {pipeline_mode = #tpu.pipeline_mode<synchronous>, transform_indices = @transform_2, window_bounds = array<i64: 1, 128>}, {transform_indices = @transform_3, window_bounds = array<i64: 16, 128>}]} {
    %c0 = arith.constant 0 : index
    %c0_0 = arith.constant 0 : index
    %0 = vector.load %arg1[%c0, %c0_0] : memref<16x32xf32, #tpu.memory_space<vmem>>, vector<16x32xf32>
    %1 = arith.truncf %0 : vector<16x32xf32> to vector<16x32xbf16>
    %c0_1 = arith.constant 0 : index
    %c0_2 = arith.constant 0 : index
    %2 = vector.load %arg2[%c0_1, %c0_2] : memref<32x128xbf16, #tpu.memory_space<vmem>>, vector<32x128xbf16>
    %cst = arith.constant dense<0.000000e+00> : vector<16x128xf32>
    %3 = tpu.matmul %1, %2, %cst {dimension_numbers = #tpu.dot_dimension_numbers<[1], [0], [0], [1], [0, 0, 1, 1], [], []>} : vector<16x32xbf16>, vector<32x128xbf16>, vector<16x128xf32> -> vector<16x128xf32>
    %c0_3 = arith.constant 0 : index
    %c0_4 = arith.constant 0 : index
    %4 = vector.load %arg3[%c0_3, %c0_4] : memref<1x128xf32, #tpu.memory_space<vmem>>, vector<1x128xf32>
    %5 = vector.broadcast %4 : vector<1x128xf32> to vector<16x128xf32>
    %6 = arith.addf %3, %5 : vector<16x128xf32>
    %c0_5 = arith.constant 0 : index
    %c0_6 = arith.constant 0 : index
    %7 = vector.load %arg4[%c0_5, %c0_6] : memref<16x128xf32, #tpu.memory_space<vmem>>, vector<16x128xf32>
    tpu.vector_store %arg4[%c0_5, %c0_6], %6 {strides = array<i32>} : memref<16x128xf32, #tpu.memory_space<vmem>>, vector<16x128xf32>,
    return
  }
  func.func @transform_0(%arg0: i32) -> (i32, i32) {
    %c0_i32 = arith.constant 0 : i32
    %c0_i32_0 = arith.constant 0 : i32
    return %arg0, %c0_i32 : i32, i32
  }
  func.func @transform_1(%arg0: i32) -> (i32, i32) {
    %c0_i32 = arith.constant 0 : i32
    %c0_i32_0 = arith.constant 0 : i32
    %c0_i32_1 = arith.constant 0 : i32
    return %c0_i32, %c0_i32_0 : i32, i32
  }
  func.func @transform_2(%arg0: i32) -> (i32, i32) {
    %c0_i32 = arith.constant 0 : i32
    %c0_i32_0 = arith.constant 0 : i32
    %c0_i32_1 = arith.constant 0 : i32
    return %c0_i32, %c0_i32_0 : i32, i32
  }
  func.func @transform_3(%arg0: i32) -> (i32, i32) {
    %c0_i32 = arith.constant 0 : i32
    %c0_i32_0 = arith.constant 0 : i32
    return %arg0, %c0_i32 : i32, i32
  }
}

module attributes {stable_mosaic.version = 11 : i64} {
  func.func @kernel(%arg0: i32, %arg1: memref<1x2x64xf32, #tpu.memory_space<vmem>>, %arg2: memref<1x2x64xf32, #tpu.memory_space<vmem>>, %arg3: memref<16x64xbf16, #tpu.memory_space<vmem>>, %arg4: memref<16x64xbf16, #tpu.memory_space<vmem>>, %arg5: memref<1x2x16xf32, #tpu.memory_space<vmem>>, %arg6: memref<1x2x16xf32, #tpu.memory_space<vmem>>, %arg7: memref<2x16xf32, #tpu.memory_space<vmem>>, %arg8: memref<2x16xf32, #tpu.memory_space<vmem>>, %arg9: memref<2x16xf32, #tpu.memory_space<vmem>>, %arg10: memref<2x16xf32, #tpu.memory_space<vmem>>) attributes {dimension_semantics = [#tpu.dimension_semantics<arbitrary>], iteration_bounds = array<i64: 8>, scalar_prefetch = 0 : i64, scratch_operands = 4 : i64, tpu.core_type = #tpu.core_type<tc>, window_params = [{transform_indices = @transform_0, window_bounds = array<i64: 1, 2, 64>}, {transform_indices = @transform_1, window_bounds = array<i64: 1, 2, 64>}, {pipeline_mode = #tpu.pipeline_mode<synchronous>, transform_indices = @transform_2, window_bounds = array<i64: 16, 64>}, {pipeline_mode = #tpu.pipeline_mode<synchronous>, transform_indices = @transform_3, window_bounds = array<i64: 16, 64>}, {transform_indices = @transform_4, window_bounds = array<i64: 1, 2, 16>}, {transform_indices = @transform_5, window_bounds = array<i64: 1, 2, 16>}]} {
    %c0_i32 = arith.constant 0 : i32
    %0 = arith.cmpi eq, %arg0, %c0_i32 : i32
    %1 = arith.extui %0 : i1 to i32
    %c0_i32_0 = arith.constant 0 : i32
    %2 = arith.cmpi ne, %1, %c0_i32_0 : i32
    scf.if %2 {
      %cst_39 = arith.constant 0.000000e+00 : f32
      %79 = vector.broadcast %cst_39 : f32 to vector<2x16xf32>
      %c0_40 = arith.constant 0 : index
      %c0_41 = arith.constant 0 : index
      %80 = vector.load %arg7[%c0_40, %c0_41] : memref<2x16xf32, #tpu.memory_space<vmem>>, vector<2x16xf32>
      tpu.vector_store %arg7[%c0_40, %c0_41], %79 {strides = array<i32>} : memref<2x16xf32, #tpu.memory_space<vmem>>, vector<2x16xf32>,
      %cst_42 = arith.constant 0.000000e+00 : f32
      %81 = vector.broadcast %cst_42 : f32 to vector<2x16xf32>
      %c0_43 = arith.constant 0 : index
      %c0_44 = arith.constant 0 : index
      %82 = vector.load %arg8[%c0_43, %c0_44] : memref<2x16xf32, #tpu.memory_space<vmem>>, vector<2x16xf32>
      tpu.vector_store %arg8[%c0_43, %c0_44], %81 {strides = array<i32>} : memref<2x16xf32, #tpu.memory_space<vmem>>, vector<2x16xf32>,
      %cst_45 = arith.constant 0.000000e+00 : f32
      %83 = vector.broadcast %cst_45 : f32 to vector<2x16xf32>
      %c0_46 = arith.constant 0 : index
      %c0_47 = arith.constant 0 : index
      %84 = vector.load %arg9[%c0_46, %c0_47] : memref<2x16xf32, #tpu.memory_space<vmem>>, vector<2x16xf32>
      tpu.vector_store %arg9[%c0_46, %c0_47], %83 {strides = array<i32>} : memref<2x16xf32, #tpu.memory_space<vmem>>, vector<2x16xf32>,
      %cst_48 = arith.constant 0.000000e+00 : f32
      %85 = vector.broadcast %cst_48 : f32 to vector<2x16xf32>
      %c0_49 = arith.constant 0 : index
      %c0_50 = arith.constant 0 : index
      %86 = vector.load %arg10[%c0_49, %c0_50] : memref<2x16xf32, #tpu.memory_space<vmem>>, vector<2x16xf32>
      tpu.vector_store %arg10[%c0_49, %c0_50], %85 {strides = array<i32>} : memref<2x16xf32, #tpu.memory_space<vmem>>, vector<2x16xf32>,
    } else {
    }
    %c0 = arith.constant 0 : index
    %c0_1 = arith.constant 0 : index
    %c0_2 = arith.constant 0 : index
    %3 = vector.load %arg1[%c0, %c0_1, %c0_2] : memref<1x2x64xf32, #tpu.memory_space<vmem>>, vector<1x2x64xf32>
    %4 = vector.shape_cast %3 : vector<1x2x64xf32> to vector<2x64xf32>
    %c0_3 = arith.constant 0 : index
    %c0_4 = arith.constant 0 : index
    %5 = vector.load %arg7[%c0_3, %c0_4] : memref<2x16xf32, #tpu.memory_space<vmem>>, vector<2x16xf32>
    %c0_5 = arith.constant 0 : index
    %c0_6 = arith.constant 0 : index
    %6 = vector.load %arg8[%c0_5, %c0_6] : memref<2x16xf32, #tpu.memory_space<vmem>>, vector<2x16xf32>
    %7 = arith.truncf %5 : vector<2x16xf32> to vector<2x16xbf16>
    %c0_7 = arith.constant 0 : index
    %c0_8 = arith.constant 0 : index
    %8 = vector.load %arg3[%c0_7, %c0_8] : memref<16x64xbf16, #tpu.memory_space<vmem>>, vector<16x64xbf16>
    %cst = arith.constant dense<0.000000e+00> : vector<2x64xf32>
    %9 = tpu.matmul %7, %8, %cst {dimension_numbers = #tpu.dot_dimension_numbers<[1], [0], [0], [1], [0, 0, 1, 1], [], []>} : vector<2x16xbf16>, vector<16x64xbf16>, vector<2x64xf32> -> vector<2x64xf32>
    %10 = arith.addf %4, %9 : vector<2x64xf32>
    %11 = vector.extract_strided_slice %10 {offsets = [0, 0], sizes = [2, 16], strides = [1, 1]} : vector<2x64xf32> to vector<2x16xf32>
    %12 = arith.negf %11 : vector<2x16xf32>
    %13 = math.exp %12 : vector<2x16xf32>
    %cst_9 = arith.constant 1.000000e+00 : f32
    %14 = vector.broadcast %cst_9 : f32 to vector<2x16xf32>
    %15 = arith.addf %14, %13 : vector<2x16xf32>
    %16 = arith.divf %14, %15 : vector<2x16xf32>
    %17 = vector.extract_strided_slice %10 {offsets = [0, 16], sizes = [2, 16], strides = [1, 1]} : vector<2x64xf32> to vector<2x16xf32>
    %18 = arith.negf %17 : vector<2x16xf32>
    %19 = math.exp %18 : vector<2x16xf32>
    %cst_10 = arith.constant 1.000000e+00 : f32
    %20 = vector.broadcast %cst_10 : f32 to vector<2x16xf32>
    %21 = arith.addf %20, %19 : vector<2x16xf32>
    %22 = arith.divf %20, %21 : vector<2x16xf32>
    %23 = vector.extract_strided_slice %10 {offsets = [0, 32], sizes = [2, 16], strides = [1, 1]} : vector<2x64xf32> to vector<2x16xf32>
    %24 = math.tanh %23 : vector<2x16xf32>
    %25 = vector.extract_strided_slice %10 {offsets = [0, 48], sizes = [2, 16], strides = [1, 1]} : vector<2x64xf32> to vector<2x16xf32>
    %26 = arith.negf %25 : vector<2x16xf32>
    %27 = math.exp %26 : vector<2x16xf32>
    %cst_11 = arith.constant 1.000000e+00 : f32
    %28 = vector.broadcast %cst_11 : f32 to vector<2x16xf32>
    %29 = arith.addf %28, %27 : vector<2x16xf32>
    %30 = arith.divf %28, %29 : vector<2x16xf32>
    %31 = arith.mulf %22, %6 : vector<2x16xf32>
    %32 = arith.mulf %16, %24 : vector<2x16xf32>
    %33 = arith.addf %31, %32 : vector<2x16xf32>
    %34 = math.tanh %33 : vector<2x16xf32>
    %35 = arith.mulf %30, %34 : vector<2x16xf32>
    %c0_12 = arith.constant 0 : index
    %c0_13 = arith.constant 0 : index
    %36 = vector.load %arg7[%c0_12, %c0_13] : memref<2x16xf32, #tpu.memory_space<vmem>>, vector<2x16xf32>
    tpu.vector_store %arg7[%c0_12, %c0_13], %35 {strides = array<i32>} : memref<2x16xf32, #tpu.memory_space<vmem>>, vector<2x16xf32>,
    %c0_14 = arith.constant 0 : index
    %c0_15 = arith.constant 0 : index
    %37 = vector.load %arg8[%c0_14, %c0_15] : memref<2x16xf32, #tpu.memory_space<vmem>>, vector<2x16xf32>
    tpu.vector_store %arg8[%c0_14, %c0_15], %33 {strides = array<i32>} : memref<2x16xf32, #tpu.memory_space<vmem>>, vector<2x16xf32>,
    %c0_16 = arith.constant 0 : index
    %c0_17 = arith.constant 0 : index
    %c0_18 = arith.constant 0 : index
    %38 = vector.load %arg5[%c0_16, %c0_17, %c0_18] : memref<1x2x16xf32, #tpu.memory_space<vmem>>, vector<1x2x16xf32>
    %39 = vector.shape_cast %38 : vector<1x2x16xf32> to vector<2x16xf32>
    %40 = vector.shape_cast %35 : vector<2x16xf32> to vector<1x2x16xf32>
    tpu.vector_store %arg5[%c0_16, %c0_17, %c0_18], %40 {strides = array<i32>} : memref<1x2x16xf32, #tpu.memory_space<vmem>>, vector<1x2x16xf32>,
    %c0_19 = arith.constant 0 : index
    %c0_20 = arith.constant 0 : index
    %c0_21 = arith.constant 0 : index
    %41 = vector.load %arg2[%c0_19, %c0_20, %c0_21] : memref<1x2x64xf32, #tpu.memory_space<vmem>>, vector<1x2x64xf32>
    %42 = vector.shape_cast %41 : vector<1x2x64xf32> to vector<2x64xf32>
    %c0_22 = arith.constant 0 : index
    %c0_23 = arith.constant 0 : index
    %43 = vector.load %arg9[%c0_22, %c0_23] : memref<2x16xf32, #tpu.memory_space<vmem>>, vector<2x16xf32>
    %c0_24 = arith.constant 0 : index
    %c0_25 = arith.constant 0 : index
    %44 = vector.load %arg10[%c0_24, %c0_25] : memref<2x16xf32, #tpu.memory_space<vmem>>, vector<2x16xf32>
    %45 = arith.truncf %43 : vector<2x16xf32> to vector<2x16xbf16>
    %c0_26 = arith.constant 0 : index
    %c0_27 = arith.constant 0 : index
    %46 = vector.load %arg4[%c0_26, %c0_27] : memref<16x64xbf16, #tpu.memory_space<vmem>>, vector<16x64xbf16>
    %cst_28 = arith.constant dense<0.000000e+00> : vector<2x64xf32>
    %47 = tpu.matmul %45, %46, %cst_28 {dimension_numbers = #tpu.dot_dimension_numbers<[1], [0], [0], [1], [0, 0, 1, 1], [], []>} : vector<2x16xbf16>, vector<16x64xbf16>, vector<2x64xf32> -> vector<2x64xf32>
    %48 = arith.addf %42, %47 : vector<2x64xf32>
    %49 = vector.extract_strided_slice %48 {offsets = [0, 0], sizes = [2, 16], strides = [1, 1]} : vector<2x64xf32> to vector<2x16xf32>
    %50 = arith.negf %49 : vector<2x16xf32>
    %51 = math.exp %50 : vector<2x16xf32>
    %cst_29 = arith.constant 1.000000e+00 : f32
    %52 = vector.broadcast %cst_29 : f32 to vector<2x16xf32>
    %53 = arith.addf %52, %51 : vector<2x16xf32>
    %54 = arith.divf %52, %53 : vector<2x16xf32>
    %55 = vector.extract_strided_slice %48 {offsets = [0, 16], sizes = [2, 16], strides = [1, 1]} : vector<2x64xf32> to vector<2x16xf32>
    %56 = arith.negf %55 : vector<2x16xf32>
    %57 = math.exp %56 : vector<2x16xf32>
    %cst_30 = arith.constant 1.000000e+00 : f32
    %58 = vector.broadcast %cst_30 : f32 to vector<2x16xf32>
    %59 = arith.addf %58, %57 : vector<2x16xf32>
    %60 = arith.divf %58, %59 : vector<2x16xf32>
    %61 = vector.extract_strided_slice %48 {offsets = [0, 32], sizes = [2, 16], strides = [1, 1]} : vector<2x64xf32> to vector<2x16xf32>
    %62 = math.tanh %61 : vector<2x16xf32>
    %63 = vector.extract_strided_slice %48 {offsets = [0, 48], sizes = [2, 16], strides = [1, 1]} : vector<2x64xf32> to vector<2x16xf32>
    %64 = arith.negf %63 : vector<2x16xf32>
    %65 = math.exp %64 : vector<2x16xf32>
    %cst_31 = arith.constant 1.000000e+00 : f32
    %66 = vector.broadcast %cst_31 : f32 to vector<2x16xf32>
    %67 = arith.addf %66, %65 : vector<2x16xf32>
    %68 = arith.divf %66, %67 : vector<2x16xf32>
    %69 = arith.mulf %60, %44 : vector<2x16xf32>
    %70 = arith.mulf %54, %62 : vector<2x16xf32>
    %71 = arith.addf %69, %70 : vector<2x16xf32>
    %72 = math.tanh %71 : vector<2x16xf32>
    %73 = arith.mulf %68, %72 : vector<2x16xf32>
    %c0_32 = arith.constant 0 : index
    %c0_33 = arith.constant 0 : index
    %74 = vector.load %arg9[%c0_32, %c0_33] : memref<2x16xf32, #tpu.memory_space<vmem>>, vector<2x16xf32>
    tpu.vector_store %arg9[%c0_32, %c0_33], %73 {strides = array<i32>} : memref<2x16xf32, #tpu.memory_space<vmem>>, vector<2x16xf32>,
    %c0_34 = arith.constant 0 : index
    %c0_35 = arith.constant 0 : index
    %75 = vector.load %arg10[%c0_34, %c0_35] : memref<2x16xf32, #tpu.memory_space<vmem>>, vector<2x16xf32>
    tpu.vector_store %arg10[%c0_34, %c0_35], %71 {strides = array<i32>} : memref<2x16xf32, #tpu.memory_space<vmem>>, vector<2x16xf32>,
    %c0_36 = arith.constant 0 : index
    %c0_37 = arith.constant 0 : index
    %c0_38 = arith.constant 0 : index
    %76 = vector.load %arg6[%c0_36, %c0_37, %c0_38] : memref<1x2x16xf32, #tpu.memory_space<vmem>>, vector<1x2x16xf32>
    %77 = vector.shape_cast %76 : vector<1x2x16xf32> to vector<2x16xf32>
    %78 = vector.shape_cast %73 : vector<2x16xf32> to vector<1x2x16xf32>
    tpu.vector_store %arg6[%c0_36, %c0_37, %c0_38], %78 {strides = array<i32>} : memref<1x2x16xf32, #tpu.memory_space<vmem>>, vector<1x2x16xf32>,
    return
  }
  func.func @transform_0(%arg0: i32) -> (i32, i32, i32) {
    %c0_i32 = arith.constant 0 : i32
    %c0_i32_0 = arith.constant 0 : i32
    %c0_i32_1 = arith.constant 0 : i32
    return %arg0, %c0_i32, %c0_i32_0 : i32, i32, i32
  }
  func.func @transform_1(%arg0: i32) -> (i32, i32, i32) {
    %c7_i32 = arith.constant 7 : i32
    %0 = arith.subi %c7_i32, %arg0 : i32
    %c0_i32 = arith.constant 0 : i32
    %c0_i32_0 = arith.constant 0 : i32
    %c0_i32_1 = arith.constant 0 : i32
    return %0, %c0_i32, %c0_i32_0 : i32, i32, i32
  }
  func.func @transform_2(%arg0: i32) -> (i32, i32) {
    %c0_i32 = arith.constant 0 : i32
    %c0_i32_0 = arith.constant 0 : i32
    %c0_i32_1 = arith.constant 0 : i32
    return %c0_i32, %c0_i32_0 : i32, i32
  }
  func.func @transform_3(%arg0: i32) -> (i32, i32) {
    %c0_i32 = arith.constant 0 : i32
    %c0_i32_0 = arith.constant 0 : i32
    %c0_i32_1 = arith.constant 0 : i32
    return %c0_i32, %c0_i32_0 : i32, i32
  }
  func.func @transform_4(%arg0: i32) -> (i32, i32, i32) {
    %c0_i32 = arith.constant 0 : i32
    %c0_i32_0 = arith.constant 0 : i32
    %c0_i32_1 = arith.constant 0 : i32
    return %arg0, %c0_i32, %c0_i32_0 : i32, i32, i32
  }
  func.func @transform_5(%arg0: i32) -> (i32, i32, i32) {
    %c7_i32 = arith.constant 7 : i32
    %0 = arith.subi %c7_i32, %arg0 : i32
    %c0_i32 = arith.constant 0 : i32
    %c0_i32_0 = arith.constant 0 : i32
    %c0_i32_1 = arith.constant 0 : i32
    return %0, %c0_i32, %c0_i32_0 : i32, i32, i32
  }
}

</mosaic_0001>

<bundles_post_ra>
// kernel: phoneme_recognition_forward.10
= control target key start
LH: loop header
LB: loop body
LE: loop exit
PB: predicated region body
PF: predicated region fallthrough
CT: control target
= control target key end

     0   :  { %v98_v0 = vmov 0.0   ;;  %vm99_vm0 = vmmov 0   ;;  %vm33_vm1 = vcmask 130048   ;;  %s138_s1 = inlined_call_operand.vmem [shape: bf16[16,128], index: 1, kind: input, shape index: {}]   ;;  %s139_s0 = inlined_call_operand.vmem [shape: f32[16,16], index: 0, kind: input, shape index: {}]   ;;  %s140_s2 = inlined_call_operand.vmem [shape: f32[1,128], index: 2, kind: input, shape index: {}]   ;;  %s141_s3 = inlined_call_operand.vmem [shape: f32[16,128], index: 3, kind: output, shape index: {}]  }
   0x1   :  { %89 = vmatprep.subr.bf16.mxu0 %v98_v0  ;;  %v97_v1 = vld [vmem:[%s138_s1] sm:$0xff]   ;;  %91 = vmatprep.mubr.msk.bf16.mxu0 %vm99_vm0, %v98_v0  ;;  %v16_v3 = vld [vmem:[%s139_s0 + $0x8] sm:$0xff] }
   0x2   :  { %v15_v2 = vld [vmem:[%s139_s0] sm:$0xff]  ;;  %90 = vmatpush3.bf16.msra.mxu0 %v97_v1 }
   0x3   :  { %v17_v4 = vpack.c.bf16 %v16_v3, %v15_v2  ;;  %v84_v5 = vld [vmem:[%s140_s2] ss:$0 sm:$0xff] }
   0x5   :  { %92 = vmatmul.mubr.msk.bf16.vlgmr.msra.gmra.mrb[0].mxu0 %vm33_vm1, %v17_v4 }
  0xd8   :  { %v71_v6 = vpop.f32.mrb[0].mxu0 }
  0xd9   :  { %v72_v7 = vadd.f32 %v84_v5, %v71_v6  ;;  %v93_v8 = vpop.f32.mrb[1].mxu0 }
  0xda   :  { %v74_v9 = vpop.f32.mrb[2].mxu0 }
  0xdb   :  { %78 = vst [vmem:[%s141_s3] sm:$0xff] %v72_v7  ;;  %v75_v10 = vadd.f32 %v84_v5, %v74_v9  ;;  %v94_v11 = vpop.f32.mrb[3].mxu0 }
  0xdd   :  { %79 = vst [vmem:[%s141_s3 + $0x8] sm:$0xff] %v75_v10 }

// kernel: phoneme_recognition_forward.7
= control target key start
LH: loop header
LB: loop body
LE: loop exit
PB: predicated region body
PF: predicated region fallthrough
CT: control target
= control target key end

     0   :  { %s2489_s12 = smov 0   ;;  %s3234_s0 = inlined_call_operand.vmem [shape: f32[2,188,1], index: 0, kind: input, shape index: {}]   ;;  %s3235_s1 = inlined_call_operand.vmem [shape: bf16[9,2], index: 1, kind: input, shape index: {}]   ;;  %s3236_s2 = inlined_call_operand.vmem [shape: f32[1,2], index: 2, kind: input, shape index: {}]   ;;  %s3237_s3 = inlined_call_operand.vmem [shape: f32[2,144,2], index: 3, kind: output, shape index: {}]  }
   0x1 LB: > { %s1912_s13 = sadd.s32 4294967295, %s2464_s12   ;;  %p1916_p0 = scmp.ge.s32.totalorder %s2464_s12, 1  ;;  %s2464_s12 = sphi %s2489_s12, %s13_s12  }
   0x2   : > { %p137_p1 = scmp.lt.s32.totalorder %s2464_s12, 3 }
   0x4   : > { %p138_p2 = pnand %p1916_p0, %p137_p1 }
   0x5   : > { %v199_v0 = vld [vmem:[%s3235_s1] sm:$0x1] (!%p138_p2)  ;;  %vm261_vm0 = vcmask (!%p138_p2), 1040384   ;;  %v2466_v1 = vmov (!%p138_p2), 0.0   ;;  %p161_p3 = scmp.lt.s32.totalorder (!%p138_p2), %s1912_s13, 1  ;;  %v2467_v3 = vmov (!%p138_p2), 0  }
   0x6   : > { %141 = sbr.rel (%p138_p2) target bundleno = 561 (0x231), region = 32  ;;  %2097 = vmatprep.subr.bf16.mxu0 (!%p138_p2), %v2466_v1  ;;  %2439 = vmatprep.subr.bf16.mxu1 (!%p138_p2), %v2466_v1  ;;  %v1919_v2 = vcombine.low (!%p138_p2), %v199_v0, %v199_v0  ;;  %v2502_v4 = vsel (!%p138_p2), %vm261_vm0, 65535, %v2467_v3  ;;  %vm2468_vm1 = vmmov (!%p138_p2), 0   ;;  %v2511_v5 = vld [vmem:[%s3235_s1] ss:$0 sps:$4 sm:$0x22] (!%p138_p2)  }
   0x7   : > { %2099 = vmatprep.mubr.msk.bf16.mxu0 (!%p138_p2), %vm2468_vm1, %v2466_v1  ;;  %2119 = vmatprep.mubr.msk.bf16.mxu1 (!%p138_p2), %vm2468_vm1, %v2466_v1  ;;  %v538_v7 = vrot.slane (!%p138_p2), %v2511_v5, 1  ;;  %vm233_vm2 = vcmask (!%p138_p2), 7168   ;;  %v400_v15 = vand.u32 (!%p138_p2), %v2502_v4, %v199_v0  ;;  %v720_v35 = vshrl.u32 (!%p138_p2), %v2511_v5, 16  ;;  %v2577_v43 = vld [vmem:[%s3235_s1] ss:$0 sps:$4 sm:$0x44] (!%p138_p2)  }
   0x8   : > { %v231_v6 = vshrl.u32 (!%p138_p2), %v1919_v2, 16  ;;  %v907_v47 = vrot.slane (!%p138_p2), %v2577_v43, 2  ;;  %vm1838_vm3 = vcmask (!%p138_p2), 15360  }
   0x9   : > { %v567_v12 = vand.u32 (!%p138_p2), %v538_v7, %v2502_v4  ;;  %v722_v40 = vrot.slane (!%p138_p2), %v720_v35, 1 }
   0xa   : > { %v265_v8 = vand.u32 (!%p138_p2), %v2502_v4, %v231_v6  ;;  %v936_v52 = vand.u32 (!%p138_p2), %v907_v47, %v2502_v4 }
   0xb   : > { %v751_v44 = vand.u32 (!%p138_p2), %v722_v40, %v2502_v4 }
   0xc   : > { %2098 = vmatpush3.bf16.msra.mxu0 (!%p138_p2), %v265_v8  ;;  %2440 = vmatpush3.bf16.msra.mxu1 (!%p138_p2), %v265_v8 }
   0xd   : > { %s3239_s13 = smov (!%p161_p3, %s1912_s13), 1  ;;  %2173 = vmatprep.subr.bf16.mxu0 %v2466_v1  ;;  %2135 = vmatprep.subr.bf16.mxu1 %v2466_v1 }
   0xe   : > { %s2441_s18 = smul.u32 192, %s3239_s13 }
   0xf   : > { %s2442_s28 = smul.u32 144, %s3239_s13 }
  0x10   : > { %s2521_s21 = scalar_lea.vmem %s3234_s0, %s2441_s18 }
  0x11   : > { %v200_v9 = vld [vmem:[%s2521_s21 + $0x1] sm:$0xff]  ;;  %v201_v10 = vld [vmem:[%s2521_s21 + $0x9] sm:$0xff]  ;;  %v210_v11 = vld [vmem:[%s2521_s21 + $0x51] sm:$0xff]  ;;  %s3161_s6 = scalar_lea.vmem %s3237_s3, %s2442_s28 }
  0x12   : > { %v218_v13 = vpack.c.bf16 %v201_v10, %v200_v9  ;;  %v211_v14 = vld [vmem:[%s2521_s21 + $0x59] sm:$0xff]  ;;  %v202_v17 = vld [vmem:[%s2521_s21 + $0x11] sm:$0xff]  ;;  %v212_v19 = vld [vmem:[%s2521_s21 + $0x61] sm:$0xff] }
  0x13   : > { %v223_v16 = vpack.c.bf16 %v211_v14, %v210_v11  ;;  %v203_v18 = vld [vmem:[%s2521_s21 + $0x19] sm:$0xff]  ;;  %v213_v20 = vld [vmem:[%s2521_s21 + $0x69] sm:$0xff]  ;;  %v204_v23 = vld [vmem:[%s2521_s21 + $0x21] sm:$0xff] }
  0x14   : > { %2100 = vmatmul.mubr.msk.bf16.vlgmr.msra.gmra.mrb[0].mxu0 %vm233_vm2, %v218_v13  ;;  %v219_v21 = vpack.c.bf16 %v203_v18, %v202_v17  ;;  %v224_v22 = vpack.c.bf16 %v213_v20, %v212_v19  ;;  %v205_v24 = vld [vmem:[%s2521_s21 + $0x29] sm:$0xff]  ;;  %v214_v25 = vld [vmem:[%s2521_s21 + $0x71] sm:$0xff]  ;;  %v215_v26 = vld [vmem:[%s2521_s21 + $0x79] sm:$0xff] }
  0x15   : > { %2120 = vmatmul.mubr.msk.bf16.vlgmr.msra.gmra.mrb[0].mxu1 %vm233_vm2, %v223_v16  ;;  %2174 = vmatpush3.bf16.msra.mxu0 %v567_v12  ;;  %v220_v27 = vpack.c.bf16 %v205_v24, %v204_v23  ;;  %v225_v28 = vpack.c.bf16 %v215_v26, %v214_v25  ;;  %v206_v29 = vld [vmem:[%s2521_s21 + $0x31] sm:$0xff]  ;;  %v207_v30 = vld [vmem:[%s2521_s21 + $0x39] sm:$0xff]  ;;  %v216_v31 = vld [vmem:[%s2521_s21 + $0x81] sm:$0xff] }
  0x16   : > { %2103 = vmatprep.mubr.msk.bf16.mxu0 %vm2468_vm1, %v2466_v1  ;;  %2123 = vmatprep.mubr.msk.bf16.mxu1 %vm2468_vm1, %v2466_v1  ;;  %v217_v32 = vld [vmem:[%s2521_s21 + $0x89] sm:$0xff]  ;;  %v221_v33 = vpack.c.bf16 %v207_v30, %v206_v29  ;;  %v208_v36 = vld [vmem:[%s2521_s21 + $0x41] sm:$0xff]  ;;  %v175_v49 = vld [vmem:[%s2521_s21 + $0x18] sm:$0xff] }
  0x17   : > { %2136 = vmatpush3.bf16.msra.mxu1 %v400_v15  ;;  %2249 = vmatprep.subr.bf16.mxu0 %v2466_v1  ;;  %v226_v34 = vpack.c.bf16 %v217_v32, %v216_v31  ;;  %v209_v37 = vld [vmem:[%s2521_s21 + $0x49] sm:$0xff]  ;;  %v172_v38 = vld [vmem:[%s2521_s21] sm:$0xff]  ;;  %v509_v53 = vld [vmem:[%s2521_s21 + $0x12] sm:$0xff] }
  0x18   : > { %2211 = vmatprep.subr.bf16.mxu1 %v2466_v1  ;;  %v173_v39 = vld [vmem:[%s2521_s21 + $0x8] sm:$0xff]  ;;  %v222_v41 = vpack.c.bf16 %v209_v37, %v208_v36  ;;  %v174_v48 = vld [vmem:[%s2521_s21 + $0x10] sm:$0xff]  ;;  %v510_v54 = vld [vmem:[%s2521_s21 + $0x1a] sm:$0xff] }
  0x19   : > { %v190_v42 = vpack.c.bf16 %v173_v39, %v172_v38  ;;  %v507_v45 = vld [vmem:[%s2521_s21 + $0x2] sm:$0xff]  ;;  %v508_v46 = vld [vmem:[%s2521_s21 + $0xa] sm:$0xff]  ;;  %v191_v51 = vpack.c.bf16 %v175_v49, %v174_v48  ;;  %v2604_v57 = vpack.c.bf16 %v510_v54, %v509_v53  ;;  %v179_v62 = vld [vmem:[%s2521_s21 + $0x38] sm:$0xff] }
  0x1a   : > { %v525_v50 = vpack.c.bf16 %v508_v46, %v507_v45  ;;  %v176_v55 = vld [vmem:[%s2521_s21 + $0x20] sm:$0xff]  ;;  %v177_v56 = vld [vmem:[%s2521_s21 + $0x28] sm:$0xff]  ;;  %v178_v61 = vld [vmem:[%s2521_s21 + $0x30] sm:$0xff] }
  0x1b   : > { %v192_v58 = vpack.c.bf16 %v177_v56, %v176_v55  ;;  %v511_v59 = vld [vmem:[%s2521_s21 + $0x22] sm:$0xff]  ;;  %v512_v60 = vld [vmem:[%s2521_s21 + $0x2a] sm:$0xff]  ;;  %v193_v0 = vpack.c.bf16 %v179_v62, %v178_v61  ;;  %v513_v2 = vld [vmem:[%s2521_s21 + $0x32] sm:$0xff] }
  0x1c   : > { %2104 = vmatmul.mubr.msk.bf16.gmra.mrb[4].mxu0 %vm233_vm2, %v219_v21  ;;  %v2617_v63 = vpack.c.bf16 %v512_v60, %v511_v59  ;;  %v514_v3 = vld [vmem:[%s2521_s21 + $0x3a] sm:$0xff]  ;;  %v181_v6 = vld [vmem:[%s2521_s21 + $0x48] sm:$0xff]  ;;  %v182_v11 = vld [vmem:[%s2521_s21 + $0x50] sm:$0xff] }
  0x1d   : > { %2124 = vmatmul.mubr.msk.bf16.gmra.mrb[4].mxu1 %vm233_vm2, %v224_v22  ;;  %2107 = vmatprep.mubr.msk.bf16.mxu0 %vm2468_vm1, %v2466_v1  ;;  %v180_v5 = vld [vmem:[%s2521_s21 + $0x40] sm:$0xff]  ;;  %v2630_v7 = vpack.c.bf16 %v514_v3, %v513_v2  ;;  %v516_v10 = vld [vmem:[%s2521_s21 + $0x4a] sm:$0xff]  ;;  %v183_v12 = vld [vmem:[%s2521_s21 + $0x58] sm:$0xff] }
  0x1e   : > { %2127 = vmatprep.mubr.msk.bf16.mxu1 %vm2468_vm1, %v2466_v1  ;;  %v194_v8 = vpack.c.bf16 %v181_v6, %v180_v5  ;;  %v515_v9 = vld [vmem:[%s2521_s21 + $0x42] sm:$0xff]  ;;  %v195_v14 = vpack.c.bf16 %v183_v12, %v182_v11  ;;  %v517_v15 = vld [vmem:[%s2521_s21 + $0x52] sm:$0xff]  ;;  %v518_v16 = vld [vmem:[%s2521_s21 + $0x5a] sm:$0xff] }
  0x1f   : > { %v2643_v13 = vpack.c.bf16 %v516_v10, %v515_v9  ;;  %v184_v17 = vld [vmem:[%s2521_s21 + $0x60] sm:$0xff]  ;;  %v185_v18 = vld [vmem:[%s2521_s21 + $0x68] sm:$0xff]  ;;  %v2656_v19 = vpack.c.bf16 %v518_v16, %v517_v15  ;;  %v186_v23 = vld [vmem:[%s2521_s21 + $0x70] sm:$0xff] }
  0x20   : > { %v196_v20 = vpack.c.bf16 %v185_v18, %v184_v17  ;;  %v519_v21 = vld [vmem:[%s2521_s21 + $0x62] sm:$0xff]  ;;  %v520_v22 = vld [vmem:[%s2521_s21 + $0x6a] sm:$0xff]  ;;  %v187_v24 = vld [vmem:[%s2521_s21 + $0x78] sm:$0xff] }
  0x21   : > { %v2669_v25 = vpack.c.bf16 %v520_v22, %v519_v21  ;;  %v197_v26 = vpack.c.bf16 %v187_v24, %v186_v23  ;;  %v188_v29 = vld [vmem:[%s2521_s21 + $0x80] sm:$0xff]  ;;  %v189_v30 = vld [vmem:[%s2521_s21 + $0x88] sm:$0xff]  ;;  %v876_v40 = vld [vmem:[%s2521_s21 + $0x13] sm:$0xff] }
  0x22   : > { %v198_v32 = vpack.c.bf16 %v189_v30, %v188_v29  ;;  %v524_v35 = vld [vmem:[%s2521_s21 + $0x8a] sm:$0xff]  ;;  %v2694_v38 = vld [vmem:[%s3235_s1] ss:$0 sps:$4 sm:$0x88]   ;;  %v880_v48 = vld [vmem:[%s2521_s21 + $0x33] sm:$0xff] }
  0x23   : > { %v878_v45 = vld [vmem:[%s2521_s21 + $0x23] sm:$0xff]  ;;  %v879_v46 = vld [vmem:[%s2521_s21 + $0x2b] sm:$0xff]  ;;  %v881_v49 = vld [vmem:[%s2521_s21 + $0x3b] sm:$0xff] }
  0x24   : > { %2108 = vmatmul.mubr.msk.bf16.gmra.mrb[8].mxu0 %vm233_vm2, %v220_v27  ;;  %v521_v27 = vld [vmem:[%s2521_s21 + $0x72] sm:$0xff]  ;;  %v895_v47 = vpack.c.bf16 %v879_v46, %v878_v45  ;;  %v885_v55 = vld [vmem:[%s2521_s21 + $0x5b] sm:$0xff]  ;;  %v1063_v16 = vld [vmem:[%s2521_s21 + $0x24] sm:$0xff] }
  0x25   : > { %2128 = vmatmul.mubr.msk.bf16.gmra.mrb[8].mxu1 %vm233_vm2, %v225_v28  ;;  %2111 = vmatprep.mubr.msk.bf16.mxu0 %vm2468_vm1, %v2466_v1  ;;  %v522_v28 = vld [vmem:[%s2521_s21 + $0x7a] sm:$0xff]  ;;  %v708_v2 = vld [vmem:[%s2521_s21 + $0x92] sm:$0xff]  ;;  %v1641_v18 = vld [vmem:[%s3235_s1 + $0x4] sm:$0x1] }
  0x26   : > { %2131 = vmatprep.mubr.msk.bf16.mxu1 %vm2468_vm1, %v2466_v1  ;;  %v532_v31 = vpack.c.bf16 %v522_v28, %v521_v27  ;;  %v884_v54 = vld [vmem:[%s2521_s21 + $0x53] sm:$0xff]  ;;  %v889_v61 = vld [vmem:[%s2521_s21 + $0x7b] sm:$0xff]  ;;  %v1071_v29 = vld [vmem:[%s2521_s21 + $0x64] sm:$0xff] }
  0x27   : > { %v898_v56 = vpack.c.bf16 %v885_v55, %v884_v54  ;;  %v888_v60 = vld [vmem:[%s2521_s21 + $0x73] sm:$0xff]  ;;  %v893_v9 = vld [vmem:[%s2521_s21 + $0x9b] sm:$0xff] }
  0x28   : > { %v900_v62 = vpack.c.bf16 %v889_v61, %v888_v60  ;;  %v709_v3 = vld [vmem:[%s2521_s21 + $0x9a] sm:$0xff]  ;;  %v1064_v17 = vld [vmem:[%s2521_s21 + $0x2c] sm:$0xff] }
  0x29   : > { %v718_v6 = vpack.c.bf16 %v709_v3, %v708_v2  ;;  %v1061_v10 = vld [vmem:[%s2521_s21 + $0x14] sm:$0xff]  ;;  %v1062_v11 = vld [vmem:[%s2521_s21 + $0x1c] sm:$0xff]  ;;  %v1068_v24 = vld [vmem:[%s2521_s21 + $0x4c] sm:$0xff] }
  0x2a   : > { %v1065_v21 = vld [vmem:[%s2521_s21 + $0x34] sm:$0xff]  ;;  %v1066_v22 = vld [vmem:[%s2521_s21 + $0x3c] sm:$0xff]  ;;  %v1072_v30 = vld [vmem:[%s2521_s21 + $0x6c] sm:$0xff] }
  0x2b   : > { %v1081_v23 = vpack.c.bf16 %v1066_v22, %v1065_v21  ;;  %v1070_v27 = vld [vmem:[%s2521_s21 + $0x5c] sm:$0xff] }
  0x2c   : > { %2112 = vmatmul.mubr.msk.bf16.gmra.mrb[12].mxu0 %vm233_vm2, %v221_v33  ;;  %v1089_v33 = vshrl.u32 %v2577_v43, 16 }
  0x2d   : > { %2132 = vmatmul.mubr.msk.bf16.gmra.mrb[12].mxu1 %vm233_vm2, %v226_v34  ;;  %2115 = vmatprep.mubr.msk.bf16.mxu0 %vm2468_vm1, %v2466_v1  ;;  %v523_v34 = vld [vmem:[%s2521_s21 + $0x82] sm:$0xff] }
  0x2e   : > { %2137 = vmatprep.mubr.msk.bf16.mxu1 %vm2468_vm1, %v2466_v1  ;;  %v1091_v36 = vrot.slane %v1089_v33, 2  ;;  %v533_v37 = vpack.c.bf16 %v524_v35, %v523_v34  ;;  %v1084_v34 = vpack.c.bf16 %v1072_v30, %v1071_v29  ;;  %v1433_v29 = vld [vmem:[%s2521_s21 + $0x3d] sm:$0xff] }
  0x30   : > { %v1120_v39 = vand.u32 %v1091_v36, %v2502_v4 }
  0x34   : > { %2116 = vmatmul.mubr.msk.bf16.gmra.mrb[16].mxu0 %vm233_vm2, %v222_v41  ;;  %v877_v41 = vld [vmem:[%s2521_s21 + $0x1b] sm:$0xff] }
  0x35   : > { %2138 = vmatmul.mubr.msk.bf16.vlgmr.msra.gmra.mrb[16].mxu1 %vm233_vm2, %v190_v42  ;;  %2175 = vmatprep.mubr.msk.bf16.mxu0 %vm2468_vm1, %v2466_v1  ;;  %v1276_v42 = vrot.slane %v2694_v38, 3  ;;  %v894_v43 = vpack.c.bf16 %v877_v41, %v876_v40  ;;  %v1073_v40 = vld [vmem:[%s2521_s21 + $0x74] sm:$0xff]  ;;  %v1074_v41 = vld [vmem:[%s2521_s21 + $0x7c] sm:$0xff] }
  0x36   : > { %2141 = vmatprep.mubr.msk.bf16.mxu1 %vm2468_vm1, %v2466_v1  ;;  %2212 = vmatpush3.bf16.msra.mxu1 %v751_v44  ;;  %v1085_v45 = vpack.c.bf16 %v1074_v41, %v1073_v40 }
  0x37   : > { %2287 = vmatprep.subr.bf16.mxu1 %v2466_v1  ;;  %v1305_v44 = vand.u32 %v1276_v42, %v2502_v4 }
  0x3c   : > { %2176 = vmatmul.mubr.msk.bf16.vlgmr.msra.gmra.mrb[20].mxu0 %vm233_vm2, %v525_v50  ;;  %v896_v50 = vpack.c.bf16 %v881_v49, %v880_v48 }
  0x3d   : > { %2142 = vmatmul.mubr.msk.bf16.gmra.mrb[20].mxu1 %vm233_vm2, %v191_v51  ;;  %2250 = vmatpush3.bf16.msra.mxu0 %v936_v52  ;;  %v882_v51 = vld [vmem:[%s2521_s21 + $0x43] sm:$0xff]  ;;  %v883_v52 = vld [vmem:[%s2521_s21 + $0x4b] sm:$0xff] }
  0x3e   : > { %2145 = vmatprep.mubr.msk.bf16.mxu1 %vm2468_vm1, %v2466_v1  ;;  %2179 = vmatprep.mubr.msk.bf16.mxu0 %vm2468_vm1, %v2466_v1  ;;  %v897_v53 = vpack.c.bf16 %v883_v52, %v882_v51  ;;  %v1075_v51 = vld [vmem:[%s2521_s21 + $0x84] sm:$0xff]  ;;  %v1076_v52 = vld [vmem:[%s2521_s21 + $0x8c] sm:$0xff] }
  0x3f   : > { %2325 = vmatprep.subr.bf16.mxu0 %v2466_v1 }
  0x44   : > { %2180 = vmatmul.mubr.msk.bf16.gmra.mrb[24].mxu0 %vm233_vm2, %v2604_v57 }
  0x45   : > { %2146 = vmatmul.mubr.msk.bf16.gmra.mrb[24].mxu1 %vm233_vm2, %v192_v58  ;;  %2183 = vmatprep.mubr.msk.bf16.mxu0 %vm2468_vm1, %v2466_v1  ;;  %v887_v58 = vld [vmem:[%s2521_s21 + $0x6b] sm:$0xff] }
  0x46   : > { %2149 = vmatprep.mubr.msk.bf16.mxu1 %vm2468_vm1, %v2466_v1 }
  0x4c   : > { %2184 = vmatmul.mubr.msk.bf16.gmra.mrb[28].mxu0 %vm233_vm2, %v2617_v63 }
  0x4d   : > { %2150 = vmatmul.mubr.msk.bf16.gmra.mrb[28].mxu1 %vm233_vm2, %v193_v0  ;;  %2187 = vmatprep.mubr.msk.bf16.mxu0 %vm2468_vm1, %v2466_v1  ;;  %v891_v0 = vld [vmem:[%s2521_s21 + $0x8b] sm:$0xff] }
  0x4e   : > { %2153 = vmatprep.mubr.msk.bf16.mxu1 %vm2468_vm1, %v2466_v1 }
  0x54   : > { %2188 = vmatmul.mubr.msk.bf16.gmra.mrb[32].mxu0 %vm233_vm2, %v2630_v7 }
  0x55   : > { %2154 = vmatmul.mubr.msk.bf16.gmra.mrb[32].mxu1 %vm233_vm2, %v194_v8  ;;  %2191 = vmatprep.mubr.msk.bf16.mxu0 %vm2468_vm1, %v2466_v1  ;;  %v892_v8 = vld [vmem:[%s2521_s21 + $0x93] sm:$0xff] }
  0x56   : > { %2157 = vmatprep.mubr.msk.bf16.mxu1 %vm2468_vm1, %v2466_v1 }
  0x5c   : > { %2192 = vmatmul.mubr.msk.bf16.gmra.mrb[36].mxu0 %vm233_vm2, %v2643_v13 }
  0x5d   : > { %2158 = vmatmul.mubr.msk.bf16.gmra.mrb[36].mxu1 %vm233_vm2, %v195_v14  ;;  %2195 = vmatprep.mubr.msk.bf16.mxu0 %vm2468_vm1, %v2466_v1  ;;  %v1079_v14 = vpack.c.bf16 %v1062_v11, %v1061_v10  ;;  %v1261_v11 = vld [vmem:[%s2521_s21 + $0xa4] sm:$0xff] }
  0x5e   : > { %2161 = vmatprep.mubr.msk.bf16.mxu1 %vm2468_vm1, %v2466_v1 }
  0x64   : > { %2196 = vmatmul.mubr.msk.bf16.gmra.mrb[40].mxu0 %vm233_vm2, %v2656_v19 }
  0x65   : > { %2162 = vmatmul.mubr.msk.bf16.gmra.mrb[40].mxu1 %vm233_vm2, %v196_v20  ;;  %2199 = vmatprep.mubr.msk.bf16.mxu0 %vm2468_vm1, %v2466_v1  ;;  %v1670_v20 = vand.u32 %v1641_v18, %v2502_v4 }
  0x66   : > { %2165 = vmatprep.mubr.msk.bf16.mxu1 %vm2468_vm1, %v2466_v1 }
  0x6c   : > { %2200 = vmatmul.mubr.msk.bf16.gmra.mrb[44].mxu0 %vm233_vm2, %v2669_v25 }
  0x6d   : > { %2166 = vmatmul.mubr.msk.bf16.gmra.mrb[44].mxu1 %vm233_vm2, %v197_v26  ;;  %2203 = vmatprep.mubr.msk.bf16.mxu0 %vm2468_vm1, %v2466_v1  ;;  %v1069_v26 = vld [vmem:[%s2521_s21 + $0x54] sm:$0xff] }
  0x6e   : > { %2169 = vmatprep.mubr.msk.bf16.mxu1 %vm2468_vm1, %v2466_v1  ;;  %v1083_v28 = vpack.c.bf16 %v1070_v27, %v1069_v26  ;;  %v1614_v26 = vld [vmem:[%s2521_s21 + $0x26] sm:$0xff]  ;;  %v1615_v27 = vld [vmem:[%s2521_s21 + $0x2e] sm:$0xff] }
  0x74   : > { %2204 = vmatmul.mubr.msk.bf16.gmra.mrb[48].mxu0 %vm233_vm2, %v532_v31 }
  0x75   : > { %2170 = vmatmul.mubr.msk.bf16.gmra.mrb[48].mxu1 %vm233_vm2, %v198_v32  ;;  %2207 = vmatprep.mubr.msk.bf16.mxu0 %vm2468_vm1, %v2466_v1 }
  0x76   : > { %2213 = vmatprep.mubr.msk.bf16.mxu1 %vm2468_vm1, %v2466_v1 }
  0x7c   : > { %2208 = vmatmul.mubr.msk.bf16.gmra.mrb[52].mxu0 %vm233_vm2, %v533_v37 }
  0x7d   : > { %2214 = vmatmul.mubr.msk.bf16.vlgmr.msra.gmra.mrb[52].mxu1 %vm233_vm2, %v2604_v57  ;;  %2251 = vmatprep.mubr.msk.bf16.mxu0 %vm2468_vm1, %v2466_v1  ;;  %v886_v57 = vld [vmem:[%s2521_s21 + $0x63] sm:$0xff] }
  0x7e   : > { %2217 = vmatprep.mubr.msk.bf16.mxu1 %vm2468_vm1, %v2466_v1  ;;  %2288 = vmatpush3.bf16.msra.mxu1 %v1120_v39  ;;  %v899_v59 = vpack.c.bf16 %v887_v58, %v886_v57 }
  0x7f   : > { %2363 = vmatprep.subr.bf16.mxu1 %v2466_v1 }
  0x84   : > { %2252 = vmatmul.mubr.msk.bf16.vlgmr.msra.gmra.mrb[56].mxu0 %vm233_vm2, %v894_v43 }
  0x85   : > { %2218 = vmatmul.mubr.msk.bf16.gmra.mrb[56].mxu1 %vm233_vm2, %v2617_v63  ;;  %2326 = vmatpush3.bf16.msra.mxu0 %v1305_v44  ;;  %v890_v63 = vld [vmem:[%s2521_s21 + $0x83] sm:$0xff] }
  0x86   : > { %2221 = vmatprep.mubr.msk.bf16.mxu1 %vm2468_vm1, %v2466_v1  ;;  %2255 = vmatprep.mubr.msk.bf16.mxu0 %vm2468_vm1, %v2466_v1  ;;  %v901_v5 = vpack.c.bf16 %v891_v0, %v890_v63  ;;  %v1078_v63 = vld [vmem:[%s2521_s21 + $0x9c] sm:$0xff] }
  0x87   : > { %2401 = vmatprep.subr.bf16.mxu0 %v2466_v1 }
  0x8c   : > { %2256 = vmatmul.mubr.msk.bf16.gmra.mrb[60].mxu0 %vm233_vm2, %v895_v47 }
  0x8d   : > { %2222 = vmatmul.mubr.msk.bf16.gmra.mrb[60].mxu1 %vm233_vm2, %v2630_v7  ;;  %2259 = vmatprep.mubr.msk.bf16.mxu0 %vm2468_vm1, %v2466_v1  ;;  %v1458_v7 = vshrl.u32 %v2694_v38, 16 }
  0x8e   : > { %2225 = vmatprep.mubr.msk.bf16.mxu1 %vm2468_vm1, %v2466_v1 }
  0x8f   : > { %v1460_v12 = vrot.slane %v1458_v7, 3 }
  0x91   : > { %v1489_v15 = vand.u32 %v1460_v12, %v2502_v4  ;;  %v1067_v4 = vld [vmem:[%s2521_s21 + $0x44] sm:$0xff]  ;;  %v1262_v12 = vld [vmem:[%s2521_s21 + $0xac] sm:$0xff] }
  0x92   : > { %v1271_v18 = vpack.c.bf16 %v1262_v12, %v1261_v11  ;;  %v1618_v12 = vld [vmem:[%s2521_s21 + $0x46] sm:$0xff] }
  0x94   : > { %2260 = vmatmul.mubr.msk.bf16.gmra.mrb[64].mxu0 %vm233_vm2, %v896_v50 }
  0x95   : > { %2226 = vmatmul.mubr.msk.bf16.gmra.mrb[64].mxu1 %vm233_vm2, %v2643_v13  ;;  %2263 = vmatprep.mubr.msk.bf16.mxu0 %vm2468_vm1, %v2466_v1  ;;  %v902_v13 = vpack.c.bf16 %v893_v9, %v892_v8 }
  0x96   : > { %2229 = vmatprep.mubr.msk.bf16.mxu1 %vm2468_vm1, %v2466_v1 }
  0x9c   : > { %2264 = vmatmul.mubr.msk.bf16.gmra.mrb[68].mxu0 %vm233_vm2, %v897_v53 }
  0x9d   : > { %2230 = vmatmul.mubr.msk.bf16.gmra.mrb[68].mxu1 %vm233_vm2, %v2656_v19  ;;  %2267 = vmatprep.mubr.msk.bf16.mxu0 %vm2468_vm1, %v2466_v1  ;;  %v1080_v19 = vpack.c.bf16 %v1064_v17, %v1063_v16 }
  0x9e   : > { %2233 = vmatprep.mubr.msk.bf16.mxu1 %vm2468_vm1, %v2466_v1 }
  0xa4   : > { %2268 = vmatmul.mubr.msk.bf16.gmra.mrb[72].mxu0 %vm233_vm2, %v898_v56  ;;  %v1086_v56 = vpack.c.bf16 %v1076_v52, %v1075_v51  ;;  %v1434_v51 = vld [vmem:[%s2521_s21 + $0x45] sm:$0xff]  ;;  %v1435_v52 = vld [vmem:[%s2521_s21 + $0x4d] sm:$0xff] }
  0xa5   : > { %2234 = vmatmul.mubr.msk.bf16.gmra.mrb[72].mxu1 %vm233_vm2, %v2669_v25  ;;  %2271 = vmatprep.mubr.msk.bf16.mxu0 %vm2468_vm1, %v2466_v1  ;;  %v1082_v25 = vpack.c.bf16 %v1068_v24, %v1067_v4 }
  0xa6   : > { %2237 = vmatprep.mubr.msk.bf16.mxu1 %vm2468_vm1, %v2466_v1 }
  0xac   : > { %2272 = vmatmul.mubr.msk.bf16.gmra.mrb[76].mxu0 %vm233_vm2, %v899_v59 }
  0xad   : > { %2238 = vmatmul.mubr.msk.bf16.gmra.mrb[76].mxu1 %vm233_vm2, %v532_v31  ;;  %2275 = vmatprep.mubr.msk.bf16.mxu0 %vm2468_vm1, %v2466_v1 }
  0xae   : > { %2241 = vmatprep.mubr.msk.bf16.mxu1 %vm2468_vm1, %v2466_v1 }
  0xb4   : > { %2276 = vmatmul.mubr.msk.bf16.gmra.mrb[80].mxu0 %vm233_vm2, %v900_v62  ;;  %v1077_v62 = vld [vmem:[%s2521_s21 + $0x94] sm:$0xff] }
  0xb5   : > { %2242 = vmatmul.mubr.msk.bf16.gmra.mrb[80].mxu1 %vm233_vm2, %v533_v37  ;;  %2279 = vmatprep.mubr.msk.bf16.mxu0 %vm2468_vm1, %v2466_v1 }
  0xb6   : > { %2245 = vmatprep.mubr.msk.bf16.mxu1 %vm2468_vm1, %v2466_v1 }
  0xbc   : > { %2280 = vmatmul.mubr.msk.bf16.gmra.mrb[84].mxu0 %vm233_vm2, %v901_v5  ;;  %v1087_v5 = vpack.c.bf16 %v1078_v63, %v1077_v62 }
  0xbd   : > { %2246 = vmatmul.mubr.msk.bf16.gmra.mrb[84].mxu1 %vm233_vm2, %v718_v6  ;;  %2283 = vmatprep.mubr.msk.bf16.mxu0 %vm2468_vm1, %v2466_v1 }
  0xbe   : > { %2289 = vmatprep.mubr.msk.bf16.mxu1 %vm2468_vm1, %v2466_v1 }
  0xc4   : > { %2284 = vmatmul.mubr.msk.bf16.gmra.mrb[88].mxu0 %vm233_vm2, %v902_v13  ;;  %v1430_v13 = vld [vmem:[%s2521_s21 + $0x25] sm:$0xff] }
  0xc5   : > { %2290 = vmatmul.mubr.msk.bf16.vlgmr.msra.gmra.mrb[88].mxu1 %vm233_vm2, %v1079_v14  ;;  %2327 = vmatprep.mubr.msk.bf16.mxu0 %vm2468_vm1, %v2466_v1  ;;  %v1431_v14 = vld [vmem:[%s2521_s21 + $0x2d] sm:$0xff] }
  0xc6   : > { %2293 = vmatprep.mubr.msk.bf16.mxu1 %vm2468_vm1, %v2466_v1  ;;  %2364 = vmatpush3.bf16.msra.mxu1 %v1489_v15  ;;  %v1448_v22 = vpack.c.bf16 %v1431_v14, %v1430_v13  ;;  %v1436_v13 = vld [vmem:[%s2521_s21 + $0x55] sm:$0xff]  ;;  %v1437_v14 = vld [vmem:[%s2521_s21 + $0x5d] sm:$0xff] }
  0xcc   : > { %2328 = vmatmul.mubr.msk.bf16.vlgmr.msra.gmra.mrb[92].mxu0 %vm233_vm2, %v1080_v19 }
  0xcd   : > { %2294 = vmatmul.mubr.msk.bf16.gmra.mrb[92].mxu1 %vm233_vm2, %v1080_v19  ;;  %2402 = vmatpush3.bf16.msra.mxu0 %v1670_v20 }
  0xce   : > { %2297 = vmatprep.mubr.msk.bf16.mxu1 %vm2468_vm1, %v2466_v1  ;;  %2331 = vmatprep.mubr.msk.bf16.mxu0 %vm2468_vm1, %v2466_v1 }
  0xd4   : > { %2332 = vmatmul.mubr.msk.bf16.gmra.mrb[96].mxu0 %vm233_vm2, %v1081_v23 }
  0xd5   : > { %2298 = vmatmul.mubr.msk.bf16.gmra.mrb[96].mxu1 %vm233_vm2, %v1081_v23  ;;  %2335 = vmatprep.mubr.msk.bf16.mxu0 %vm2468_vm1, %v2466_v1 }
  0xd6   : > { %2301 = vmatprep.mubr.msk.bf16.mxu1 %vm2468_vm1, %v2466_v1 }
  0xdc   : > { %2336 = vmatmul.mubr.msk.bf16.gmra.mrb[100].mxu0 %vm233_vm2, %v1082_v25 }
  0xdd   : > { %2302 = vmatmul.mubr.msk.bf16.gmra.mrb[100].mxu1 %vm233_vm2, %v1082_v25  ;;  %2339 = vmatprep.mubr.msk.bf16.mxu0 %vm2468_vm1, %v2466_v1 }
  0xde   : > { %2305 = vmatprep.mubr.msk.bf16.mxu1 %vm2468_vm1, %v2466_v1 }
  0xe4   : > { %2340 = vmatmul.mubr.msk.bf16.gmra.mrb[104].mxu0 %vm233_vm2, %v1083_v28 }
  0xe5   : > { %2306 = vmatmul.mubr.msk.bf16.gmra.mrb[104].mxu1 %vm233_vm2, %v1083_v28  ;;  %2343 = vmatprep.mubr.msk.bf16.mxu0 %vm2468_vm1, %v2466_v1  ;;  %v1432_v28 = vld [vmem:[%s2521_s21 + $0x35] sm:$0xff] }
  0xe6   : > { %2309 = vmatprep.mubr.msk.bf16.mxu1 %vm2468_vm1, %v2466_v1  ;;  %v1449_v40 = vpack.c.bf16 %v1433_v29, %v1432_v28  ;;  %v1620_v29 = vld [vmem:[%s2521_s21 + $0x56] sm:$0xff] }
  0xe7   : > { %v2829_v31 = vpop.f32.mrb[0].mxu0 }
  0xe8   : > { %v2101_v32 = vpop.f32.mrb[1].mxu0  ;;  %v2831_v33 = vpop.f32.mrb[0].mxu1 }
  0xe9   : > { %v2833_v35 = vpop.f32.mrb[2].mxu0  ;;  %v2121_v36 = vpop.f32.mrb[1].mxu1 }
  0xea   : > { %v2102_v37 = vpop.f32.mrb[3].mxu0  ;;  %v2835_v38 = vpop.f32.mrb[2].mxu1 }
  0xeb   : > { %v2122_v39 = vpop.f32.mrb[3].mxu1 }
  0xec   : > { %2344 = vmatmul.mubr.msk.bf16.gmra.mrb[108].mxu0 %vm233_vm2, %v1084_v34 }
  0xed   : > { %2310 = vmatmul.mubr.msk.bf16.gmra.mrb[108].mxu1 %vm233_vm2, %v1084_v34  ;;  %2347 = vmatprep.mubr.msk.bf16.mxu0 %vm2468_vm1, %v2466_v1 }
  0xee   : > { %2313 = vmatprep.mubr.msk.bf16.mxu1 %vm2468_vm1, %v2466_v1 }
  0xef   : > { %v2845_v42 = vpop.f32.mrb[4].mxu0 }
  0xf0   : > { %v2105_v43 = vpop.f32.mrb[5].mxu0  ;;  %v2847_v44 = vpop.f32.mrb[4].mxu1 }
  0xf1   : > { %v2849_v46 = vpop.f32.mrb[6].mxu0  ;;  %v2125_v47 = vpop.f32.mrb[5].mxu1 }
  0xf2   : > { %v2106_v48 = vpop.f32.mrb[7].mxu0  ;;  %v2851_v49 = vpop.f32.mrb[6].mxu1 }
  0xf3   : > { %v2126_v50 = vpop.f32.mrb[7].mxu1 }
  0xf4   : > { %2348 = vmatmul.mubr.msk.bf16.gmra.mrb[112].mxu0 %vm233_vm2, %v1085_v45  ;;  %v1616_v50 = vld [vmem:[%s2521_s21 + $0x36] sm:$0xff] }
  0xf5   : > { %2314 = vmatmul.mubr.msk.bf16.gmra.mrb[112].mxu1 %vm233_vm2, %v1085_v45  ;;  %2351 = vmatprep.mubr.msk.bf16.mxu0 %vm2468_vm1, %v2466_v1 }
  0xf6   : > { %2317 = vmatprep.mubr.msk.bf16.mxu1 %vm2468_vm1, %v2466_v1 }
  0xf7   : > { %v2861_v53 = vpop.f32.mrb[8].mxu0 }
  0xf8   : > { %v2109_v54 = vpop.f32.mrb[9].mxu0  ;;  %v2863_v55 = vpop.f32.mrb[8].mxu1 }
  0xf9   : > { %v2865_v57 = vpop.f32.mrb[10].mxu0  ;;  %v2129_v58 = vpop.f32.mrb[9].mxu1 }
  0xfa   : > { %v2110_v59 = vpop.f32.mrb[11].mxu0  ;;  %v2867_v60 = vpop.f32.mrb[10].mxu1 }
  0xfb   : > { %v2130_v61 = vpop.f32.mrb[11].mxu1 }
  0xfc   : > { %2352 = vmatmul.mubr.msk.bf16.gmra.mrb[116].mxu0 %vm233_vm2, %v1086_v56 }
  0xfd   : > { %2318 = vmatmul.mubr.msk.bf16.gmra.mrb[116].mxu1 %vm233_vm2, %v1086_v56  ;;  %2355 = vmatprep.mubr.msk.bf16.mxu0 %vm2468_vm1, %v2466_v1 }
  0xfe   : > { %2321 = vmatprep.mubr.msk.bf16.mxu1 %vm2468_vm1, %v2466_v1 }
  0xff   : > { %v2877_v0 = vpop.f32.mrb[12].mxu0 }
 0x100   : > { %v2113_v2 = vpop.f32.mrb[13].mxu0  ;;  %v2879_v3 = vpop.f32.mrb[12].mxu1 }
 0x101   : > { %v2881_v6 = vpop.f32.mrb[14].mxu0  ;;  %v2133_v7 = vpop.f32.mrb[13].mxu1  ;;  %v1450_v2 = vpack.c.bf16 %v1435_v52, %v1434_v51  ;;  %v1622_v52 = vld [vmem:[%s2521_s21 + $0x66] sm:$0xff] }
 0x102   : > { %v2114_v8 = vpop.f32.mrb[15].mxu0  ;;  %v2883_v9 = vpop.f32.mrb[14].mxu1 }
 0x103   : > { %v2134_v10 = vpop.f32.mrb[15].mxu1 }
 0x104   : > { %2356 = vmatmul.mubr.msk.bf16.gmra.mrb[120].mxu0 %vm233_vm2, %v1087_v5 }
 0x105   : > { %2322 = vmatmul.mubr.msk.bf16.gmra.mrb[120].mxu1 %vm233_vm2, %v1087_v5  ;;  %2359 = vmatprep.mubr.msk.bf16.mxu0 %vm2468_vm1, %v2466_v1 }
 0x106   : > { %2365 = vmatprep.mubr.msk.bf16.mxu1 %vm2468_vm1, %v2466_v1 }
 0x107   : > { %v2895_v15 = vpop.f32.mrb[16].mxu0 }
 0x108   : > { %v436_v16 = vpop.f32.mrb[16].mxu1  ;;  %v2117_v17 = vpop.f32.mrb[17].mxu0 }
 0x109   : > { %v437_v19 = vadd.f32 %v436_v16, %v2829_v31  ;;  %v2139_v20 = vpop.f32.mrb[17].mxu1  ;;  %v2898_v21 = vpop.f32.mrb[18].mxu0 }
 0x10a   : > { %v439_v23 = vpop.f32.mrb[18].mxu1  ;;  %v2118_v4 = vpop.f32.mrb[19].mxu0 }
 0x10b   : > { %v440_v24 = vadd.f32 %v439_v23, %v2833_v35  ;;  %v2140_v25 = vpop.f32.mrb[19].mxu1  ;;  %v1632_v35 = vpack.c.bf16 %v1615_v27, %v1614_v26  ;;  %v1451_v4 = vpack.c.bf16 %v1437_v14, %v1436_v13  ;;  %v1624_v14 = vld [vmem:[%s2521_s21 + $0x76] sm:$0xff] }
 0x10c   : > { %2360 = vmatmul.mubr.msk.bf16.gmra.mrb[124].mxu0 %vm233_vm2, %v1271_v18 }
 0x10d   : > { %2366 = vmatmul.mubr.msk.bf16.vlgmr.msra.gmra.mrb[124].mxu1 %vm233_vm2, %v1448_v22  ;;  %2403 = vmatprep.mubr.msk.bf16.mxu0 %vm2468_vm1, %v2466_v1 }
 0x10e   : > { %2369 = vmatprep.mubr.msk.bf16.mxu1 %vm2468_vm1, %v2466_v1 }
 0x10f   : > { %v603_v30 = vpop.f32.mrb[20].mxu0 }
 0x110   : > { %v444_v31 = vpop.f32.mrb[20].mxu1  ;;  %v2911_v32 = vadd.f32 %v603_v30, %v437_v19  ;;  %v2177_v34 = vpop.f32.mrb[21].mxu0  ;;  %v1438_v30 = vld [vmem:[%s2521_s21 + $0x65] sm:$0xff] }
 0x111   : > { %v445_v36 = vadd.f32 %v444_v31, %v2845_v42  ;;  %v2143_v37 = vpop.f32.mrb[21].mxu1  ;;  %v606_v39 = vpop.f32.mrb[22].mxu0  ;;  %v1617_v42 = vld [vmem:[%s2521_s21 + $0x3e] sm:$0xff]  ;;  %v1439_v31 = vld [vmem:[%s2521_s21 + $0x6d] sm:$0xff] }
 0x112   : > { %v447_v41 = vpop.f32.mrb[22].mxu1  ;;  %v2914_v43 = vadd.f32 %v606_v39, %v440_v24  ;;  %v2178_v45 = vpop.f32.mrb[23].mxu0  ;;  %v1633_v59 = vpack.c.bf16 %v1617_v42, %v1616_v50 }
 0x113   : > { %v448_v47 = vadd.f32 %v447_v41, %v2849_v46  ;;  %v2144_v48 = vpop.f32.mrb[23].mxu1  ;;  %v1452_v45 = vpack.c.bf16 %v1439_v31, %v1438_v30  ;;  %v1626_v31 = vld [vmem:[%s2521_s21 + $0x86] sm:$0xff] }
 0x114   : > { %2404 = vmatmul.mubr.msk.bf16.vlgmr.msra.gmra.mrb[128].mxu0 %vm233_vm2, %v1632_v35 }
 0x115   : > { %2370 = vmatmul.mubr.msk.bf16.gmra.mrb[128].mxu1 %vm233_vm2, %v1449_v40  ;;  %2407 = vmatprep.mubr.msk.bf16.mxu0 %vm2468_vm1, %v2466_v1 }
 0x116   : > { %2373 = vmatprep.mubr.msk.bf16.mxu1 %vm2468_vm1, %v2466_v1 }
 0x117   : > { %v611_v54 = vpop.f32.mrb[24].mxu0 }
 0x118   : > { %v452_v56 = vpop.f32.mrb[24].mxu1  ;;  %v2927_v58 = vadd.f32 %v611_v54, %v445_v36  ;;  %v2181_v46 = vpop.f32.mrb[25].mxu0  ;;  %v1440_v54 = vld [vmem:[%s2521_s21 + $0x75] sm:$0xff] }
 0x119   : > { %v453_v61 = vadd.f32 %v452_v56, %v2861_v53  ;;  %v2147_v62 = vpop.f32.mrb[25].mxu1  ;;  %v614_v63 = vpop.f32.mrb[26].mxu0  ;;  %v1619_v53 = vld [vmem:[%s2521_s21 + $0x4e] sm:$0xff]  ;;  %v1441_v56 = vld [vmem:[%s2521_s21 + $0x7d] sm:$0xff] }
 0x11a   : > { %v455_v5 = vpop.f32.mrb[26].mxu1  ;;  %v2930_v7 = vadd.f32 %v614_v63, %v448_v47  ;;  %v2182_v8 = vpop.f32.mrb[27].mxu0  ;;  %v1634_v19 = vpack.c.bf16 %v1619_v53, %v1618_v12 }
 0x11b   : > { %v456_v10 = vadd.f32 %v455_v5, %v2865_v57  ;;  %v2148_v11 = vpop.f32.mrb[27].mxu1  ;;  %v1453_v8 = vpack.c.bf16 %v1441_v56, %v1440_v54  ;;  %v1628_v56 = vld [vmem:[%s2521_s21 + $0x96] sm:$0xff] }
 0x11c   : > { %2408 = vmatmul.mubr.msk.bf16.gmra.mrb[132].mxu0 %vm233_vm2, %v1633_v59 }
 0x11d   : > { %2374 = vmatmul.mubr.msk.bf16.gmra.mrb[132].mxu1 %vm233_vm2, %v1450_v2  ;;  %2411 = vmatprep.mubr.msk.bf16.mxu0 %vm2468_vm1, %v2466_v1 }
 0x11e   : > { %2377 = vmatprep.mubr.msk.bf16.mxu1 %vm2468_vm1, %v2466_v1 }
 0x11f   : > { %v619_v16 = vpop.f32.mrb[28].mxu0 }
 0x120   : > { %v460_v17 = vpop.f32.mrb[28].mxu1  ;;  %v2943_v18 = vadd.f32 %v619_v16, %v453_v61  ;;  %v2185_v57 = vpop.f32.mrb[29].mxu0  ;;  %v1442_v16 = vld [vmem:[%s2521_s21 + $0x85] sm:$0xff] }
 0x121   : > { %v461_v20 = vadd.f32 %v460_v17, %v2877_v0  ;;  %v2151_v22 = vpop.f32.mrb[29].mxu1  ;;  %v622_v23 = vpop.f32.mrb[30].mxu0  ;;  %v1621_v0 = vld [vmem:[%s2521_s21 + $0x5e] sm:$0xff]  ;;  %v1443_v17 = vld [vmem:[%s2521_s21 + $0x8d] sm:$0xff] }
 0x122   : > { %v463_v24 = vpop.f32.mrb[30].mxu1  ;;  %v2946_v25 = vadd.f32 %v622_v23, %v456_v10  ;;  %v2186_v26 = vpop.f32.mrb[31].mxu0  ;;  %v1635_v37 = vpack.c.bf16 %v1621_v0, %v1620_v29 }
 0x123   : > { %v464_v27 = vadd.f32 %v463_v24, %v2881_v6  ;;  %v2152_v28 = vpop.f32.mrb[31].mxu1  ;;  %v1454_v26 = vpack.c.bf16 %v1443_v17, %v1442_v16  ;;  %v1630_v17 = vld [vmem:[%s2521_s21 + $0xa6] sm:$0xff] }
 0x124   : > { %2412 = vmatmul.mubr.msk.bf16.gmra.mrb[136].mxu0 %vm233_vm2, %v1634_v19 }
 0x125   : > { %2378 = vmatmul.mubr.msk.bf16.gmra.mrb[136].mxu1 %vm233_vm2, %v1451_v4  ;;  %2415 = vmatprep.mubr.msk.bf16.mxu0 %vm2468_vm1, %v2466_v1 }
 0x126   : > { %2381 = vmatprep.mubr.msk.bf16.mxu1 %vm2468_vm1, %v2466_v1 }
 0x127   : > { %v627_v34 = vpop.f32.mrb[32].mxu0 }
 0x128   : > { %v468_v35 = vpop.f32.mrb[32].mxu1  ;;  %v2959_v36 = vadd.f32 %v627_v34, %v461_v20  ;;  %v2189_v6 = vpop.f32.mrb[33].mxu0  ;;  %v1444_v34 = vld [vmem:[%s2521_s21 + $0x95] sm:$0xff] }
 0x129   : > { %v469_v39 = vadd.f32 %v468_v35, %v2895_v15  ;;  %v2155_v40 = vpop.f32.mrb[33].mxu1  ;;  %v630_v41 = vpop.f32.mrb[34].mxu0  ;;  %v1623_v15 = vld [vmem:[%s2521_s21 + $0x6e] sm:$0xff]  ;;  %v1445_v35 = vld [vmem:[%s2521_s21 + $0x9d] sm:$0xff] }
 0x12a   : > { %v471_v47 = vpop.f32.mrb[34].mxu1  ;;  %v2962_v48 = vadd.f32 %v630_v41, %v464_v27  ;;  %v2190_v50 = vpop.f32.mrb[35].mxu0  ;;  %v1636_v62 = vpack.c.bf16 %v1623_v15, %v1622_v52 }
 0x12b   : > { %v472_v42 = vadd.f32 %v471_v47, %v2898_v21  ;;  %v2156_v51 = vpop.f32.mrb[35].mxu1  ;;  %v1455_v50 = vpack.c.bf16 %v1445_v35, %v1444_v34 }
 0x12c   : > { %2416 = vmatmul.mubr.msk.bf16.gmra.mrb[140].mxu0 %vm233_vm2, %v1635_v37 }
 0x12d   : > { %2382 = vmatmul.mubr.msk.bf16.gmra.mrb[140].mxu1 %vm233_vm2, %v1452_v45  ;;  %2419 = vmatprep.mubr.msk.bf16.mxu0 %vm2468_vm1, %v2466_v1 }
 0x12e   : > { %2385 = vmatprep.mubr.msk.bf16.mxu1 %vm2468_vm1, %v2466_v1 }
 0x12f   : > { %v635_v46 = vpop.f32.mrb[36].mxu0 }
 0x130   : > { %v476_v59 = vpop.f32.mrb[36].mxu1  ;;  %v2975_v61 = vadd.f32 %v635_v46, %v469_v39  ;;  %v2193_v21 = vpop.f32.mrb[37].mxu0  ;;  %v1446_v46 = vld [vmem:[%s2521_s21 + $0xa5] sm:$0xff] }
 0x131   : > { %v477_v63 = vadd.f32 %v476_v59, %v2831_v33  ;;  %v2159_v2 = vpop.f32.mrb[37].mxu1  ;;  %v638_v5 = vpop.f32.mrb[38].mxu0  ;;  %v1625_v33 = vld [vmem:[%s2521_s21 + $0x7e] sm:$0xff]  ;;  %v1447_v59 = vld [vmem:[%s2521_s21 + $0xad] sm:$0xff] }
 0x132   : > { %v479_v10 = vpop.f32.mrb[38].mxu1  ;;  %v2978_v11 = vadd.f32 %v638_v5, %v472_v42  ;;  %v2194_v12 = vpop.f32.mrb[39].mxu0  ;;  %v1637_v22 = vpack.c.bf16 %v1625_v33, %v1624_v14 }
 0x133   : > { %v480_v53 = vadd.f32 %v479_v10, %v2835_v38  ;;  %v2160_v13 = vpop.f32.mrb[39].mxu1  ;;  %v1456_v12 = vpack.c.bf16 %v1447_v59, %v1446_v46 }
 0x134   : > { %2420 = vmatmul.mubr.msk.bf16.gmra.mrb[144].mxu0 %vm233_vm2, %v1636_v62 }
 0x135   : > { %2386 = vmatmul.mubr.msk.bf16.gmra.mrb[144].mxu1 %vm233_vm2, %v1453_v8  ;;  %2423 = vmatprep.mubr.msk.bf16.mxu0 %vm2468_vm1, %v2466_v1 }
 0x136   : > { %2389 = vmatprep.mubr.msk.bf16.mxu1 %vm2468_vm1, %v2466_v1 }
 0x137   : > { %v643_v57 = vpop.f32.mrb[40].mxu0 }
 0x138   : > { %v484_v19 = vpop.f32.mrb[40].mxu1  ;;  %v2991_v20 = vadd.f32 %v643_v57, %v477_v63  ;;  %v2197_v38 = vpop.f32.mrb[41].mxu0  ;;  %v1631_v57 = vld [vmem:[%s2521_s21 + $0xae] sm:$0xff] }
 0x139   : > { %v485_v23 = vadd.f32 %v484_v19, %v2847_v44  ;;  %v2163_v4 = vpop.f32.mrb[41].mxu1  ;;  %v646_v24 = vpop.f32.mrb[42].mxu0  ;;  %v1627_v44 = vld [vmem:[%s2521_s21 + $0x8e] sm:$0xff] }
 0x13a   : > { %v487_v27 = vpop.f32.mrb[42].mxu1  ;;  %v2994_v28 = vadd.f32 %v646_v24, %v480_v53  ;;  %v2198_v29 = vpop.f32.mrb[43].mxu0  ;;  %v1638_v40 = vpack.c.bf16 %v1627_v44, %v1626_v31 }
 0x13b   : > { %v488_v0 = vadd.f32 %v487_v27, %v2851_v49  ;;  %v2164_v30 = vpop.f32.mrb[43].mxu1 }
 0x13c   : > { %2424 = vmatmul.mubr.msk.bf16.gmra.mrb[148].mxu0 %vm233_vm2, %v1637_v22 }
 0x13d   : > { %2390 = vmatmul.mubr.msk.bf16.gmra.mrb[148].mxu1 %vm233_vm2, %v1454_v26  ;;  %2427 = vmatprep.mubr.msk.bf16.mxu0 %vm2468_vm1, %v2466_v1 }
 0x13e   : > { %2393 = vmatprep.mubr.msk.bf16.mxu1 %vm2468_vm1, %v2466_v1 }
 0x13f   : > { %v651_v6 = vpop.f32.mrb[44].mxu0 }
 0x140   : > { %v492_v37 = vpop.f32.mrb[44].mxu1  ;;  %v3007_v39 = vadd.f32 %v651_v6, %v485_v23  ;;  %v2201_v49 = vpop.f32.mrb[45].mxu0  ;;  %v1640_v23 = vpack.c.bf16 %v1631_v57, %v1630_v17 }
 0x141   : > { %v493_v41 = vadd.f32 %v492_v37, %v2863_v55  ;;  %v2167_v45 = vpop.f32.mrb[45].mxu1  ;;  %v654_v47 = vpop.f32.mrb[46].mxu0  ;;  %v1629_v55 = vld [vmem:[%s2521_s21 + $0x9e] sm:$0xff] }
 0x142   : > { %v495_v42 = vpop.f32.mrb[46].mxu1  ;;  %v3010_v51 = vadd.f32 %v654_v47, %v488_v0  ;;  %v2202_v52 = vpop.f32.mrb[47].mxu0  ;;  %v1639_v2 = vpack.c.bf16 %v1629_v55, %v1628_v56 }
 0x143   : > { %v496_v15 = vadd.f32 %v495_v42, %v2867_v60  ;;  %v2168_v54 = vpop.f32.mrb[47].mxu1 }
 0x144   : > { %2428 = vmatmul.mubr.msk.bf16.gmra.mrb[152].mxu0 %vm233_vm2, %v1638_v40 }
 0x145   : > { %2394 = vmatmul.mubr.msk.bf16.gmra.mrb[152].mxu1 %vm233_vm2, %v1455_v50  ;;  %2431 = vmatprep.mubr.msk.bf16.mxu0 %vm2468_vm1, %v2466_v1 }
 0x146   : > { %2397 = vmatprep.mubr.msk.bf16.mxu1 %vm2468_vm1, %v2466_v1 }
 0x147   : > { %v659_v21 = vpop.f32.mrb[48].mxu0 }
 0x148   : > { %v500_v62 = vpop.f32.mrb[48].mxu1  ;;  %v3023_v63 = vadd.f32 %v659_v21, %v493_v41  ;;  %v2205_v60 = vpop.f32.mrb[49].mxu0 }
 0x149   : > { %v501_v5 = vadd.f32 %v500_v62, %v2879_v3  ;;  %v2171_v8 = vpop.f32.mrb[49].mxu1  ;;  %v662_v10 = vpop.f32.mrb[50].mxu0 }
 0x14a   : > { %v503_v53 = vpop.f32.mrb[50].mxu1  ;;  %v3026_v13 = vadd.f32 %v662_v10, %v496_v15  ;;  %v2206_v14 = vpop.f32.mrb[51].mxu0 }
 0x14b   : > { %v504_v33 = vadd.f32 %v503_v53, %v2883_v9  ;;  %v2172_v16 = vpop.f32.mrb[51].mxu1 }
 0x14c   : > { %2432 = vmatmul.mubr.msk.bf16.gmra.mrb[156].mxu0 %vm233_vm2, %v1639_v2 }
 0x14d   : > { %2398 = vmatmul.mubr.msk.bf16.gmra.mrb[156].mxu1 %vm233_vm2, %v1456_v12  ;;  %2435 = vmatprep.mubr.msk.bf16.mxu0 %vm2468_vm1, %v2466_v1 }
 0x14f   : > { %v667_v3 = vpop.f32.mrb[52].mxu0 }
 0x150   : > { %v3035_v19 = vadd.f32 %v667_v3, %v501_v5  ;;  %v787_v38 = vpop.f32.mrb[52].mxu1  ;;  %v2209_v22 = vpop.f32.mrb[53].mxu0 }
 0x151   : > { %v858_v4 = vadd.f32 %v787_v38, %v2911_v32  ;;  %v2215_v24 = vpop.f32.mrb[53].mxu1  ;;  %v670_v9 = vpop.f32.mrb[54].mxu0 }
 0x152   : > { %v3038_v26 = vadd.f32 %v670_v9, %v504_v33  ;;  %v790_v27 = vpop.f32.mrb[54].mxu1  ;;  %v2210_v29 = vpop.f32.mrb[55].mxu0 }
 0x153   : > { %v859_v0 = vadd.f32 %v790_v27, %v2914_v43  ;;  %v2216_v30 = vpop.f32.mrb[55].mxu1 }
 0x154   : > { %2436 = vmatmul.mubr.msk.bf16.gmra.mrb[160].mxu0 %vm233_vm2, %v1640_v23 }
 0x157   : > { %v972_v1 = vpop.f32.mrb[56].mxu0 }
 0x158   : > { %v795_v31 = vpop.f32.mrb[56].mxu1  ;;  %v3042_v44 = vadd.f32 %v972_v1, %v858_v4  ;;  %v2253_v34 = vpop.f32.mrb[57].mxu0 }
 0x159   : > { %v860_v35 = vadd.f32 %v795_v31, %v2927_v58  ;;  %v2219_v6 = vpop.f32.mrb[57].mxu1  ;;  %v975_v32 = vpop.f32.mrb[58].mxu0 }
 0x15a   : > { %v798_v37 = vpop.f32.mrb[58].mxu1  ;;  %v3045_v49 = vadd.f32 %v975_v32, %v859_v0  ;;  %v2254_v40 = vpop.f32.mrb[59].mxu0 }
 0x15b   : > { %v861_v41 = vadd.f32 %v798_v37, %v2930_v7  ;;  %v2220_v45 = vpop.f32.mrb[59].mxu1 }
 0x15f   : > { %v980_v43 = vpop.f32.mrb[60].mxu0 }
 0x160   : > { %v803_v47 = vpop.f32.mrb[60].mxu1  ;;  %v3048_v50 = vadd.f32 %v980_v43, %v860_v35  ;;  %v2257_v42 = vpop.f32.mrb[61].mxu0 }
 0x161   : > { %v862_v52 = vadd.f32 %v803_v47, %v2943_v18  ;;  %v2223_v15 = vpop.f32.mrb[61].mxu1  ;;  %v983_v54 = vpop.f32.mrb[62].mxu0 }
 0x162   : > { %v806_v56 = vpop.f32.mrb[62].mxu1  ;;  %v3051_v58 = vadd.f32 %v983_v54, %v861_v41  ;;  %v2258_v55 = vpop.f32.mrb[63].mxu0 }
 0x163   : > { %v863_v46 = vadd.f32 %v806_v56, %v2946_v25  ;;  %v2224_v59 = vpop.f32.mrb[63].mxu1 }
 0x167   : > { %v988_v21 = vpop.f32.mrb[64].mxu0 }
 0x168   : > { %v811_v62 = vpop.f32.mrb[64].mxu1  ;;  %v3054_v7 = vadd.f32 %v988_v21, %v862_v52  ;;  %v2261_v60 = vpop.f32.mrb[65].mxu0 }
 0x169   : > { %v864_v2 = vadd.f32 %v811_v62, %v2959_v36  ;;  %v2227_v5 = vpop.f32.mrb[65].mxu1  ;;  %v991_v8 = vpop.f32.mrb[66].mxu0 }
 0x16a   : > { %v814_v10 = vpop.f32.mrb[66].mxu1  ;;  %v3057_v18 = vadd.f32 %v991_v8, %v863_v46  ;;  %v2262_v12 = vpop.f32.mrb[67].mxu0 }
 0x16b   : > { %v865_v53 = vadd.f32 %v814_v10, %v2962_v48  ;;  %v2228_v14 = vpop.f32.mrb[67].mxu1 }
 0x16f   : > { %v996_v33 = vpop.f32.mrb[68].mxu0 }
 0x170   : > { %v819_v16 = vpop.f32.mrb[68].mxu1  ;;  %v3060_v25 = vadd.f32 %v996_v33, %v864_v2  ;;  %v2265_v17 = vpop.f32.mrb[69].mxu0 }
 0x171   : > { %v866_v57 = vadd.f32 %v819_v16, %v2975_v61  ;;  %v2231_v3 = vpop.f32.mrb[69].mxu1  ;;  %v999_v38 = vpop.f32.mrb[70].mxu0 }
 0x172   : > { %v822_v22 = vpop.f32.mrb[70].mxu1  ;;  %v3063_v36 = vadd.f32 %v999_v38, %v865_v53  ;;  %v2266_v23 = vpop.f32.mrb[71].mxu0 }
 0x173   : > { %v867_v4 = vadd.f32 %v822_v22, %v2978_v11  ;;  %v2232_v24 = vpop.f32.mrb[71].mxu1 }
 0x177   : > { %v1004_v9 = vpop.f32.mrb[72].mxu0 }
 0x178   : > { %v827_v27 = vpop.f32.mrb[72].mxu1  ;;  %v3066_v48 = vadd.f32 %v1004_v9, %v866_v57  ;;  %v2269_v29 = vpop.f32.mrb[73].mxu0 }
 0x179   : > { %v868_v0 = vadd.f32 %v827_v27, %v2991_v20  ;;  %v2235_v30 = vpop.f32.mrb[73].mxu1  ;;  %v1007_v1 = vpop.f32.mrb[74].mxu0 }
 0x17a   : > { %v830_v31 = vpop.f32.mrb[74].mxu1  ;;  %v3069_v61 = vadd.f32 %v1007_v1, %v867_v4  ;;  %v2270_v34 = vpop.f32.mrb[75].mxu0 }
 0x17b   : > { %v869_v35 = vadd.f32 %v830_v31, %v2994_v28  ;;  %v2236_v6 = vpop.f32.mrb[75].mxu1 }
 0x17f   : > { %v1012_v32 = vpop.f32.mrb[76].mxu0 }
 0x180   : > { %v835_v37 = vpop.f32.mrb[76].mxu1  ;;  %v3072_v11 = vadd.f32 %v1012_v32, %v868_v0  ;;  %v2273_v40 = vpop.f32.mrb[77].mxu0 }
 0x181   : > { %v870_v41 = vadd.f32 %v835_v37, %v3007_v39  ;;  %v2239_v45 = vpop.f32.mrb[77].mxu1  ;;  %v1015_v43 = vpop.f32.mrb[78].mxu0 }
 0x182   : > { %v838_v47 = vpop.f32.mrb[78].mxu1  ;;  %v3075_v20 = vadd.f32 %v1015_v43, %v869_v35  ;;  %v2274_v42 = vpop.f32.mrb[79].mxu0 }
 0x183   : > { %v871_v52 = vadd.f32 %v838_v47, %v3010_v51  ;;  %v2240_v15 = vpop.f32.mrb[79].mxu1 }
 0x187   : > { %v1020_v54 = vpop.f32.mrb[80].mxu0 }
 0x188   : > { %v843_v56 = vpop.f32.mrb[80].mxu1  ;;  %v3078_v28 = vadd.f32 %v1020_v54, %v870_v41  ;;  %v2277_v55 = vpop.f32.mrb[81].mxu0 }
 0x189   : > { %v872_v46 = vadd.f32 %v843_v56, %v3023_v63  ;;  %v2243_v59 = vpop.f32.mrb[81].mxu1  ;;  %v1023_v21 = vpop.f32.mrb[82].mxu0 }
 0x18a   : > { %v846_v62 = vpop.f32.mrb[82].mxu1  ;;  %v3081_v39 = vadd.f32 %v1023_v21, %v871_v52  ;;  %v2278_v60 = vpop.f32.mrb[83].mxu0 }
 0x18b   : > { %v873_v2 = vadd.f32 %v846_v62, %v3026_v13  ;;  %v2244_v5 = vpop.f32.mrb[83].mxu1 }
 0x18f   : > { %v1028_v8 = vpop.f32.mrb[84].mxu0 }
 0x190   : > { %v851_v10 = vpop.f32.mrb[84].mxu1  ;;  %v3084_v51 = vadd.f32 %v1028_v8, %v872_v46  ;;  %v2281_v12 = vpop.f32.mrb[85].mxu0 }
 0x191   : > { %v874_v53 = vadd.f32 %v851_v10, %v3035_v19  ;;  %v2247_v14 = vpop.f32.mrb[85].mxu1  ;;  %v1031_v33 = vpop.f32.mrb[86].mxu0 }
 0x192   : > { %v854_v16 = vpop.f32.mrb[86].mxu1  ;;  %v3087_v63 = vadd.f32 %v1031_v33, %v873_v2  ;;  %v2282_v17 = vpop.f32.mrb[87].mxu0 }
 0x193   : > { %v875_v57 = vadd.f32 %v854_v16, %v3038_v26  ;;  %v2248_v3 = vpop.f32.mrb[87].mxu1 }
 0x197   : > { %v1036_v38 = vpop.f32.mrb[88].mxu0 }
 0x198   : > { %v3090_v22 = vadd.f32 %v1036_v38, %v874_v53  ;;  %v1156_v13 = vpop.f32.mrb[88].mxu1  ;;  %v2285_v23 = vpop.f32.mrb[89].mxu0 }
 0x199   : > { %v1227_v4 = vadd.f32 %v1156_v13, %v3042_v44  ;;  %v2291_v24 = vpop.f32.mrb[89].mxu1  ;;  %v1039_v9 = vpop.f32.mrb[90].mxu0 }
 0x19a   : > { %v3093_v27 = vadd.f32 %v1039_v9, %v875_v57  ;;  %v1159_v19 = vpop.f32.mrb[90].mxu1  ;;  %v2286_v29 = vpop.f32.mrb[91].mxu0 }
 0x19b   : > { %v1228_v0 = vadd.f32 %v1159_v19, %v3045_v49  ;;  %v2292_v30 = vpop.f32.mrb[91].mxu1 }
 0x19f   : > { %v1341_v1 = vpop.f32.mrb[92].mxu0 }
 0x1a0   : > { %v1164_v31 = vpop.f32.mrb[92].mxu1  ;;  %v3096_v26 = vadd.f32 %v1341_v1, %v1227_v4  ;;  %v2329_v34 = vpop.f32.mrb[93].mxu0 }
 0x1a1   : > { %v1229_v35 = vadd.f32 %v1164_v31, %v3048_v50  ;;  %v2295_v6 = vpop.f32.mrb[93].mxu1  ;;  %v1344_v32 = vpop.f32.mrb[94].mxu0 }
 0x1a2   : > { %v1167_v37 = vpop.f32.mrb[94].mxu1  ;;  %v3099_v44 = vadd.f32 %v1344_v32, %v1228_v0  ;;  %v2330_v40 = vpop.f32.mrb[95].mxu0 }
 0x1a3   : > { %v1230_v41 = vadd.f32 %v1167_v37, %v3051_v58  ;;  %v2296_v45 = vpop.f32.mrb[95].mxu1 }
 0x1a7   : > { %v1349_v43 = vpop.f32.mrb[96].mxu0 }
 0x1a8   : > { %v1172_v47 = vpop.f32.mrb[96].mxu1  ;;  %v3102_v49 = vadd.f32 %v1349_v43, %v1229_v35  ;;  %v2333_v42 = vpop.f32.mrb[97].mxu0 }
 0x1a9   : > { %v1231_v52 = vadd.f32 %v1172_v47, %v3054_v7  ;;  %v2299_v15 = vpop.f32.mrb[97].mxu1  ;;  %v1352_v54 = vpop.f32.mrb[98].mxu0 }
 0x1aa   : > { %v1175_v56 = vpop.f32.mrb[98].mxu1  ;;  %v3105_v50 = vadd.f32 %v1352_v54, %v1230_v41  ;;  %v2334_v55 = vpop.f32.mrb[99].mxu0 }
 0x1ab   : > { %v1232_v46 = vadd.f32 %v1175_v56, %v3057_v18  ;;  %v2300_v59 = vpop.f32.mrb[99].mxu1 }
 0x1af   : > { %v1357_v21 = vpop.f32.mrb[100].mxu0 }
 0x1b0   : > { %v1180_v62 = vpop.f32.mrb[100].mxu1  ;;  %v3108_v58 = vadd.f32 %v1357_v21, %v1231_v52  ;;  %v2337_v60 = vpop.f32.mrb[101].mxu0 }
 0x1b1   : > { %v1233_v2 = vadd.f32 %v1180_v62, %v3060_v25  ;;  %v2303_v5 = vpop.f32.mrb[101].mxu1  ;;  %v1360_v8 = vpop.f32.mrb[102].mxu0 }
 0x1b2   : > { %v1183_v10 = vpop.f32.mrb[102].mxu1  ;;  %v3111_v7 = vadd.f32 %v1360_v8, %v1232_v46  ;;  %v2338_v12 = vpop.f32.mrb[103].mxu0 }
 0x1b3   : > { %v1234_v53 = vadd.f32 %v1183_v10, %v3063_v36  ;;  %v2304_v14 = vpop.f32.mrb[103].mxu1 }
 0x1b7   : > { %v1365_v33 = vpop.f32.mrb[104].mxu0 }
 0x1b8   : > { %v1188_v16 = vpop.f32.mrb[104].mxu1  ;;  %v3114_v18 = vadd.f32 %v1365_v33, %v1233_v2  ;;  %v2341_v17 = vpop.f32.mrb[105].mxu0 }
 0x1b9   : > { %v1235_v57 = vadd.f32 %v1188_v16, %v3066_v48  ;;  %v2307_v3 = vpop.f32.mrb[105].mxu1  ;;  %v1368_v38 = vpop.f32.mrb[106].mxu0 }
 0x1ba   : > { %v1191_v13 = vpop.f32.mrb[106].mxu1  ;;  %v3117_v25 = vadd.f32 %v1368_v38, %v1234_v53  ;;  %v2342_v23 = vpop.f32.mrb[107].mxu0 }
 0x1bb   : > { %v1236_v4 = vadd.f32 %v1191_v13, %v3069_v61  ;;  %v2308_v24 = vpop.f32.mrb[107].mxu1 }
 0x1bf   : > { %v1373_v9 = vpop.f32.mrb[108].mxu0 }
 0x1c0   : > { %v1196_v19 = vpop.f32.mrb[108].mxu1  ;;  %v3120_v36 = vadd.f32 %v1373_v9, %v1235_v57  ;;  %v2345_v29 = vpop.f32.mrb[109].mxu0 }
 0x1c1   : > { %v1237_v0 = vadd.f32 %v1196_v19, %v3072_v11  ;;  %v2311_v30 = vpop.f32.mrb[109].mxu1  ;;  %v1376_v1 = vpop.f32.mrb[110].mxu0 }
 0x1c2   : > { %v1199_v31 = vpop.f32.mrb[110].mxu1  ;;  %v3123_v48 = vadd.f32 %v1376_v1, %v1236_v4  ;;  %v2346_v34 = vpop.f32.mrb[111].mxu0 }
 0x1c3   : > { %v1238_v35 = vadd.f32 %v1199_v31, %v3075_v20  ;;  %v2312_v6 = vpop.f32.mrb[111].mxu1 }
 0x1c7   : > { %v1381_v32 = vpop.f32.mrb[112].mxu0 }
 0x1c8   : > { %v1204_v37 = vpop.f32.mrb[112].mxu1  ;;  %v3126_v61 = vadd.f32 %v1381_v32, %v1237_v0  ;;  %v2349_v40 = vpop.f32.mrb[113].mxu0 }
 0x1c9   : > { %v1239_v41 = vadd.f32 %v1204_v37, %v3078_v28  ;;  %v2315_v45 = vpop.f32.mrb[113].mxu1  ;;  %v1384_v43 = vpop.f32.mrb[114].mxu0 }
 0x1ca   : > { %v1207_v47 = vpop.f32.mrb[114].mxu1  ;;  %v3129_v11 = vadd.f32 %v1384_v43, %v1238_v35  ;;  %v2350_v42 = vpop.f32.mrb[115].mxu0 }
 0x1cb   : > { %v1240_v52 = vadd.f32 %v1207_v47, %v3081_v39  ;;  %v2316_v15 = vpop.f32.mrb[115].mxu1 }
 0x1cf   : > { %v1389_v54 = vpop.f32.mrb[116].mxu0 }
 0x1d0   : > { %v1212_v56 = vpop.f32.mrb[116].mxu1  ;;  %v3132_v20 = vadd.f32 %v1389_v54, %v1239_v41  ;;  %v2353_v55 = vpop.f32.mrb[117].mxu0 }
 0x1d1   : > { %v1241_v46 = vadd.f32 %v1212_v56, %v3084_v51  ;;  %v2319_v59 = vpop.f32.mrb[117].mxu1  ;;  %v1392_v21 = vpop.f32.mrb[118].mxu0 }
 0x1d2   : > { %v1215_v62 = vpop.f32.mrb[118].mxu1  ;;  %v3135_v28 = vadd.f32 %v1392_v21, %v1240_v52  ;;  %v2354_v60 = vpop.f32.mrb[119].mxu0 }
 0x1d3   : > { %v1242_v2 = vadd.f32 %v1215_v62, %v3087_v63  ;;  %v2320_v5 = vpop.f32.mrb[119].mxu1 }
 0x1d7   : > { %v1397_v8 = vpop.f32.mrb[120].mxu0 }
 0x1d8   : > { %v1220_v10 = vpop.f32.mrb[120].mxu1  ;;  %v3138_v39 = vadd.f32 %v1397_v8, %v1241_v46  ;;  %v2357_v12 = vpop.f32.mrb[121].mxu0 }
 0x1d9   : > { %v1243_v53 = vadd.f32 %v1220_v10, %v3090_v22  ;;  %v2323_v14 = vpop.f32.mrb[121].mxu1  ;;  %v1400_v33 = vpop.f32.mrb[122].mxu0 }
 0x1da   : > { %v1223_v16 = vpop.f32.mrb[122].mxu1  ;;  %v3141_v51 = vadd.f32 %v1400_v33, %v1242_v2  ;;  %v2358_v17 = vpop.f32.mrb[123].mxu0 }
 0x1db   : > { %v1244_v57 = vadd.f32 %v1223_v16, %v3093_v27  ;;  %v2324_v3 = vpop.f32.mrb[123].mxu1  ;;  %v3154_v27 = vld [vmem:[%s3236_s2] ss:$0 sm:$0xff] }
 0x1df   : > { %v1405_v38 = vpop.f32.mrb[124].mxu0 }
 0x1e0   : > { %v3144_v63 = vadd.f32 %v1405_v38, %v1243_v53  ;;  %v1525_v13 = vpop.f32.mrb[124].mxu1  ;;  %v2361_v23 = vpop.f32.mrb[125].mxu0 }
 0x1e1   : > { %v1596_v4 = vadd.f32 %v1525_v13, %v3096_v26  ;;  %v2367_v24 = vpop.f32.mrb[125].mxu1  ;;  %v1408_v9 = vpop.f32.mrb[126].mxu0 }
 0x1e2   : > { %v3147_v22 = vadd.f32 %v1408_v9, %v1244_v57  ;;  %v1528_v19 = vpop.f32.mrb[126].mxu1  ;;  %v2362_v29 = vpop.f32.mrb[127].mxu0 }
 0x1e3   : > { %v1597_v0 = vadd.f32 %v1528_v19, %v3099_v44  ;;  %v2368_v30 = vpop.f32.mrb[127].mxu1 }
 0x1e7   : > { %v1706_v1 = vpop.f32.mrb[128].mxu0 }
 0x1e8   : > { %v1533_v31 = vpop.f32.mrb[128].mxu1  ;;  %v1777_v34 = vadd.f32 %v1706_v1, %v1596_v4  ;;  %v2405_v35 = vpop.f32.mrb[129].mxu0 }
 0x1e9   : > { %v1598_v26 = vadd.f32 %v1533_v31, %v3102_v49  ;;  %v2371_v6 = vpop.f32.mrb[129].mxu1  ;;  %v1709_v32 = vpop.f32.mrb[130].mxu0 }
 0x1ea   : > { %v1802_v37 = vadd.f32 %v3154_v27, %v1777_v34  ;;  %v1536_v40 = vpop.f32.mrb[130].mxu1  ;;  %v1778_v41 = vadd.f32 %v1709_v32, %v1597_v0  ;;  %v2406_v44 = vpop.f32.mrb[131].mxu0 }
 0x1eb   : > { %v1599_v45 = vadd.f32 %v1536_v40, %v3105_v50  ;;  %v2372_v43 = vpop.f32.mrb[131].mxu1 }
 0x1ec   : > { %v1820_v47 = vmax.f32 %v1802_v37, 0.0  ;;  %v1803_v49 = vadd.f32 %v3154_v27, %v1778_v41 }
 0x1ee   : > { %1839 = vst.msk [vmem:[%s3161_s6] sm:$0xff] %vm1838_vm3, %v1820_v47  ;;  %v1821_v42 = vmax.f32 %v1803_v49, 0.0 }
 0x1ef   : > { %v1714_v52 = vpop.f32.mrb[132].mxu0 }
 0x1f0   : > { %1840 = vst.msk [vmem:[%s3161_s6 + $0x8] sm:$0xff] %vm1838_vm3, %v1821_v42  ;;  %v1541_v15 = vpop.f32.mrb[132].mxu1  ;;  %v1779_v54 = vadd.f32 %v1714_v52, %v1598_v26  ;;  %v2409_v56 = vpop.f32.mrb[133].mxu0 }
 0x1f1   : > { %v1600_v55 = vadd.f32 %v1541_v15, %v3108_v58  ;;  %v2375_v46 = vpop.f32.mrb[133].mxu1  ;;  %v1717_v59 = vpop.f32.mrb[134].mxu0 }
 0x1f2   : > { %v1804_v50 = vadd.f32 %v3154_v27, %v1779_v54  ;;  %v1544_v21 = vpop.f32.mrb[134].mxu1  ;;  %v1780_v62 = vadd.f32 %v1717_v59, %v1599_v45  ;;  %v2410_v60 = vpop.f32.mrb[135].mxu0 }
 0x1f3   : > { %v1601_v2 = vadd.f32 %v1544_v21, %v3111_v7  ;;  %v2376_v5 = vpop.f32.mrb[135].mxu1 }
 0x1f4   : > { %v1822_v8 = vmax.f32 %v1804_v50, 0.0  ;;  %v1805_v10 = vadd.f32 %v3154_v27, %v1780_v62 }
 0x1f6   : > { %1841 = vst.msk [vmem:[%s3161_s6 + $0x10] sm:$0xff] %vm1838_vm3, %v1822_v8  ;;  %v1823_v12 = vmax.f32 %v1805_v10, 0.0 }
 0x1f7   : > { %v1722_v53 = vpop.f32.mrb[136].mxu0 }
 0x1f8   : > { %1842 = vst.msk [vmem:[%s3161_s6 + $0x18] sm:$0xff] %vm1838_vm3, %v1823_v12  ;;  %v1549_v58 = vpop.f32.mrb[136].mxu1  ;;  %v1781_v14 = vadd.f32 %v1722_v53, %v1600_v55  ;;  %v2413_v33 = vpop.f32.mrb[137].mxu0 }
 0x1f9   : > { %v1602_v16 = vadd.f32 %v1549_v58, %v3114_v18  ;;  %v2379_v17 = vpop.f32.mrb[137].mxu1  ;;  %v1725_v57 = vpop.f32.mrb[138].mxu0 }
 0x1fa   : > { %v1806_v7 = vadd.f32 %v3154_v27, %v1781_v14  ;;  %v1552_v3 = vpop.f32.mrb[138].mxu1  ;;  %v1782_v38 = vadd.f32 %v1725_v57, %v1601_v2  ;;  %v2414_v13 = vpop.f32.mrb[139].mxu0 }
 0x1fb   : > { %v1603_v23 = vadd.f32 %v1552_v3, %v3117_v25  ;;  %v2380_v4 = vpop.f32.mrb[139].mxu1 }
 0x1fc   : > { %v1824_v24 = vmax.f32 %v1806_v7, 0.0  ;;  %v1807_v9 = vadd.f32 %v3154_v27, %v1782_v38 }
 0x1fe   : > { %1843 = vst.msk [vmem:[%s3161_s6 + $0x20] sm:$0xff] %vm1838_vm3, %v1824_v24  ;;  %v1825_v19 = vmax.f32 %v1807_v9, 0.0 }
 0x1ff   : > { %v1730_v29 = vpop.f32.mrb[140].mxu0 }
 0x200   : > { %1844 = vst.msk [vmem:[%s3161_s6 + $0x28] sm:$0xff] %vm1838_vm3, %v1825_v19  ;;  %v1557_v18 = vpop.f32.mrb[140].mxu1  ;;  %v1783_v0 = vadd.f32 %v1730_v29, %v1602_v16  ;;  %v2417_v30 = vpop.f32.mrb[141].mxu0 }
 0x201   : > { %v1604_v1 = vadd.f32 %v1557_v18, %v3120_v36  ;;  %v2383_v31 = vpop.f32.mrb[141].mxu1  ;;  %v1733_v34 = vpop.f32.mrb[142].mxu0 }
 0x202   : > { %v1808_v25 = vadd.f32 %v3154_v27, %v1783_v0  ;;  %v1560_v35 = vpop.f32.mrb[142].mxu1  ;;  %v1784_v26 = vadd.f32 %v1733_v34, %v1603_v23  ;;  %v2418_v6 = vpop.f32.mrb[143].mxu0 }
 0x203   : > { %v1605_v32 = vadd.f32 %v1560_v35, %v3123_v48  ;;  %v2384_v37 = vpop.f32.mrb[143].mxu1 }
 0x204   : > { %v1826_v40 = vmax.f32 %v1808_v25, 0.0  ;;  %v1809_v41 = vadd.f32 %v3154_v27, %v1784_v26 }
 0x206   : > { %1845 = vst.msk [vmem:[%s3161_s6 + $0x30] sm:$0xff] %vm1838_vm3, %v1826_v40  ;;  %v1827_v44 = vmax.f32 %v1809_v41, 0.0 }
 0x207   : > { %v1738_v45 = vpop.f32.mrb[144].mxu0 }
 0x208   : > { %1846 = vst.msk [vmem:[%s3161_s6 + $0x38] sm:$0xff] %vm1838_vm3, %v1827_v44  ;;  %v1565_v36 = vpop.f32.mrb[144].mxu1  ;;  %v1785_v43 = vadd.f32 %v1738_v45, %v1604_v1  ;;  %v2421_v47 = vpop.f32.mrb[145].mxu0 }
 0x209   : > { %v1606_v49 = vadd.f32 %v1565_v36, %v3126_v61  ;;  %v2387_v42 = vpop.f32.mrb[145].mxu1  ;;  %v1741_v52 = vpop.f32.mrb[146].mxu0 }
 0x20a   : > { %v1810_v48 = vadd.f32 %v3154_v27, %v1785_v43  ;;  %v1568_v15 = vpop.f32.mrb[146].mxu1  ;;  %v1786_v54 = vadd.f32 %v1741_v52, %v1605_v32  ;;  %v2422_v56 = vpop.f32.mrb[147].mxu0 }
 0x20b   : > { %v1607_v55 = vadd.f32 %v1568_v15, %v3129_v11  ;;  %v2388_v46 = vpop.f32.mrb[147].mxu1 }
 0x20c   : > { %v1828_v59 = vmax.f32 %v1810_v48, 0.0  ;;  %v1811_v50 = vadd.f32 %v3154_v27, %v1786_v54 }
 0x20e   : > { %1847 = vst.msk [vmem:[%s3161_s6 + $0x40] sm:$0xff] %vm1838_vm3, %v1828_v59  ;;  %v1829_v21 = vmax.f32 %v1811_v50, 0.0 }
 0x20f   : > { %v1746_v62 = vpop.f32.mrb[148].mxu0 }
 0x210   : > { %1848 = vst.msk [vmem:[%s3161_s6 + $0x48] sm:$0xff] %vm1838_vm3, %v1829_v21  ;;  %v1573_v61 = vpop.f32.mrb[148].mxu1  ;;  %v1787_v60 = vadd.f32 %v1746_v62, %v1606_v49  ;;  %v2425_v2 = vpop.f32.mrb[149].mxu0 }
 0x211   : > { %v1608_v5 = vadd.f32 %v1573_v61, %v3132_v20  ;;  %v2391_v8 = vpop.f32.mrb[149].mxu1  ;;  %v1749_v10 = vpop.f32.mrb[150].mxu0 }
 0x212   : > { %v1812_v11 = vadd.f32 %v3154_v27, %v1787_v60  ;;  %v1576_v12 = vpop.f32.mrb[150].mxu1  ;;  %v1788_v53 = vadd.f32 %v1749_v10, %v1607_v55  ;;  %v2426_v58 = vpop.f32.mrb[151].mxu0 }
 0x213   : > { %v1609_v14 = vadd.f32 %v1576_v12, %v3135_v28  ;;  %v2392_v33 = vpop.f32.mrb[151].mxu1 }
 0x214   : > { %v1830_v16 = vmax.f32 %v1812_v11, 0.0  ;;  %v1813_v17 = vadd.f32 %v3154_v27, %v1788_v53 }
 0x216   : > { %1849 = vst.msk [vmem:[%s3161_s6 + $0x50] sm:$0xff] %vm1838_vm3, %v1830_v16  ;;  %v1831_v57 = vmax.f32 %v1813_v17, 0.0 }
 0x217   : > { %v1754_v7 = vpop.f32.mrb[152].mxu0 }
 0x218   : > { %1850 = vst.msk [vmem:[%s3161_s6 + $0x58] sm:$0xff] %vm1838_vm3, %v1831_v57  ;;  %v1581_v20 = vpop.f32.mrb[152].mxu1  ;;  %v1789_v3 = vadd.f32 %v1754_v7, %v1608_v5  ;;  %v2429_v38 = vpop.f32.mrb[153].mxu0 }
 0x219   : > { %v1610_v13 = vadd.f32 %v1581_v20, %v3138_v39  ;;  %v2395_v23 = vpop.f32.mrb[153].mxu1  ;;  %v1757_v4 = vpop.f32.mrb[154].mxu0 }
 0x21a   : > { %v1814_v28 = vadd.f32 %v3154_v27, %v1789_v3  ;;  %v1584_v24 = vpop.f32.mrb[154].mxu1  ;;  %v1790_v9 = vadd.f32 %v1757_v4, %v1609_v14  ;;  %v2430_v19 = vpop.f32.mrb[155].mxu0 }
 0x21b   : > { %v1611_v29 = vadd.f32 %v1584_v24, %v3141_v51  ;;  %v2396_v18 = vpop.f32.mrb[155].mxu1 }
 0x21c   : > { %v1832_v0 = vmax.f32 %v1814_v28, 0.0  ;;  %v1815_v30 = vadd.f32 %v3154_v27, %v1790_v9 }
 0x21e   : > { %1851 = vst.msk [vmem:[%s3161_s6 + $0x60] sm:$0xff] %vm1838_vm3, %v1832_v0  ;;  %v1833_v1 = vmax.f32 %v1815_v30, 0.0 }
 0x21f   : > { %v1762_v31 = vpop.f32.mrb[156].mxu0 }
 0x220   : > { %1852 = vst.msk [vmem:[%s3161_s6 + $0x68] sm:$0xff] %vm1838_vm3, %v1833_v1  ;;  %v1589_v39 = vpop.f32.mrb[156].mxu1  ;;  %v1791_v34 = vadd.f32 %v1762_v31, %v1610_v13  ;;  %v2433_v25 = vpop.f32.mrb[157].mxu0 }
 0x221   : > { %v1612_v35 = vadd.f32 %v1589_v39, %v3144_v63  ;;  %v2399_v26 = vpop.f32.mrb[157].mxu1  ;;  %v1765_v6 = vpop.f32.mrb[158].mxu0 }
 0x222   : > { %v1816_v51 = vadd.f32 %v3154_v27, %v1791_v34  ;;  %v1592_v32 = vpop.f32.mrb[158].mxu1  ;;  %v1792_v37 = vadd.f32 %v1765_v6, %v1611_v29  ;;  %v2434_v40 = vpop.f32.mrb[159].mxu0 }
 0x223   : > { %v1613_v41 = vadd.f32 %v1592_v32, %v3147_v22  ;;  %v2400_v44 = vpop.f32.mrb[159].mxu1 }
 0x224   : > { %v1834_v45 = vmax.f32 %v1816_v51, 0.0  ;;  %v1817_v36 = vadd.f32 %v3154_v27, %v1792_v37 }
 0x226   : > { %1853 = vst.msk [vmem:[%s3161_s6 + $0x70] sm:$0xff] %vm1838_vm3, %v1834_v45  ;;  %v1835_v43 = vmax.f32 %v1817_v36, 0.0 }
 0x227   : > { %v1770_v47 = vpop.f32.mrb[160].mxu0 }
 0x228   : > { %1854 = vst.msk [vmem:[%s3161_s6 + $0x78] sm:$0xff] %vm1838_vm3, %v1835_v43  ;;  %v1793_v63 = vadd.f32 %v1770_v47, %v1612_v35  ;;  %v2437_v49 = vpop.f32.mrb[161].mxu0 }
 0x229   : > { %v1773_v42 = vpop.f32.mrb[162].mxu0 }
 0x22a   : > { %v1818_v52 = vadd.f32 %v3154_v27, %v1793_v63  ;;  %v1794_v48 = vadd.f32 %v1773_v42, %v1613_v41  ;;  %v2438_v15 = vpop.f32.mrb[163].mxu0 }
 0x22c   : > { %v1836_v22 = vmax.f32 %v1818_v52, 0.0  ;;  %v1819_v54 = vadd.f32 %v3154_v27, %v1794_v48 }
 0x22e   : > { %1855 = vst.msk [vmem:[%s3161_s6 + $0x80] sm:$0xff] %vm1838_vm3, %v1836_v22  ;;  %v1837_v56 = vmax.f32 %v1819_v54, 0.0 }
 0x230   : > { %1856 = vst.msk [vmem:[%s3161_s6 + $0x88] sm:$0xff] %vm1838_vm3, %v1837_v56 }
 0x231 PF: > { %s13_s12 = sadd.s32 1, %s2464_s12  }
 0x232   : > { %p10_p4 = scmp.ge.s32.totalorder %s13_s12, 4  }
 0x234   :  { %12 = sbr.rel (!%p10_p4) target bundleno = 1 (0x1), region = 62 }

// kernel: phoneme_recognition_forward.8
= control target key start
LH: loop header
LB: loop body
LE: loop exit
PB: predicated region body
PF: predicated region fallthrough
CT: control target
= control target key end

     0   :  { %s2843_s15 = smov 0   ;;  %s3671_s0 = inlined_call_operand.vmem [shape: f32[2,98,2], index: 0, kind: input, shape index: {}]   ;;  %s3672_s1 = inlined_call_operand.vmem [shape: f32[2,98,2], index: 1, kind: input, shape index: {}]   ;;  %s3673_s2 = inlined_call_operand.vmem [shape: bf16[18,2], index: 2, kind: input, shape index: {}]   ;;  %s3674_s3 = inlined_call_operand.vmem [shape: f32[1,2], index: 3, kind: input, shape index: {}]   ;;  %s3675_s4 = inlined_call_operand.vmem [shape: f32[2,72,2], index: 4, kind: output, shape index: {}]  }
   0x1 LB: > { %s2179_s16 = sadd.s32 4294967295, %s2814_s15   ;;  %p2183_p0 = scmp.ge.s32.totalorder %s2814_s15, 1  ;;  %s2814_s15 = sphi %s2843_s15, %s14_s15  }
   0x2   : > { %p172_p1 = scmp.lt.s32.totalorder %s2814_s15, 3 }
   0x4   : > { %p173_p2 = pnand %p2183_p0, %p172_p1 }
   0x5   : > { %v2802_v0 = vld [vmem:[%s3673_s2] ss:$0 sps:$4 sm:$0x22] (!%p173_p2)   ;;  %v2816_v1 = vmov (!%p173_p2), 0.0   ;;  %vm269_vm0 = vcmask (!%p173_p2), 1040384   ;;  %p203_p3 = scmp.lt.s32.totalorder (!%p173_p2), %s2179_s16, 1 }
   0x6   : > { %176 = sbr.rel (%p173_p2) target bundleno = 595 (0x253), region = 36  ;;  %2394 = vmatprep.subr.bf16.mxu0 (!%p173_p2), %v2816_v1  ;;  %2416 = vmatprep.subr.bf16.mxu1 (!%p173_p2), %v2816_v1  ;;  %v233_v2 = vld [vmem:[%s3673_s2] sm:$0x1] (!%p173_p2)  ;;  %v252_v3 = vrot.slane (!%p173_p2), %v2802_v0, 1  ;;  %vm2817_vm1 = vmmov (!%p173_p2), 0   ;;  %vm253_vm2 = vcmask (!%p173_p2), 15360  }
   0x7   : > { %v2860_v4 = vsel (!%p173_p2), %vm269_vm0, %v233_v2, 0  ;;  %2396 = vmatprep.mubr.msk.bf16.mxu0 (!%p173_p2), %vm2817_vm1, %v2816_v1  ;;  %2418 = vmatprep.mubr.msk.bf16.mxu1 (!%p173_p2), %vm2817_vm1, %v2816_v1  ;;  %v2803_v5 = vld [vmem:[%s3673_s2] ss:$0 sps:$4 sm:$0x44] (!%p173_p2)   ;;  %v685_v44 = vld [vmem:[%s3673_s2 + $0x4] sm:$0x1] (!%p173_p2) }
   0x8   : > { %2417 = vmatpush3.bf16.msra.mxu1 (!%p173_p2), %v2860_v4  ;;  %v2873_v6 = vsel (!%p173_p2), %vm269_vm0, %v252_v3, 0  ;;  %v2804_v7 = vld [vmem:[%s3673_s2] ss:$0 sps:$4 sm:$0x88] (!%p173_p2)   ;;  %v453_v8 = vrot.slane (!%p173_p2), %v2803_v5, 2  ;;  %v2977_v48 = vsel (!%p173_p2), %vm269_vm0, %v685_v44, 0 }
   0x9   : > { %2460 = vmatprep.subr.bf16.mxu1 (!%p173_p2), %v2816_v1  ;;  %2395 = vmatpush3.bf16.msra.mxu0 (!%p173_p2), %v2873_v6  ;;  %v571_v9 = vrot.slane (!%p173_p2), %v2804_v7, 3  ;;  %v2805_v40 = vld [vmem:[%s3673_s2 + $0x4] ss:$0 sps:$4 sm:$0x22] (!%p173_p2)  }
   0xa   : > { %2438 = vmatprep.subr.bf16.mxu0 (!%p173_p2), %v2816_v1  ;;  %v2899_v15 = vsel (!%p173_p2), %vm269_vm0, %v453_v8, 0  ;;  %v803_v45 = vrot.slane (!%p173_p2), %v2805_v40, 1  ;;  %v2806_v2 = vld [vmem:[%s3673_s2 + $0x4] ss:$0 sps:$4 sm:$0x44] (!%p173_p2)  }
   0xb   : > { %v2902_v17 = vsel (!%p173_p2), %vm269_vm0, %v571_v9, 0  ;;  %v2807_v3 = vld [vmem:[%s3673_s2 + $0x4] ss:$0 sps:$4 sm:$0x88] (!%p173_p2)  }
   0xc   : > { %v2980_v49 = vsel (!%p173_p2), %vm269_vm0, %v803_v45, 0 }
   0xd   : > { %s3677_s16 = smov (!%p203_p3, %s2179_s16), 1 }
   0xe   : > { %s2790_s25 = smul.u32 104, %s3677_s16 }
   0xf   : > { %s2791_s20 = smul.u32 72, %s3677_s16 }
  0x10   : > { %s2885_s28 = scalar_lea.vmem %s3672_s1, %s2790_s25  ;;  %s2890_s5 = scalar_lea.vmem %s3671_s0, %s2790_s25 }
  0x11   : > { %v234_v10 = vld [vmem:[%s2885_s28] sm:$0xff]  ;;  %v235_v11 = vld [vmem:[%s2885_s28 + $0x8] sm:$0xff]  ;;  %v236_v18 = vld [vmem:[%s2885_s28 + $0x10] sm:$0xff]  ;;  %s3620_s23 = scalar_lea.vmem %s3675_s4, %s2791_s20 }
  0x12   : > { %v219_v12 = vld [vmem:[%s2890_s5] sm:$0xff]  ;;  %v2895_v13 = vpack.c.bf16 %v235_v11, %v234_v10  ;;  %v220_v14 = vld [vmem:[%s2890_s5 + $0x8] sm:$0xff]  ;;  %v237_v19 = vld [vmem:[%s2885_s28 + $0x18] sm:$0xff]  ;;  %v921_v10 = vrot.slane %v2806_v2, 2  ;;  %v1039_v11 = vrot.slane %v2807_v3, 3 }
  0x13   : > { %v228_v16 = vpack.c.bf16 %v220_v14, %v219_v12  ;;  %v221_v20 = vld [vmem:[%s2890_s5 + $0x10] sm:$0xff]  ;;  %v222_v21 = vld [vmem:[%s2890_s5 + $0x18] sm:$0xff]  ;;  %v2918_v22 = vpack.c.bf16 %v237_v19, %v236_v18  ;;  %v238_v24 = vld [vmem:[%s2885_s28 + $0x20] sm:$0xff] }
  0x14   : > { %2397 = vmatmul.mubr.msk.bf16.vlgmr.msra.gmra.mrb[0].mxu0 %vm253_vm2, %v2895_v13  ;;  %v229_v23 = vpack.c.bf16 %v222_v21, %v221_v20  ;;  %v239_v25 = vld [vmem:[%s2885_s28 + $0x28] sm:$0xff]  ;;  %v223_v26 = vld [vmem:[%s2890_s5 + $0x20] sm:$0xff]  ;;  %v240_v30 = vld [vmem:[%s2885_s28 + $0x30] sm:$0xff]  ;;  %v3060_v18 = vsel %vm269_vm0, %v1039_v11, 0 }
  0x15   : > { %2419 = vmatmul.mubr.msk.bf16.vlgmr.msra.gmra.mrb[0].mxu1 %vm253_vm2, %v228_v16  ;;  %2439 = vmatpush3.bf16.msra.mxu0 %v2899_v15  ;;  %v224_v27 = vld [vmem:[%s2890_s5 + $0x28] sm:$0xff]  ;;  %v2932_v28 = vpack.c.bf16 %v239_v25, %v238_v24  ;;  %v241_v31 = vld [vmem:[%s2885_s28 + $0x38] sm:$0xff]  ;;  %v225_v32 = vld [vmem:[%s2890_s5 + $0x30] sm:$0xff]  ;;  %v3057_v16 = vsel %vm269_vm0, %v921_v10, 0 }
  0x16   : > { %2461 = vmatpush3.bf16.msra.mxu1 %v2902_v17  ;;  %2400 = vmatprep.mubr.msk.bf16.mxu0 %vm2817_vm1, %v2816_v1  ;;  %v230_v29 = vpack.c.bf16 %v224_v27, %v223_v26  ;;  %v226_v33 = vld [vmem:[%s2890_s5 + $0x38] sm:$0xff]  ;;  %v2945_v34 = vpack.c.bf16 %v241_v31, %v240_v30  ;;  %v242_v36 = vld [vmem:[%s2885_s28 + $0x40] sm:$0xff]  ;;  %v436_v42 = vld [vmem:[%s2890_s5 + $0x9] sm:$0xff] }
  0x17   : > { %2422 = vmatprep.mubr.msk.bf16.mxu1 %vm2817_vm1, %v2816_v1  ;;  %2482 = vmatprep.subr.bf16.mxu0 %v2816_v1  ;;  %v231_v35 = vpack.c.bf16 %v226_v33, %v225_v32  ;;  %v227_v37 = vld [vmem:[%s2890_s5 + $0x40] sm:$0xff]  ;;  %v2956_v38 = vpack.c.bf16 %v242_v36, %v242_v36  ;;  %v554_v43 = vld [vmem:[%s2890_s5 + $0x11] sm:$0xff]  ;;  %v440_v54 = vld [vmem:[%s2890_s5 + $0x29] sm:$0xff] }
  0x18   : > { %2504 = vmatprep.subr.bf16.mxu1 %v2816_v1  ;;  %v232_v39 = vpack.c.bf16 %v227_v37, %v227_v37  ;;  %v435_v41 = vld [vmem:[%s2890_s5 + $0x1] sm:$0xff]  ;;  %v562_v47 = vpack.c.bf16 %v554_v43, %v436_v42  ;;  %v438_v50 = vld [vmem:[%s2890_s5 + $0x19] sm:$0xff]  ;;  %v558_v55 = vld [vmem:[%s2890_s5 + $0x31] sm:$0xff] }
  0x19   : > { %v2974_v46 = vpack.c.bf16 %v436_v42, %v435_v41  ;;  %v556_v51 = vld [vmem:[%s2890_s5 + $0x21] sm:$0xff]  ;;  %v2994_v52 = vpack.c.bf16 %v438_v50, %v554_v43  ;;  %v564_v57 = vpack.c.bf16 %v558_v55, %v440_v54  ;;  %v442_v58 = vld [vmem:[%s2890_s5 + $0x39] sm:$0xff]  ;;  %v561_v62 = vld [vmem:[%s2890_s5 + $0x49] sm:$0xff] }
  0x1a   : > { %v563_v53 = vpack.c.bf16 %v556_v51, %v438_v50  ;;  %v3006_v56 = vpack.c.bf16 %v440_v54, %v556_v51  ;;  %v560_v59 = vld [vmem:[%s2890_s5 + $0x41] sm:$0xff]  ;;  %v3017_v60 = vpack.c.bf16 %v442_v58, %v558_v55  ;;  %v566_v0 = vpack.c.bf16 %v561_v62, %v561_v62  ;;  %v3041_v5 = vld [vmem:[%s2885_s28 + $0x9] sm:$0xff]  ;;  %v3044_v7 = vld [vmem:[%s2885_s28 + $0x11] sm:$0xff] }
  0x1b   : > { %v565_v61 = vpack.c.bf16 %v560_v59, %v442_v58  ;;  %v3027_v63 = vpack.c.bf16 %v560_v59, %v560_v59  ;;  %v785_v8 = vld [vmem:[%s2890_s5 + $0xa] sm:$0xff]  ;;  %v786_v9 = vld [vmem:[%s2890_s5 + $0x12] sm:$0xff]  ;;  %v3052_v12 = vpack.c.bf16 %v3044_v7, %v3041_v5  ;;  %v3071_v20 = vld [vmem:[%s2885_s28 + $0x21] sm:$0xff] }
  0x1c   : > { %2401 = vmatmul.mubr.msk.bf16.gmra.mrb[4].mxu0 %vm253_vm2, %v2918_v22  ;;  %v3054_v14 = vpack.c.bf16 %v786_v9, %v785_v8  ;;  %v3068_v19 = vld [vmem:[%s2885_s28 + $0x19] sm:$0xff]  ;;  %v3095_v26 = vld [vmem:[%s2885_s28 + $0x29] sm:$0xff]  ;;  %v3098_v27 = vld [vmem:[%s2885_s28 + $0x31] sm:$0xff] }
  0x1d   : > { %2423 = vmatmul.mubr.msk.bf16.gmra.mrb[4].mxu1 %vm253_vm2, %v229_v23  ;;  %2404 = vmatprep.mubr.msk.bf16.mxu0 %vm2817_vm1, %v2816_v1  ;;  %v787_v21 = vld [vmem:[%s2890_s5 + $0x1a] sm:$0xff]  ;;  %v788_v23 = vld [vmem:[%s2890_s5 + $0x22] sm:$0xff]  ;;  %v3083_v24 = vpack.c.bf16 %v3071_v20, %v3068_v19  ;;  %v790_v30 = vld [vmem:[%s2890_s5 + $0x32] sm:$0xff]  ;;  %v3106_v31 = vpack.c.bf16 %v3098_v27, %v3095_v26 }
  0x1e   : > { %2426 = vmatprep.mubr.msk.bf16.mxu1 %vm2817_vm1, %v2816_v1  ;;  %v3086_v25 = vpack.c.bf16 %v788_v23, %v787_v21  ;;  %v3117_v33 = vld [vmem:[%s2885_s28 + $0x39] sm:$0xff]  ;;  %v792_v37 = vld [vmem:[%s2890_s5 + $0x42] sm:$0xff]  ;;  %v793_v42 = vld [vmem:[%s2890_s5 + $0x4a] sm:$0xff]  ;;  %v912_v51 = vpack.c.bf16 %v787_v21, %v786_v9 }
  0x1f   : > { %v791_v36 = vld [vmem:[%s2890_s5 + $0x3a] sm:$0xff]  ;;  %v679_v41 = vld [vmem:[%s2885_s28 + $0x49] sm:$0xff]  ;;  %v3144_v44 = vpack.c.bf16 %v793_v42, %v793_v42  ;;  %v3155_v45 = vld [vmem:[%s2885_s28 + $0x12] sm:$0xff]  ;;  %v915_v8 = vpack.c.bf16 %v793_v42, %v792_v37 }
  0x20   : > { %v3130_v40 = vpack.c.bf16 %v792_v37, %v791_v36  ;;  %v3142_v43 = vpack.c.bf16 %v679_v41, %v679_v41  ;;  %v1153_v50 = vld [vmem:[%s3673_s2 + $0x8] sm:$0x1]  ;;  %v3199_v59 = vld [vmem:[%s2885_s28 + $0x32] sm:$0xff]  ;;  %v914_v62 = vpack.c.bf16 %v791_v36, %v790_v30  ;;  %v3219_v3 = vld [vmem:[%s2885_s28 + $0x4a] sm:$0xff] }
  0x21   : > { %v3168_v54 = vsel %vm269_vm0, %v1153_v50, 0  ;;  %v3178_v55 = vld [vmem:[%s2885_s28 + $0x22] sm:$0xff]  ;;  %v911_v10 = vld [vmem:[%s2890_s5 + $0x52] sm:$0xff] }
  0x22   : > { %v3216_v2 = vld [vmem:[%s2885_s28 + $0x42] sm:$0xff]  ;;  %v1029_v11 = vld [vmem:[%s2885_s28 + $0x52] sm:$0xff]  ;;  %v916_v21 = vpack.c.bf16 %v911_v10, %v911_v10 }
  0x23   : > { %v3223_v9 = vpack.c.bf16 %v3219_v3, %v3216_v2  ;;  %v1141_v37 = vld [vmem:[%s2890_s5 + $0x23] sm:$0xff]  ;;  %v1142_v41 = vld [vmem:[%s2890_s5 + $0x2b] sm:$0xff] }
  0x24   : > { %2405 = vmatmul.mubr.msk.bf16.gmra.mrb[8].mxu0 %vm253_vm2, %v2932_v28  ;;  %v3260_v42 = vpack.c.bf16 %v1142_v41, %v1141_v37  ;;  %v1146_v50 = vld [vmem:[%s2890_s5 + $0x4b] sm:$0xff] }
  0x25   : > { %2427 = vmatmul.mubr.msk.bf16.gmra.mrb[8].mxu1 %vm253_vm2, %v230_v29  ;;  %2408 = vmatprep.mubr.msk.bf16.mxu0 %vm2817_vm1, %v2816_v1  ;;  %v789_v29 = vld [vmem:[%s2890_s5 + $0x2a] sm:$0xff] }
  0x26   : > { %2430 = vmatprep.mubr.msk.bf16.mxu1 %vm2817_vm1, %v2816_v1  ;;  %v3108_v32 = vpack.c.bf16 %v790_v30, %v789_v29  ;;  %v913_v58 = vpack.c.bf16 %v789_v29, %v788_v23  ;;  %v3234_v23 = vpack.c.bf16 %v1029_v11, %v1029_v11  ;;  %v1139_v29 = vld [vmem:[%s2890_s5 + $0x13] sm:$0xff]  ;;  %v1140_v30 = vld [vmem:[%s2890_s5 + $0x1b] sm:$0xff] }
  0x27   : > { %v3245_v36 = vpack.c.bf16 %v1140_v30, %v1139_v29 }
  0x2c   : > { %2409 = vmatmul.mubr.msk.bf16.gmra.mrb[12].mxu0 %vm253_vm2, %v2945_v34 }
  0x2d   : > { %2431 = vmatmul.mubr.msk.bf16.gmra.mrb[12].mxu1 %vm253_vm2, %v231_v35  ;;  %2412 = vmatprep.mubr.msk.bf16.mxu0 %vm2817_vm1, %v2816_v1  ;;  %v3120_v35 = vld [vmem:[%s2885_s28 + $0x41] sm:$0xff] }
  0x2e   : > { %2434 = vmatprep.mubr.msk.bf16.mxu1 %vm2817_vm1, %v2816_v1 }
  0x34   : > { %2413 = vmatmul.mubr.msk.bf16.gmra.mrb[16].mxu0 %vm253_vm2, %v2956_v38 }
  0x35   : > { %2435 = vmatmul.mubr.msk.bf16.gmra.mrb[16].mxu1 %vm253_vm2, %v232_v39  ;;  %2440 = vmatprep.mubr.msk.bf16.mxu0 %vm2817_vm1, %v2816_v1  ;;  %v3128_v39 = vpack.c.bf16 %v3120_v35, %v3117_v33 }
  0x36   : > { %2462 = vmatprep.mubr.msk.bf16.mxu1 %vm2817_vm1, %v2816_v1 }
  0x3c   : > { %2441 = vmatmul.mubr.msk.bf16.vlgmr.msra.gmra.mrb[20].mxu0 %vm253_vm2, %v2974_v46 }
  0x3d   : > { %2463 = vmatmul.mubr.msk.bf16.vlgmr.msra.gmra.mrb[20].mxu1 %vm253_vm2, %v562_v47  ;;  %2483 = vmatpush3.bf16.msra.mxu0 %v2977_v48  ;;  %v3158_v47 = vld [vmem:[%s2885_s28 + $0x1a] sm:$0xff] }
  0x3e   : > { %2505 = vmatpush3.bf16.msra.mxu1 %v2980_v49  ;;  %2444 = vmatprep.mubr.msk.bf16.mxu0 %vm2817_vm1, %v2816_v1 }
  0x3f   : > { %2466 = vmatprep.mubr.msk.bf16.mxu1 %vm2817_vm1, %v2816_v1  ;;  %2526 = vmatprep.subr.bf16.mxu0 %v2816_v1 }
  0x40   : > { %2548 = vmatprep.subr.bf16.mxu1 %v2816_v1 }
  0x44   : > { %2445 = vmatmul.mubr.msk.bf16.gmra.mrb[24].mxu0 %vm253_vm2, %v2994_v52 }
  0x45   : > { %2467 = vmatmul.mubr.msk.bf16.gmra.mrb[24].mxu1 %vm253_vm2, %v563_v53  ;;  %2448 = vmatprep.mubr.msk.bf16.mxu0 %vm2817_vm1, %v2816_v1  ;;  %v3165_v53 = vpack.c.bf16 %v3158_v47, %v3155_v45 }
  0x46   : > { %2470 = vmatprep.mubr.msk.bf16.mxu1 %vm2817_vm1, %v2816_v1 }
  0x4c   : > { %2449 = vmatmul.mubr.msk.bf16.gmra.mrb[28].mxu0 %vm253_vm2, %v3006_v56 }
  0x4d   : > { %2471 = vmatmul.mubr.msk.bf16.gmra.mrb[28].mxu1 %vm253_vm2, %v564_v57  ;;  %2452 = vmatprep.mubr.msk.bf16.mxu0 %vm2817_vm1, %v2816_v1  ;;  %v3181_v57 = vld [vmem:[%s2885_s28 + $0x2a] sm:$0xff] }
  0x4e   : > { %2474 = vmatprep.mubr.msk.bf16.mxu1 %vm2817_vm1, %v2816_v1 }
  0x54   : > { %2453 = vmatmul.mubr.msk.bf16.gmra.mrb[32].mxu0 %vm253_vm2, %v3017_v60 }
  0x55   : > { %2475 = vmatmul.mubr.msk.bf16.gmra.mrb[32].mxu1 %vm253_vm2, %v565_v61  ;;  %2456 = vmatprep.mubr.msk.bf16.mxu0 %vm2817_vm1, %v2816_v1  ;;  %v3202_v61 = vld [vmem:[%s2885_s28 + $0x3a] sm:$0xff] }
  0x56   : > { %2478 = vmatprep.mubr.msk.bf16.mxu1 %vm2817_vm1, %v2816_v1 }
  0x5c   : > { %2457 = vmatmul.mubr.msk.bf16.gmra.mrb[36].mxu0 %vm253_vm2, %v3027_v63 }
  0x5d   : > { %2479 = vmatmul.mubr.msk.bf16.gmra.mrb[36].mxu1 %vm253_vm2, %v566_v0  ;;  %2484 = vmatprep.mubr.msk.bf16.mxu0 %vm2817_vm1, %v2816_v1  ;;  %v3206_v0 = vpack.c.bf16 %v3202_v61, %v3199_v59 }
  0x5e   : > { %2506 = vmatprep.mubr.msk.bf16.mxu1 %vm2817_vm1, %v2816_v1 }
  0x64   : > { %2485 = vmatmul.mubr.msk.bf16.vlgmr.msra.gmra.mrb[40].mxu0 %vm253_vm2, %v3052_v12 }
  0x65   : > { %2507 = vmatmul.mubr.msk.bf16.vlgmr.msra.gmra.mrb[40].mxu1 %vm253_vm2, %v3054_v14  ;;  %2527 = vmatpush3.bf16.msra.mxu0 %v3057_v16 }
  0x66   : > { %2549 = vmatpush3.bf16.msra.mxu1 %v3060_v18  ;;  %2488 = vmatprep.mubr.msk.bf16.mxu0 %vm2817_vm1, %v2816_v1 }
  0x67   : > { %2510 = vmatprep.mubr.msk.bf16.mxu1 %vm2817_vm1, %v2816_v1  ;;  %2570 = vmatprep.subr.bf16.mxu0 %v2816_v1 }
  0x68   : > { %2592 = vmatprep.subr.bf16.mxu1 %v2816_v1 }
  0x6c   : > { %2489 = vmatmul.mubr.msk.bf16.gmra.mrb[44].mxu0 %vm253_vm2, %v3083_v24 }
  0x6d   : > { %2511 = vmatmul.mubr.msk.bf16.gmra.mrb[44].mxu1 %vm253_vm2, %v3086_v25  ;;  %2492 = vmatprep.mubr.msk.bf16.mxu0 %vm2817_vm1, %v2816_v1 }
  0x6e   : > { %2514 = vmatprep.mubr.msk.bf16.mxu1 %vm2817_vm1, %v2816_v1 }
  0x74   : > { %2493 = vmatmul.mubr.msk.bf16.gmra.mrb[48].mxu0 %vm253_vm2, %v3106_v31 }
  0x75   : > { %2515 = vmatmul.mubr.msk.bf16.gmra.mrb[48].mxu1 %vm253_vm2, %v3108_v32  ;;  %2496 = vmatprep.mubr.msk.bf16.mxu0 %vm2817_vm1, %v2816_v1 }
  0x76   : > { %2518 = vmatprep.mubr.msk.bf16.mxu1 %vm2817_vm1, %v2816_v1 }
  0x7c   : > { %2497 = vmatmul.mubr.msk.bf16.gmra.mrb[52].mxu0 %vm253_vm2, %v3128_v39 }
  0x7d   : > { %2519 = vmatmul.mubr.msk.bf16.gmra.mrb[52].mxu1 %vm253_vm2, %v3130_v40  ;;  %2500 = vmatprep.mubr.msk.bf16.mxu0 %vm2817_vm1, %v2816_v1 }
  0x7e   : > { %2522 = vmatprep.mubr.msk.bf16.mxu1 %vm2817_vm1, %v2816_v1 }
  0x84   : > { %2501 = vmatmul.mubr.msk.bf16.gmra.mrb[56].mxu0 %vm253_vm2, %v3142_v43 }
  0x85   : > { %2523 = vmatmul.mubr.msk.bf16.gmra.mrb[56].mxu1 %vm253_vm2, %v3144_v44  ;;  %2528 = vmatprep.mubr.msk.bf16.mxu0 %vm2817_vm1, %v2816_v1 }
  0x86   : > { %2550 = vmatprep.mubr.msk.bf16.mxu1 %vm2817_vm1, %v2816_v1 }
  0x8c   : > { %2529 = vmatmul.mubr.msk.bf16.vlgmr.msra.gmra.mrb[60].mxu0 %vm253_vm2, %v912_v51 }
  0x8d   : > { %2551 = vmatmul.mubr.msk.bf16.vlgmr.msra.gmra.mrb[60].mxu1 %vm253_vm2, %v3165_v53  ;;  %2571 = vmatpush3.bf16.msra.mxu0 %v3168_v54 }
  0x8e   : > { %2593 = vmatpush3.bf16.msra.mxu1 %v2873_v6  ;;  %2532 = vmatprep.mubr.msk.bf16.mxu0 %vm2817_vm1, %v2816_v1  ;;  %v3189_v6 = vpack.c.bf16 %v3181_v57, %v3178_v55 }
  0x8f   : > { %2554 = vmatprep.mubr.msk.bf16.mxu1 %vm2817_vm1, %v2816_v1  ;;  %2614 = vmatprep.subr.bf16.mxu0 %v2816_v1 }
  0x90   : > { %2636 = vmatprep.subr.bf16.mxu1 %v2816_v1 }
  0x94   : > { %2533 = vmatmul.mubr.msk.bf16.gmra.mrb[64].mxu0 %vm253_vm2, %v913_v58 }
  0x95   : > { %2555 = vmatmul.mubr.msk.bf16.gmra.mrb[64].mxu1 %vm253_vm2, %v3189_v6  ;;  %2536 = vmatprep.mubr.msk.bf16.mxu0 %vm2817_vm1, %v2816_v1 }
  0x96   : > { %2558 = vmatprep.mubr.msk.bf16.mxu1 %vm2817_vm1, %v2816_v1 }
  0x9c   : > { %2537 = vmatmul.mubr.msk.bf16.gmra.mrb[68].mxu0 %vm253_vm2, %v914_v62 }
  0x9d   : > { %2559 = vmatmul.mubr.msk.bf16.gmra.mrb[68].mxu1 %vm253_vm2, %v3206_v0  ;;  %2540 = vmatprep.mubr.msk.bf16.mxu0 %vm2817_vm1, %v2816_v1 }
  0x9e   : > { %2562 = vmatprep.mubr.msk.bf16.mxu1 %vm2817_vm1, %v2816_v1 }
  0xa4   : > { %2541 = vmatmul.mubr.msk.bf16.gmra.mrb[72].mxu0 %vm253_vm2, %v915_v8 }
  0xa5   : > { %2563 = vmatmul.mubr.msk.bf16.gmra.mrb[72].mxu1 %vm253_vm2, %v3223_v9  ;;  %2544 = vmatprep.mubr.msk.bf16.mxu0 %vm2817_vm1, %v2816_v1 }
  0xa6   : > { %2566 = vmatprep.mubr.msk.bf16.mxu1 %vm2817_vm1, %v2816_v1 }
  0xac   : > { %2545 = vmatmul.mubr.msk.bf16.gmra.mrb[76].mxu0 %vm253_vm2, %v916_v21 }
  0xad   : > { %2567 = vmatmul.mubr.msk.bf16.gmra.mrb[76].mxu1 %vm253_vm2, %v3234_v23  ;;  %2572 = vmatprep.mubr.msk.bf16.mxu0 %vm2817_vm1, %v2816_v1 }
  0xae   : > { %2594 = vmatprep.mubr.msk.bf16.mxu1 %vm2817_vm1, %v2816_v1 }
  0xb4   : > { %2573 = vmatmul.mubr.msk.bf16.vlgmr.msra.gmra.mrb[80].mxu0 %vm253_vm2, %v3245_v36 }
  0xb5   : > { %2595 = vmatmul.mubr.msk.bf16.vlgmr.msra.gmra.mrb[80].mxu1 %vm253_vm2, %v2974_v46  ;;  %2615 = vmatpush3.bf16.msra.mxu0 %v2860_v4  ;;  %v1143_v4 = vld [vmem:[%s2890_s5 + $0x33] sm:$0xff] }
  0xb6   : > { %2637 = vmatpush3.bf16.msra.mxu1 %v2899_v15  ;;  %2576 = vmatprep.mubr.msk.bf16.mxu0 %vm2817_vm1, %v2816_v1  ;;  %v1144_v15 = vld [vmem:[%s2890_s5 + $0x3b] sm:$0xff] }
  0xb7   : > { %2598 = vmatprep.mubr.msk.bf16.mxu1 %vm2817_vm1, %v2816_v1  ;;  %2658 = vmatprep.subr.bf16.mxu0 %v2816_v1  ;;  %v3273_v46 = vpack.c.bf16 %v1144_v15, %v1143_v4  ;;  %v1434_v4 = vpack.c.bf16 %v3117_v33, %v3098_v27 }
  0xb8   : > { %2680 = vmatprep.subr.bf16.mxu1 %v2816_v1 }
  0xbc   : > { %2577 = vmatmul.mubr.msk.bf16.gmra.mrb[84].mxu0 %vm253_vm2, %v3260_v42 }
  0xbd   : > { %2599 = vmatmul.mubr.msk.bf16.gmra.mrb[84].mxu1 %vm253_vm2, %v2994_v52  ;;  %2580 = vmatprep.mubr.msk.bf16.mxu0 %vm2817_vm1, %v2816_v1  ;;  %v1145_v52 = vld [vmem:[%s2890_s5 + $0x43] sm:$0xff] }
  0xbe   : > { %2602 = vmatprep.mubr.msk.bf16.mxu1 %vm2817_vm1, %v2816_v1  ;;  %v3285_v51 = vpack.c.bf16 %v1146_v50, %v1145_v52 }
  0xc4   : > { %2581 = vmatmul.mubr.msk.bf16.gmra.mrb[88].mxu0 %vm253_vm2, %v3273_v46 }
  0xc5   : > { %2603 = vmatmul.mubr.msk.bf16.gmra.mrb[88].mxu1 %vm253_vm2, %v3006_v56  ;;  %2584 = vmatprep.mubr.msk.bf16.mxu0 %vm2817_vm1, %v2816_v1  ;;  %v1147_v56 = vld [vmem:[%s2890_s5 + $0x53] sm:$0xff] }
  0xc6   : > { %2606 = vmatprep.mubr.msk.bf16.mxu1 %vm2817_vm1, %v2816_v1  ;;  %v3296_v58 = vpack.c.bf16 %v1147_v56, %v1147_v56 }
  0xcc   : > { %2585 = vmatmul.mubr.msk.bf16.gmra.mrb[92].mxu0 %vm253_vm2, %v3285_v51 }
  0xcd   : > { %2607 = vmatmul.mubr.msk.bf16.gmra.mrb[92].mxu1 %vm253_vm2, %v3017_v60  ;;  %2588 = vmatprep.mubr.msk.bf16.mxu0 %vm2817_vm1, %v2816_v1  ;;  %v1422_v60 = vld [vmem:[%s2885_s28 + $0x1] sm:$0xff] }
  0xce   : > { %2610 = vmatprep.mubr.msk.bf16.mxu1 %vm2817_vm1, %v2816_v1  ;;  %v1431_v62 = vpack.c.bf16 %v3041_v5, %v1422_v60 }
  0xd4   : > { %2589 = vmatmul.mubr.msk.bf16.gmra.mrb[96].mxu0 %vm253_vm2, %v3296_v58 }
  0xd5   : > { %2611 = vmatmul.mubr.msk.bf16.gmra.mrb[96].mxu1 %vm253_vm2, %v3027_v63  ;;  %2616 = vmatprep.mubr.msk.bf16.mxu0 %vm2817_vm1, %v2816_v1  ;;  %v1432_v63 = vpack.c.bf16 %v3068_v19, %v3044_v7  ;;  %v1433_v7 = vpack.c.bf16 %v3095_v26, %v3071_v20 }
  0xd6   : > { %2638 = vmatprep.mubr.msk.bf16.mxu1 %vm2817_vm1, %v2816_v1 }
  0xdc   : > { %2617 = vmatmul.mubr.msk.bf16.vlgmr.msra.gmra.mrb[100].mxu0 %vm253_vm2, %v2895_v13 }
  0xdd   : > { %2639 = vmatmul.mubr.msk.bf16.vlgmr.msra.gmra.mrb[100].mxu1 %vm253_vm2, %v1431_v62  ;;  %2659 = vmatpush3.bf16.msra.mxu0 %v2902_v17 }
  0xde   : > { %2681 = vmatpush3.bf16.msra.mxu1 %v2977_v48  ;;  %2620 = vmatprep.mubr.msk.bf16.mxu0 %vm2817_vm1, %v2816_v1 }
  0xdf   : > { %2642 = vmatprep.mubr.msk.bf16.mxu1 %vm2817_vm1, %v2816_v1  ;;  %2702 = vmatprep.subr.bf16.mxu0 %v2816_v1 }
  0xe0   : > { %2724 = vmatprep.subr.bf16.mxu1 %v2816_v1 }
  0xe4   : > { %2621 = vmatmul.mubr.msk.bf16.gmra.mrb[104].mxu0 %vm253_vm2, %v2918_v22 }
  0xe5   : > { %2643 = vmatmul.mubr.msk.bf16.gmra.mrb[104].mxu1 %vm253_vm2, %v1432_v63  ;;  %2624 = vmatprep.mubr.msk.bf16.mxu0 %vm2817_vm1, %v2816_v1 }
  0xe6   : > { %2646 = vmatprep.mubr.msk.bf16.mxu1 %vm2817_vm1, %v2816_v1 }
  0xe7   : > { %v307_v13 = vpop.f32.mrb[0].mxu0 }
  0xe8   : > { %v397_v17 = vpop.f32.mrb[0].mxu1  ;;  %v2398_v48 = vpop.f32.mrb[1].mxu0 }
  0xe9   : > { %v3328_v5 = vadd.f32 %v397_v17, %v307_v13  ;;  %v2420_v8 = vpop.f32.mrb[1].mxu1  ;;  %v310_v10 = vpop.f32.mrb[2].mxu0  ;;  %v1435_v13 = vpack.c.bf16 %v3120_v35, %v3120_v35 }
  0xea   : > { %v400_v19 = vpop.f32.mrb[2].mxu1  ;;  %v2399_v22 = vpop.f32.mrb[3].mxu0 }
  0xeb   : > { %v3332_v11 = vadd.f32 %v400_v19, %v310_v10  ;;  %v2421_v21 = vpop.f32.mrb[3].mxu1 }
  0xec   : > { %2625 = vmatmul.mubr.msk.bf16.gmra.mrb[108].mxu0 %vm253_vm2, %v2932_v28 }
  0xed   : > { %2647 = vmatmul.mubr.msk.bf16.gmra.mrb[108].mxu1 %vm253_vm2, %v1433_v7  ;;  %2628 = vmatprep.mubr.msk.bf16.mxu0 %vm2817_vm1, %v2816_v1 }
  0xee   : > { %2650 = vmatprep.mubr.msk.bf16.mxu1 %vm2817_vm1, %v2816_v1 }
  0xef   : > { %v315_v29 = vpop.f32.mrb[4].mxu0 }
  0xf0   : > { %v405_v30 = vpop.f32.mrb[4].mxu1  ;;  %v2402_v37 = vpop.f32.mrb[5].mxu0 }
  0xf1   : > { %v3341_v20 = vadd.f32 %v405_v30, %v315_v29  ;;  %v2424_v26 = vpop.f32.mrb[5].mxu1  ;;  %v318_v41 = vpop.f32.mrb[6].mxu0 }
  0xf2   : > { %v408_v15 = vpop.f32.mrb[6].mxu1  ;;  %v2403_v28 = vpop.f32.mrb[7].mxu0 }
  0xf3   : > { %v3345_v52 = vadd.f32 %v408_v15, %v318_v41  ;;  %v2425_v50 = vpop.f32.mrb[7].mxu1 }
  0xf4   : > { %2629 = vmatmul.mubr.msk.bf16.gmra.mrb[112].mxu0 %vm253_vm2, %v2945_v34 }
  0xf5   : > { %2651 = vmatmul.mubr.msk.bf16.gmra.mrb[112].mxu1 %vm253_vm2, %v1434_v4  ;;  %2632 = vmatprep.mubr.msk.bf16.mxu0 %vm2817_vm1, %v2816_v1 }
  0xf6   : > { %2654 = vmatprep.mubr.msk.bf16.mxu1 %vm2817_vm1, %v2816_v1 }
  0xf7   : > { %v323_v56 = vpop.f32.mrb[8].mxu0 }
  0xf8   : > { %v413_v60 = vpop.f32.mrb[8].mxu1  ;;  %v2406_v62 = vpop.f32.mrb[9].mxu0 }
  0xf9   : > { %v3354_v27 = vadd.f32 %v413_v60, %v323_v56  ;;  %v2428_v33 = vpop.f32.mrb[9].mxu1  ;;  %v326_v63 = vpop.f32.mrb[10].mxu0 }
  0xfa   : > { %v416_v17 = vpop.f32.mrb[10].mxu1  ;;  %v2407_v34 = vpop.f32.mrb[11].mxu0 }
  0xfb   : > { %v3358_v48 = vadd.f32 %v416_v17, %v326_v63  ;;  %v2429_v8 = vpop.f32.mrb[11].mxu1 }
  0xfc   : > { %2633 = vmatmul.mubr.msk.bf16.gmra.mrb[116].mxu0 %vm253_vm2, %v2956_v38 }
  0xfd   : > { %2655 = vmatmul.mubr.msk.bf16.gmra.mrb[116].mxu1 %vm253_vm2, %v1435_v13  ;;  %2660 = vmatprep.mubr.msk.bf16.mxu0 %vm2817_vm1, %v2816_v1 }
  0xfe   : > { %2682 = vmatprep.mubr.msk.bf16.mxu1 %vm2817_vm1, %v2816_v1 }
  0xff   : > { %v331_v10 = vpop.f32.mrb[12].mxu0 }
 0x100   : > { %v421_v7 = vpop.f32.mrb[12].mxu1  ;;  %v2410_v19 = vpop.f32.mrb[13].mxu0 }
 0x101   : > { %v3367_v35 = vadd.f32 %v421_v7, %v331_v10  ;;  %v2432_v22 = vpop.f32.mrb[13].mxu1  ;;  %v334_v21 = vpop.f32.mrb[14].mxu0 }
 0x102   : > { %v424_v29 = vpop.f32.mrb[14].mxu1  ;;  %v2411_v30 = vpop.f32.mrb[15].mxu0 }
 0x103   : > { %v3369_v37 = vadd.f32 %v424_v29, %v334_v21  ;;  %v2433_v38 = vpop.f32.mrb[15].mxu1 }
 0x104   : > { %2661 = vmatmul.mubr.msk.bf16.vlgmr.msra.gmra.mrb[120].mxu0 %vm253_vm2, %v3052_v12 }
 0x105   : > { %2683 = vmatmul.mubr.msk.bf16.vlgmr.msra.gmra.mrb[120].mxu1 %vm253_vm2, %v3054_v14  ;;  %2703 = vmatpush3.bf16.msra.mxu0 %v2980_v49 }
 0x106   : > { %2725 = vmatpush3.bf16.msra.mxu1 %v3057_v16  ;;  %2664 = vmatprep.mubr.msk.bf16.mxu0 %vm2817_vm1, %v2816_v1 }
 0x107   : > { %v339_v26 = vpop.f32.mrb[16].mxu0  ;;  %2686 = vmatprep.mubr.msk.bf16.mxu1 %vm2817_vm1, %v2816_v1  ;;  %2746 = vmatprep.subr.bf16.mxu0 %v2816_v1 }
 0x108   : > { %v429_v41 = vpop.f32.mrb[16].mxu1  ;;  %v2414_v4 = vpop.f32.mrb[17].mxu0  ;;  %2768 = vmatprep.subr.bf16.mxu1 %v2816_v1 }
 0x109   : > { %v3383_v12 = vadd.f32 %v429_v41, %v339_v26  ;;  %v2436_v14 = vpop.f32.mrb[17].mxu1  ;;  %v342_v15 = vpop.f32.mrb[18].mxu0 }
 0x10a   : > { %v432_v49 = vpop.f32.mrb[18].mxu1  ;;  %v2415_v28 = vpop.f32.mrb[19].mxu0 }
 0x10b   : > { %v2437_v16 = vpop.f32.mrb[19].mxu1 }
 0x10c   : > { %2665 = vmatmul.mubr.msk.bf16.gmra.mrb[124].mxu0 %vm253_vm2, %v3083_v24 }
 0x10d   : > { %2687 = vmatmul.mubr.msk.bf16.gmra.mrb[124].mxu1 %vm253_vm2, %v3086_v25  ;;  %2668 = vmatprep.mubr.msk.bf16.mxu0 %vm2817_vm1, %v2816_v1 }
 0x10e   : > { %2690 = vmatprep.mubr.msk.bf16.mxu1 %vm2817_vm1, %v2816_v1 }
 0x10f   : > { %v506_v50 = vpop.f32.mrb[20].mxu0 }
 0x110   : > { %v544_v56 = vadd.f32 %v506_v50, %v3328_v5  ;;  %v624_v60 = vpop.f32.mrb[20].mxu1  ;;  %v2442_v62 = vpop.f32.mrb[21].mxu0 }
 0x111   : > { %v2464_v33 = vpop.f32.mrb[21].mxu1  ;;  %v509_v63 = vpop.f32.mrb[22].mxu0 }
 0x112   : > { %v3394_v13 = vadd.f32 %v624_v60, %v544_v56  ;;  %v545_v24 = vadd.f32 %v509_v63, %v3332_v11  ;;  %v627_v17 = vpop.f32.mrb[22].mxu1  ;;  %v2443_v34 = vpop.f32.mrb[23].mxu0 }
 0x113   : > { %v2465_v25 = vpop.f32.mrb[23].mxu1 }
 0x114   : > { %v3397_v8 = vadd.f32 %v627_v17, %v545_v24  ;;  %2669 = vmatmul.mubr.msk.bf16.gmra.mrb[128].mxu0 %vm253_vm2, %v3106_v31 }
 0x115   : > { %2691 = vmatmul.mubr.msk.bf16.gmra.mrb[128].mxu1 %vm253_vm2, %v3108_v32  ;;  %2672 = vmatprep.mubr.msk.bf16.mxu0 %vm2817_vm1, %v2816_v1 }
 0x116   : > { %2694 = vmatprep.mubr.msk.bf16.mxu1 %vm2817_vm1, %v2816_v1 }
 0x117   : > { %v514_v5 = vpop.f32.mrb[24].mxu0 }
 0x118   : > { %v546_v11 = vadd.f32 %v514_v5, %v3341_v20  ;;  %v632_v10 = vpop.f32.mrb[24].mxu1  ;;  %v2446_v7 = vpop.f32.mrb[25].mxu0 }
 0x119   : > { %v2468_v19 = vpop.f32.mrb[25].mxu1  ;;  %v517_v22 = vpop.f32.mrb[26].mxu0 }
 0x11a   : > { %v3408_v21 = vadd.f32 %v632_v10, %v546_v11  ;;  %v547_v31 = vadd.f32 %v517_v22, %v3345_v52  ;;  %v635_v29 = vpop.f32.mrb[26].mxu1  ;;  %v2447_v30 = vpop.f32.mrb[27].mxu0  ;;  %v1704_v11 = vpack.c.bf16 %v3178_v55, %v3158_v47 }
 0x11b   : > { %v2469_v32 = vpop.f32.mrb[27].mxu1 }
 0x11c   : > { %v3411_v38 = vadd.f32 %v635_v29, %v547_v31  ;;  %2673 = vmatmul.mubr.msk.bf16.gmra.mrb[132].mxu0 %vm253_vm2, %v3128_v39  ;;  %v1705_v31 = vpack.c.bf16 %v3199_v59, %v3181_v57 }
 0x11d   : > { %2695 = vmatmul.mubr.msk.bf16.gmra.mrb[132].mxu1 %vm253_vm2, %v3130_v40  ;;  %2676 = vmatprep.mubr.msk.bf16.mxu0 %vm2817_vm1, %v2816_v1 }
 0x11e   : > { %2698 = vmatprep.mubr.msk.bf16.mxu1 %vm2817_vm1, %v2816_v1 }
 0x11f   : > { %v522_v20 = vpop.f32.mrb[28].mxu0 }
 0x120   : > { %v548_v52 = vadd.f32 %v522_v20, %v3354_v27  ;;  %v640_v26 = vpop.f32.mrb[28].mxu1  ;;  %v2450_v41 = vpop.f32.mrb[29].mxu0  ;;  %v1694_v27 = vld [vmem:[%s2885_s28 + $0xa] sm:$0xff] }
 0x121   : > { %v2472_v4 = vpop.f32.mrb[29].mxu1  ;;  %v525_v14 = vpop.f32.mrb[30].mxu0  ;;  %v1703_v62 = vpack.c.bf16 %v3155_v45, %v1694_v27 }
 0x122   : > { %v3422_v15 = vadd.f32 %v640_v26, %v548_v52  ;;  %v549_v39 = vadd.f32 %v525_v14, %v3358_v48  ;;  %v643_v49 = vpop.f32.mrb[30].mxu1  ;;  %v2451_v40 = vpop.f32.mrb[31].mxu0  ;;  %v1706_v4 = vpack.c.bf16 %v3216_v2, %v3202_v61 }
 0x123   : > { %v2473_v28 = vpop.f32.mrb[31].mxu1 }
 0x124   : > { %v3425_v16 = vadd.f32 %v643_v49, %v549_v39  ;;  %2677 = vmatmul.mubr.msk.bf16.gmra.mrb[136].mxu0 %vm253_vm2, %v3142_v43 }
 0x125   : > { %2699 = vmatmul.mubr.msk.bf16.gmra.mrb[136].mxu1 %vm253_vm2, %v3144_v44  ;;  %2704 = vmatprep.mubr.msk.bf16.mxu0 %vm2817_vm1, %v2816_v1 }
 0x126   : > { %2726 = vmatprep.mubr.msk.bf16.mxu1 %vm2817_vm1, %v2816_v1 }
 0x127   : > { %v530_v50 = vpop.f32.mrb[32].mxu0 }
 0x128   : > { %v550_v48 = vadd.f32 %v530_v50, %v3367_v35  ;;  %v648_v56 = vpop.f32.mrb[32].mxu1  ;;  %v2454_v60 = vpop.f32.mrb[33].mxu0 }
 0x129   : > { %v2476_v33 = vpop.f32.mrb[33].mxu1  ;;  %v533_v63 = vpop.f32.mrb[34].mxu0 }
 0x12a   : > { %v3438_v43 = vadd.f32 %v648_v56, %v550_v48  ;;  %v551_v44 = vadd.f32 %v533_v63, %v3369_v37  ;;  %v651_v24 = vpop.f32.mrb[34].mxu1  ;;  %v2455_v17 = vpop.f32.mrb[35].mxu0  ;;  %v1707_v48 = vpack.c.bf16 %v3219_v3, %v3219_v3  ;;  %v1966_v3 = vld [vmem:[%s2885_s28 + $0x13] sm:$0xff] }
 0x12b   : > { %v2477_v34 = vpop.f32.mrb[35].mxu1 }
 0x12c   : > { %v3441_v25 = vadd.f32 %v651_v24, %v551_v44  ;;  %2705 = vmatmul.mubr.msk.bf16.vlgmr.msra.gmra.mrb[140].mxu0 %vm253_vm2, %v1703_v62 }
 0x12d   : > { %2727 = vmatmul.mubr.msk.bf16.vlgmr.msra.gmra.mrb[140].mxu1 %vm253_vm2, %v3165_v53  ;;  %2747 = vmatpush3.bf16.msra.mxu0 %v3060_v18 }
 0x12e   : > { %2769 = vmatpush3.bf16.msra.mxu1 %v3168_v54  ;;  %2708 = vmatprep.mubr.msk.bf16.mxu0 %vm2817_vm1, %v2816_v1 }
 0x12f   : > { %v538_v45 = vpop.f32.mrb[36].mxu0  ;;  %2730 = vmatprep.mubr.msk.bf16.mxu1 %vm2817_vm1, %v2816_v1 }
 0x130   : > { %v552_v35 = vadd.f32 %v538_v45, %v3383_v12  ;;  %v656_v37 = vpop.f32.mrb[36].mxu1  ;;  %v2458_v5 = vpop.f32.mrb[37].mxu0 }
 0x131   : > { %v2480_v10 = vpop.f32.mrb[37].mxu1  ;;  %v541_v53 = vpop.f32.mrb[38].mxu0 }
 0x132   : > { %v3455_v7 = vadd.f32 %v656_v37, %v552_v35  ;;  %v659_v18 = vpop.f32.mrb[38].mxu1  ;;  %v2459_v54 = vpop.f32.mrb[39].mxu0 }
 0x133   : > { %v2481_v19 = vpop.f32.mrb[39].mxu1 }
 0x134   : > { %2709 = vmatmul.mubr.msk.bf16.gmra.mrb[144].mxu0 %vm253_vm2, %v1704_v11  ;;  %v1969_v19 = vld [vmem:[%s2885_s28 + $0x2b] sm:$0xff] }
 0x135   : > { %2731 = vmatmul.mubr.msk.bf16.gmra.mrb[144].mxu1 %vm253_vm2, %v3189_v6  ;;  %2712 = vmatprep.mubr.msk.bf16.mxu0 %vm2817_vm1, %v2816_v1 }
 0x136   : > { %2734 = vmatprep.mubr.msk.bf16.mxu1 %vm2817_vm1, %v2816_v1 }
 0x137   : > { %v738_v12 = vpop.f32.mrb[40].mxu0 }
 0x138   : > { %v776_v47 = vadd.f32 %v738_v12, %v3394_v13  ;;  %v856_v55 = vpop.f32.mrb[40].mxu1  ;;  %v2486_v22 = vpop.f32.mrb[41].mxu0 }
 0x139   : > { %v2508_v29 = vpop.f32.mrb[41].mxu1  ;;  %v741_v30 = vpop.f32.mrb[42].mxu0 }
 0x13a   : > { %v3467_v32 = vadd.f32 %v856_v55, %v776_v47  ;;  %v777_v6 = vadd.f32 %v741_v30, %v3397_v8  ;;  %v859_v20 = vpop.f32.mrb[42].mxu1  ;;  %v2487_v52 = vpop.f32.mrb[43].mxu0 }
 0x13b   : > { %v2509_v26 = vpop.f32.mrb[43].mxu1  ;;  %v1971_v52 = vld [vmem:[%s2885_s28 + $0x3b] sm:$0xff] }
 0x13c   : > { %v3470_v41 = vadd.f32 %v859_v20, %v777_v6  ;;  %2713 = vmatmul.mubr.msk.bf16.gmra.mrb[148].mxu0 %vm253_vm2, %v1705_v31 }
 0x13d   : > { %2735 = vmatmul.mubr.msk.bf16.gmra.mrb[148].mxu1 %vm253_vm2, %v3206_v0  ;;  %2716 = vmatprep.mubr.msk.bf16.mxu0 %vm2817_vm1, %v2816_v1 }
 0x13e   : > { %2738 = vmatprep.mubr.msk.bf16.mxu1 %vm2817_vm1, %v2816_v1 }
 0x13f   : > { %v746_v57 = vpop.f32.mrb[44].mxu0 }
 0x140   : > { %v778_v59 = vadd.f32 %v746_v57, %v3408_v21  ;;  %v864_v13 = vpop.f32.mrb[44].mxu1  ;;  %v2490_v8 = vpop.f32.mrb[45].mxu0 }
 0x141   : > { %v2512_v14 = vpop.f32.mrb[45].mxu1  ;;  %v749_v39 = vpop.f32.mrb[46].mxu0 }
 0x142   : > { %v3482_v49 = vadd.f32 %v864_v13, %v778_v59  ;;  %v779_v0 = vadd.f32 %v749_v39, %v3411_v38  ;;  %v867_v40 = vpop.f32.mrb[46].mxu1  ;;  %v2491_v28 = vpop.f32.mrb[47].mxu0 }
 0x143   : > { %v2513_v27 = vpop.f32.mrb[47].mxu1 }
 0x144   : > { %v3485_v50 = vadd.f32 %v867_v40, %v779_v0  ;;  %2717 = vmatmul.mubr.msk.bf16.gmra.mrb[152].mxu0 %vm253_vm2, %v1706_v4 }
 0x145   : > { %2739 = vmatmul.mubr.msk.bf16.gmra.mrb[152].mxu1 %vm253_vm2, %v3223_v9  ;;  %2720 = vmatprep.mubr.msk.bf16.mxu0 %vm2817_vm1, %v2816_v1 }
 0x146   : > { %2742 = vmatprep.mubr.msk.bf16.mxu1 %vm2817_vm1, %v2816_v1 }
 0x147   : > { %v754_v61 = vpop.f32.mrb[48].mxu0 }
 0x148   : > { %v780_v2 = vadd.f32 %v754_v61, %v3422_v15  ;;  %v872_v21 = vpop.f32.mrb[48].mxu1  ;;  %v2494_v38 = vpop.f32.mrb[49].mxu0  ;;  %v1967_v15 = vld [vmem:[%s2885_s28 + $0x1b] sm:$0xff]  ;;  %v1973_v61 = vld [vmem:[%s2885_s28 + $0x4b] sm:$0xff] }
 0x149   : > { %v2516_v56 = vpop.f32.mrb[49].mxu1  ;;  %v757_v60 = vpop.f32.mrb[50].mxu0  ;;  %v1975_v5 = vpack.c.bf16 %v1967_v15, %v1966_v3 }
 0x14a   : > { %v3497_v62 = vadd.f32 %v872_v21, %v780_v2  ;;  %v781_v9 = vadd.f32 %v757_v60, %v3425_v16  ;;  %v875_v33 = vpop.f32.mrb[50].mxu1  ;;  %v2495_v63 = vpop.f32.mrb[51].mxu0 }
 0x14b   : > { %v2517_v44 = vpop.f32.mrb[51].mxu1 }
 0x14c   : > { %v3500_v24 = vadd.f32 %v875_v33, %v781_v9  ;;  %2721 = vmatmul.mubr.msk.bf16.gmra.mrb[156].mxu0 %vm253_vm2, %v1707_v48 }
 0x14d   : > { %2743 = vmatmul.mubr.msk.bf16.gmra.mrb[156].mxu1 %vm253_vm2, %v3234_v23  ;;  %2748 = vmatprep.mubr.msk.bf16.mxu0 %vm2817_vm1, %v2816_v1 }
 0x14e   : > { %2770 = vmatprep.mubr.msk.bf16.mxu1 %vm2817_vm1, %v2816_v1 }
 0x14f   : > { %v762_v17 = vpop.f32.mrb[52].mxu0 }
 0x150   : > { %v782_v16 = vadd.f32 %v762_v17, %v3438_v43  ;;  %v880_v34 = vpop.f32.mrb[52].mxu1  ;;  %v2498_v45 = vpop.f32.mrb[53].mxu0  ;;  %v1968_v43 = vld [vmem:[%s2885_s28 + $0x23] sm:$0xff] }
 0x151   : > { %v2520_v35 = vpop.f32.mrb[53].mxu1  ;;  %v765_v37 = vpop.f32.mrb[54].mxu0 }
 0x152   : > { %v3512_v11 = vadd.f32 %v880_v34, %v782_v16  ;;  %v783_v23 = vadd.f32 %v765_v37, %v3441_v25  ;;  %v883_v10 = vpop.f32.mrb[54].mxu1  ;;  %v2499_v53 = vpop.f32.mrb[55].mxu0 }
 0x153   : > { %v2521_v18 = vpop.f32.mrb[55].mxu1 }
 0x154   : > { %v3515_v54 = vadd.f32 %v883_v10, %v783_v23  ;;  %2749 = vmatmul.mubr.msk.bf16.vlgmr.msra.gmra.mrb[160].mxu0 %vm253_vm2, %v3245_v36  ;;  %v1976_v36 = vpack.c.bf16 %v1969_v19, %v1968_v43 }
 0x155   : > { %2771 = vmatmul.mubr.msk.bf16.vlgmr.msra.gmra.mrb[160].mxu1 %vm253_vm2, %v1975_v5  ;;  %2752 = vmatprep.mubr.msk.bf16.mxu0 %vm2817_vm1, %v2816_v1 }
 0x156   : > { %2774 = vmatprep.mubr.msk.bf16.mxu1 %vm2817_vm1, %v2816_v1 }
 0x157   : > { %v770_v25 = vpop.f32.mrb[56].mxu0 }
 0x158   : > { %v784_v12 = vadd.f32 %v770_v25, %v3455_v7  ;;  %v888_v47 = vpop.f32.mrb[56].mxu1  ;;  %v2502_v55 = vpop.f32.mrb[57].mxu0  ;;  %v1970_v7 = vld [vmem:[%s2885_s28 + $0x33] sm:$0xff] }
 0x159   : > { %v2524_v22 = vpop.f32.mrb[57].mxu1  ;;  %v773_v31 = vpop.f32.mrb[58].mxu0 }
 0x15a   : > { %v3527_v29 = vadd.f32 %v888_v47, %v784_v12  ;;  %v891_v30 = vpop.f32.mrb[58].mxu1  ;;  %v2503_v6 = vpop.f32.mrb[59].mxu0 }
 0x15b   : > { %v2525_v20 = vpop.f32.mrb[59].mxu1 }
 0x15c   : > { %2753 = vmatmul.mubr.msk.bf16.gmra.mrb[164].mxu0 %vm253_vm2, %v3260_v42  ;;  %v1977_v42 = vpack.c.bf16 %v1971_v52, %v1970_v7 }
 0x15d   : > { %2775 = vmatmul.mubr.msk.bf16.gmra.mrb[164].mxu1 %vm253_vm2, %v1976_v36  ;;  %2756 = vmatprep.mubr.msk.bf16.mxu0 %vm2817_vm1, %v2816_v1 }
 0x15e   : > { %2778 = vmatprep.mubr.msk.bf16.mxu1 %vm2817_vm1, %v2816_v1 }
 0x15f   : > { %v974_v26 = vpop.f32.mrb[60].mxu0 }
 0x160   : > { %v1012_v57 = vadd.f32 %v974_v26, %v3467_v32  ;;  %v1092_v59 = vpop.f32.mrb[60].mxu1  ;;  %v2530_v13 = vpop.f32.mrb[61].mxu0  ;;  %v1972_v32 = vld [vmem:[%s2885_s28 + $0x43] sm:$0xff] }
 0x161   : > { %v2552_v8 = vpop.f32.mrb[61].mxu1  ;;  %v977_v4 = vpop.f32.mrb[62].mxu0  ;;  %v1978_v60 = vpack.c.bf16 %v1973_v61, %v1972_v32 }
 0x162   : > { %v3539_v14 = vadd.f32 %v1092_v59, %v1012_v57  ;;  %v1013_v39 = vadd.f32 %v977_v4, %v3470_v41  ;;  %v1095_v0 = vpop.f32.mrb[62].mxu1  ;;  %v2531_v40 = vpop.f32.mrb[63].mxu0 }
 0x163   : > { %v2553_v28 = vpop.f32.mrb[63].mxu1 }
 0x164   : > { %v3542_v27 = vadd.f32 %v1095_v0, %v1013_v39  ;;  %2757 = vmatmul.mubr.msk.bf16.gmra.mrb[168].mxu0 %vm253_vm2, %v3273_v46 }
 0x165   : > { %2779 = vmatmul.mubr.msk.bf16.gmra.mrb[168].mxu1 %vm253_vm2, %v1977_v42  ;;  %2760 = vmatprep.mubr.msk.bf16.mxu0 %vm2817_vm1, %v2816_v1 }
 0x166   : > { %2782 = vmatprep.mubr.msk.bf16.mxu1 %vm2817_vm1, %v2816_v1 }
 0x167   : > { %v982_v2 = vpop.f32.mrb[64].mxu0 }
 0x168   : > { %v1014_v41 = vadd.f32 %v982_v2, %v3482_v49  ;;  %v1100_v21 = vpop.f32.mrb[64].mxu1  ;;  %v2534_v38 = vpop.f32.mrb[65].mxu0  ;;  %v1974_v49 = vld [vmem:[%s2885_s28 + $0x53] sm:$0xff] }
 0x169   : > { %v2556_v48 = vpop.f32.mrb[65].mxu1  ;;  %v985_v56 = vpop.f32.mrb[66].mxu0  ;;  %v1979_v35 = vpack.c.bf16 %v1974_v49, %v1974_v49 }
 0x16a   : > { %v1132_v46 = vadd.f32 %v1100_v21, %v1014_v41  ;;  %v1015_v9 = vadd.f32 %v985_v56, %v3485_v50  ;;  %v1103_v33 = vpop.f32.mrb[66].mxu1  ;;  %v2535_v63 = vpop.f32.mrb[67].mxu0 }
 0x16b   : > { %v2557_v44 = vpop.f32.mrb[67].mxu1 }
 0x16c   : > { %v1133_v3 = vadd.f32 %v1103_v33, %v1015_v9  ;;  %2761 = vmatmul.mubr.msk.bf16.gmra.mrb[172].mxu0 %vm253_vm2, %v3285_v51 }
 0x16d   : > { %2783 = vmatmul.mubr.msk.bf16.gmra.mrb[172].mxu1 %vm253_vm2, %v1978_v60  ;;  %2764 = vmatprep.mubr.msk.bf16.mxu0 %vm2817_vm1, %v2816_v1 }
 0x16e   : > { %2786 = vmatprep.mubr.msk.bf16.mxu1 %vm2817_vm1, %v2816_v1 }
 0x16f   : > { %v990_v15 = vpop.f32.mrb[68].mxu0 }
 0x170   : > { %v1016_v17 = vadd.f32 %v990_v15, %v3497_v62  ;;  %v1108_v50 = vpop.f32.mrb[68].mxu1  ;;  %v2538_v16 = vpop.f32.mrb[69].mxu0 }
 0x171   : > { %v2560_v34 = vpop.f32.mrb[69].mxu1  ;;  %v993_v45 = vpop.f32.mrb[70].mxu0 }
 0x172   : > { %v1134_v37 = vadd.f32 %v1108_v50, %v1016_v17  ;;  %v1017_v51 = vadd.f32 %v993_v45, %v3500_v24  ;;  %v1111_v5 = vpop.f32.mrb[70].mxu1  ;;  %v2539_v23 = vpop.f32.mrb[71].mxu0 }
 0x173   : > { %v2561_v10 = vpop.f32.mrb[71].mxu1 }
 0x174   : > { %v1135_v53 = vadd.f32 %v1111_v5, %v1017_v51  ;;  %2765 = vmatmul.mubr.msk.bf16.gmra.mrb[176].mxu0 %vm253_vm2, %v3296_v58 }
 0x175   : > { %2787 = vmatmul.mubr.msk.bf16.gmra.mrb[176].mxu1 %vm253_vm2, %v1979_v35 }
 0x177   : > { %v998_v1 = vpop.f32.mrb[72].mxu0 }
 0x178   : > { %v1018_v62 = vadd.f32 %v998_v1, %v3512_v11  ;;  %v1116_v18 = vpop.f32.mrb[72].mxu1  ;;  %v2542_v43 = vpop.f32.mrb[73].mxu0 }
 0x179   : > { %v2564_v19 = vpop.f32.mrb[73].mxu1  ;;  %v1001_v25 = vpop.f32.mrb[74].mxu0 }
 0x17a   : > { %v1136_v12 = vadd.f32 %v1116_v18, %v1018_v62  ;;  %v1019_v47 = vadd.f32 %v1001_v25, %v3515_v54  ;;  %v1119_v24 = vpop.f32.mrb[74].mxu1  ;;  %v2543_v55 = vpop.f32.mrb[75].mxu0 }
 0x17b   : > { %v2565_v22 = vpop.f32.mrb[75].mxu1 }
 0x17c   : > { %v1137_v31 = vadd.f32 %v1119_v24, %v1019_v47 }
 0x17f   : > { %v1006_v36 = vpop.f32.mrb[76].mxu0 }
 0x180   : > { %v1020_v30 = vadd.f32 %v1006_v36, %v3527_v29  ;;  %v1124_v58 = vpop.f32.mrb[76].mxu1  ;;  %v2546_v6 = vpop.f32.mrb[77].mxu0 }
 0x181   : > { %v2568_v20 = vpop.f32.mrb[77].mxu1  ;;  %v1009_v7 = vpop.f32.mrb[78].mxu0 }
 0x182   : > { %v1138_v52 = vadd.f32 %v1124_v58, %v1020_v30  ;;  %v1127_v11 = vpop.f32.mrb[78].mxu1  ;;  %v2547_v26 = vpop.f32.mrb[79].mxu0 }
 0x183   : > { %v2569_v57 = vpop.f32.mrb[79].mxu1 }
 0x187   : > { %v1206_v59 = vpop.f32.mrb[80].mxu0 }
 0x188   : > { %v3572_v13 = vadd.f32 %v1206_v59, %v3539_v14  ;;  %v1312_v54 = vpop.f32.mrb[80].mxu1  ;;  %v2574_v8 = vpop.f32.mrb[81].mxu0 }
 0x189   : > { %v2596_v4 = vpop.f32.mrb[81].mxu1  ;;  %v1209_v42 = vpop.f32.mrb[82].mxu0 }
 0x18a   : > { %v3575_v39 = vadd.f32 %v1209_v42, %v3542_v27  ;;  %v1315_v29 = vpop.f32.mrb[82].mxu1  ;;  %v2575_v0 = vpop.f32.mrb[83].mxu0 }
 0x18b   : > { %v2597_v40 = vpop.f32.mrb[83].mxu1 }
 0x18f   : > { %v1214_v28 = vpop.f32.mrb[84].mxu0 }
 0x190   : > { %v3577_v32 = vadd.f32 %v1214_v28, %v1132_v46  ;;  %v1320_v61 = vpop.f32.mrb[84].mxu1  ;;  %v2578_v2 = vpop.f32.mrb[85].mxu0 }
 0x191   : > { %v2600_v41 = vpop.f32.mrb[85].mxu1  ;;  %v1217_v21 = vpop.f32.mrb[86].mxu0 }
 0x192   : > { %v3579_v38 = vadd.f32 %v1217_v21, %v1133_v3  ;;  %v1323_v14 = vpop.f32.mrb[86].mxu1  ;;  %v2579_v48 = vpop.f32.mrb[87].mxu0 }
 0x193   : > { %v2601_v56 = vpop.f32.mrb[87].mxu1 }
 0x197   : > { %v1222_v60 = vpop.f32.mrb[88].mxu0 }
 0x198   : > { %v3581_v9 = vadd.f32 %v1222_v60, %v1134_v37  ;;  %v1328_v27 = vpop.f32.mrb[88].mxu1  ;;  %v2582_v33 = vpop.f32.mrb[89].mxu0 }
 0x199   : > { %v2604_v63 = vpop.f32.mrb[89].mxu1  ;;  %v1225_v44 = vpop.f32.mrb[90].mxu0 }
 0x19a   : > { %v3583_v49 = vadd.f32 %v1225_v44, %v1135_v53  ;;  %v1331_v46 = vpop.f32.mrb[90].mxu1  ;;  %v2583_v15 = vpop.f32.mrb[91].mxu0 }
 0x19b   : > { %v2605_v17 = vpop.f32.mrb[91].mxu1 }
 0x19f   : > { %v1230_v50 = vpop.f32.mrb[92].mxu0 }
 0x1a0   : > { %v3585_v16 = vadd.f32 %v1230_v50, %v1136_v12  ;;  %v1336_v3 = vpop.f32.mrb[92].mxu1  ;;  %v2586_v34 = vpop.f32.mrb[93].mxu0 }
 0x1a1   : > { %v2608_v45 = vpop.f32.mrb[93].mxu1  ;;  %v1233_v35 = vpop.f32.mrb[94].mxu0 }
 0x1a2   : > { %v3587_v51 = vadd.f32 %v1233_v35, %v1137_v31  ;;  %v1339_v37 = vpop.f32.mrb[94].mxu1  ;;  %v2587_v5 = vpop.f32.mrb[95].mxu0 }
 0x1a3   : > { %v2609_v23 = vpop.f32.mrb[95].mxu1 }
 0x1a7   : > { %v1238_v10 = vpop.f32.mrb[96].mxu0 }
 0x1a8   : > { %v3589_v1 = vadd.f32 %v1238_v10, %v1138_v52  ;;  %v1344_v53 = vpop.f32.mrb[96].mxu1  ;;  %v2590_v62 = vpop.f32.mrb[97].mxu0 }
 0x1a9   : > { %v2612_v18 = vpop.f32.mrb[97].mxu1  ;;  %v1241_v43 = vpop.f32.mrb[98].mxu0 }
 0x1aa   : > { %v1347_v19 = vpop.f32.mrb[98].mxu1  ;;  %v2591_v25 = vpop.f32.mrb[99].mxu0 }
 0x1ab   : > { %v2613_v12 = vpop.f32.mrb[99].mxu1 }
 0x1af   : > { %v1384_v47 = vpop.f32.mrb[100].mxu0 }
 0x1b0   : > { %v1385_v24 = vadd.f32 %v1384_v47, %v1312_v54  ;;  %v1485_v55 = vpop.f32.mrb[100].mxu1  ;;  %v2618_v22 = vpop.f32.mrb[101].mxu0 }
 0x1b1   : > { %v2640_v36 = vpop.f32.mrb[101].mxu1  ;;  %v1387_v31 = vpop.f32.mrb[102].mxu0 }
 0x1b2   : > { %v1523_v30 = vadd.f32 %v1485_v55, %v1385_v24  ;;  %v1388_v58 = vadd.f32 %v1387_v31, %v1315_v29  ;;  %v1488_v6 = vpop.f32.mrb[102].mxu1  ;;  %v2619_v20 = vpop.f32.mrb[103].mxu0 }
 0x1b3   : > { %v2641_v7 = vpop.f32.mrb[103].mxu1 }
 0x1b4   : > { %v1524_v52 = vadd.f32 %v1488_v6, %v1388_v58 }
 0x1b7   : > { %v1392_v11 = vpop.f32.mrb[104].mxu0 }
 0x1b8   : > { %v1393_v26 = vadd.f32 %v1392_v11, %v1320_v61  ;;  %v1493_v57 = vpop.f32.mrb[104].mxu1  ;;  %v2622_v59 = vpop.f32.mrb[105].mxu0 }
 0x1b9   : > { %v2644_v8 = vpop.f32.mrb[105].mxu1  ;;  %v1395_v4 = vpop.f32.mrb[106].mxu0 }
 0x1ba   : > { %v1525_v42 = vadd.f32 %v1493_v57, %v1393_v26  ;;  %v1396_v0 = vadd.f32 %v1395_v4, %v1323_v14  ;;  %v1496_v40 = vpop.f32.mrb[106].mxu1  ;;  %v2623_v54 = vpop.f32.mrb[107].mxu0 }
 0x1bb   : > { %v2645_v28 = vpop.f32.mrb[107].mxu1 }
 0x1bc   : > { %v1526_v2 = vadd.f32 %v1496_v40, %v1396_v0 }
 0x1bf   : > { %v1400_v41 = vpop.f32.mrb[108].mxu0 }
 0x1c0   : > { %v1401_v21 = vadd.f32 %v1400_v41, %v1328_v27  ;;  %v1501_v48 = vpop.f32.mrb[108].mxu1  ;;  %v2626_v29 = vpop.f32.mrb[109].mxu0 }
 0x1c1   : > { %v2648_v56 = vpop.f32.mrb[109].mxu1  ;;  %v1403_v60 = vpop.f32.mrb[110].mxu0 }
 0x1c2   : > { %v1527_v33 = vadd.f32 %v1501_v48, %v1401_v21  ;;  %v1404_v63 = vadd.f32 %v1403_v60, %v1331_v46  ;;  %v1504_v44 = vpop.f32.mrb[110].mxu1  ;;  %v2627_v61 = vpop.f32.mrb[111].mxu0 }
 0x1c3   : > { %v2649_v15 = vpop.f32.mrb[111].mxu1 }
 0x1c4   : > { %v1528_v17 = vadd.f32 %v1504_v44, %v1404_v63 }
 0x1c7   : > { %v1408_v50 = vpop.f32.mrb[112].mxu0 }
 0x1c8   : > { %v1409_v34 = vadd.f32 %v1408_v50, %v1336_v3  ;;  %v1509_v45 = vpop.f32.mrb[112].mxu1  ;;  %v2630_v14 = vpop.f32.mrb[113].mxu0 }
 0x1c9   : > { %v2652_v35 = vpop.f32.mrb[113].mxu1  ;;  %v1411_v5 = vpop.f32.mrb[114].mxu0 }
 0x1ca   : > { %v1529_v23 = vadd.f32 %v1509_v45, %v1409_v34  ;;  %v1412_v10 = vadd.f32 %v1411_v5, %v1339_v37  ;;  %v1512_v62 = vpop.f32.mrb[114].mxu1  ;;  %v2631_v27 = vpop.f32.mrb[115].mxu0 }
 0x1cb   : > { %v2653_v18 = vpop.f32.mrb[115].mxu1 }
 0x1cc   : > { %v1530_v43 = vadd.f32 %v1512_v62, %v1412_v10 }
 0x1cf   : > { %v1416_v19 = vpop.f32.mrb[116].mxu0 }
 0x1d0   : > { %v1417_v25 = vadd.f32 %v1416_v19, %v1344_v53  ;;  %v1517_v12 = vpop.f32.mrb[116].mxu1  ;;  %v2634_v46 = vpop.f32.mrb[117].mxu0 }
 0x1d1   : > { %v2656_v47 = vpop.f32.mrb[117].mxu1  ;;  %v1419_v24 = vpop.f32.mrb[118].mxu0 }
 0x1d2   : > { %v1531_v55 = vadd.f32 %v1517_v12, %v1417_v25  ;;  %v1520_v22 = vpop.f32.mrb[118].mxu1  ;;  %v2635_v36 = vpop.f32.mrb[119].mxu0 }
 0x1d3   : > { %v2657_v3 = vpop.f32.mrb[119].mxu1 }
 0x1d7   : > { %v1566_v31 = vpop.f32.mrb[120].mxu0 }
 0x1d8   : > { %v1604_v58 = vadd.f32 %v1566_v31, %v1523_v30  ;;  %v1647_v6 = vpop.f32.mrb[120].mxu1  ;;  %v2662_v20 = vpop.f32.mrb[121].mxu0 }
 0x1d9   : > { %v2684_v7 = vpop.f32.mrb[121].mxu1  ;;  %v1569_v37 = vpop.f32.mrb[122].mxu0 }
 0x1da   : > { %v1685_v11 = vadd.f32 %v1647_v6, %v1604_v58  ;;  %v1605_v26 = vadd.f32 %v1569_v37, %v1524_v52  ;;  %v1650_v57 = vpop.f32.mrb[122].mxu1  ;;  %v2663_v59 = vpop.f32.mrb[123].mxu0 }
 0x1db   : > { %v2685_v8 = vpop.f32.mrb[123].mxu1 }
 0x1dc   : > { %v1686_v53 = vadd.f32 %v1650_v57, %v1605_v26 }
 0x1df   : > { %v1574_v4 = vpop.f32.mrb[124].mxu0 }
 0x1e0   : > { %v1606_v0 = vadd.f32 %v1574_v4, %v1525_v42  ;;  %v1655_v40 = vpop.f32.mrb[124].mxu1  ;;  %v2666_v54 = vpop.f32.mrb[125].mxu0 }
 0x1e1   : > { %v2688_v28 = vpop.f32.mrb[125].mxu1  ;;  %v1577_v41 = vpop.f32.mrb[126].mxu0 }
 0x1e2   : > { %v1687_v21 = vadd.f32 %v1655_v40, %v1606_v0  ;;  %v1607_v48 = vadd.f32 %v1577_v41, %v1526_v2  ;;  %v1658_v29 = vpop.f32.mrb[126].mxu1  ;;  %v2667_v30 = vpop.f32.mrb[127].mxu0 }
 0x1e3   : > { %v2689_v56 = vpop.f32.mrb[127].mxu1 }
 0x1e4   : > { %v1688_v60 = vadd.f32 %v1658_v29, %v1607_v48 }
 0x1e7   : > { %v1582_v63 = vpop.f32.mrb[128].mxu0 }
 0x1e8   : > { %v1608_v44 = vadd.f32 %v1582_v63, %v1527_v33  ;;  %v1663_v61 = vpop.f32.mrb[128].mxu1  ;;  %v2670_v52 = vpop.f32.mrb[129].mxu0 }
 0x1e9   : > { %v2692_v15 = vpop.f32.mrb[129].mxu1  ;;  %v1585_v50 = vpop.f32.mrb[130].mxu0 }
 0x1ea   : > { %v1689_v34 = vadd.f32 %v1663_v61, %v1608_v44  ;;  %v1609_v45 = vadd.f32 %v1585_v50, %v1528_v17  ;;  %v1666_v14 = vpop.f32.mrb[130].mxu1  ;;  %v2671_v42 = vpop.f32.mrb[131].mxu0 }
 0x1eb   : > { %v2693_v35 = vpop.f32.mrb[131].mxu1 }
 0x1ec   : > { %v1690_v5 = vadd.f32 %v1666_v14, %v1609_v45 }
 0x1ef   : > { %v1590_v10 = vpop.f32.mrb[132].mxu0 }
 0x1f0   : > { %v1610_v62 = vadd.f32 %v1590_v10, %v1529_v23  ;;  %v1671_v27 = vpop.f32.mrb[132].mxu1  ;;  %v2674_v2 = vpop.f32.mrb[133].mxu0 }
 0x1f1   : > { %v2696_v18 = vpop.f32.mrb[133].mxu1  ;;  %v1593_v19 = vpop.f32.mrb[134].mxu0 }
 0x1f2   : > { %v1691_v25 = vadd.f32 %v1671_v27, %v1610_v62  ;;  %v1611_v12 = vadd.f32 %v1593_v19, %v1530_v43  ;;  %v1674_v46 = vpop.f32.mrb[134].mxu1  ;;  %v2675_v33 = vpop.f32.mrb[135].mxu0 }
 0x1f3   : > { %v2697_v47 = vpop.f32.mrb[135].mxu1 }
 0x1f4   : > { %v1692_v24 = vadd.f32 %v1674_v46, %v1611_v12 }
 0x1f7   : > { %v1598_v22 = vpop.f32.mrb[136].mxu0 }
 0x1f8   : > { %v1612_v36 = vadd.f32 %v1598_v22, %v1531_v55  ;;  %v1679_v3 = vpop.f32.mrb[136].mxu1  ;;  %v2678_v17 = vpop.f32.mrb[137].mxu0 }
 0x1f9   : > { %v2700_v31 = vpop.f32.mrb[137].mxu1  ;;  %v1601_v58 = vpop.f32.mrb[138].mxu0 }
 0x1fa   : > { %v1693_v6 = vadd.f32 %v1679_v3, %v1612_v36  ;;  %v1682_v20 = vpop.f32.mrb[138].mxu1  ;;  %v2679_v7 = vpop.f32.mrb[139].mxu0 }
 0x1fb   : > { %v2701_v23 = vpop.f32.mrb[139].mxu1 }
 0x1ff   : > { %v1757_v37 = vpop.f32.mrb[140].mxu0 }
 0x200   : > { %v1795_v26 = vadd.f32 %v1757_v37, %v1685_v11  ;;  %v1838_v57 = vpop.f32.mrb[140].mxu1  ;;  %v2706_v59 = vpop.f32.mrb[141].mxu0 }
 0x201   : > { %v2728_v8 = vpop.f32.mrb[141].mxu1  ;;  %v1760_v43 = vpop.f32.mrb[142].mxu0 }
 0x202   : > { %v1876_v4 = vadd.f32 %v1838_v57, %v1795_v26  ;;  %v1796_v0 = vadd.f32 %v1760_v43, %v1686_v53  ;;  %v1841_v40 = vpop.f32.mrb[142].mxu1  ;;  %v2707_v54 = vpop.f32.mrb[143].mxu0 }
 0x203   : > { %v2729_v28 = vpop.f32.mrb[143].mxu1 }
 0x204   : > { %v1877_v55 = vadd.f32 %v1841_v40, %v1796_v0 }
 0x207   : > { %v1765_v41 = vpop.f32.mrb[144].mxu0 }
 0x208   : > { %v1797_v48 = vadd.f32 %v1765_v41, %v1687_v21  ;;  %v1846_v29 = vpop.f32.mrb[144].mxu1  ;;  %v2710_v30 = vpop.f32.mrb[145].mxu0 }
 0x209   : > { %v2732_v56 = vpop.f32.mrb[145].mxu1  ;;  %v1768_v63 = vpop.f32.mrb[146].mxu0 }
 0x20a   : > { %v3591_v44 = vadd.f32 %v1846_v29, %v1797_v48  ;;  %v1798_v61 = vadd.f32 %v1768_v63, %v1688_v60  ;;  %v1849_v11 = vpop.f32.mrb[146].mxu1  ;;  %v2711_v52 = vpop.f32.mrb[147].mxu0 }
 0x20b   : > { %v2733_v15 = vpop.f32.mrb[147].mxu1 }
 0x20c   : > { %v3593_v50 = vadd.f32 %v1849_v11, %v1798_v61 }
 0x20f   : > { %v1773_v45 = vpop.f32.mrb[148].mxu0 }
 0x210   : > { %v1799_v53 = vadd.f32 %v1773_v45, %v1689_v34  ;;  %v1854_v14 = vpop.f32.mrb[148].mxu1  ;;  %v2714_v42 = vpop.f32.mrb[149].mxu0 }
 0x211   : > { %v2736_v35 = vpop.f32.mrb[149].mxu1  ;;  %v1776_v10 = vpop.f32.mrb[150].mxu0 }
 0x212   : > { %v3595_v62 = vadd.f32 %v1854_v14, %v1799_v53  ;;  %v1800_v21 = vadd.f32 %v1776_v10, %v1690_v5  ;;  %v1857_v27 = vpop.f32.mrb[150].mxu1  ;;  %v2715_v2 = vpop.f32.mrb[151].mxu0 }
 0x213   : > { %v2737_v18 = vpop.f32.mrb[151].mxu1 }
 0x214   : > { %v3597_v19 = vadd.f32 %v1857_v27, %v1800_v21 }
 0x217   : > { %v1781_v60 = vpop.f32.mrb[152].mxu0 }
 0x218   : > { %v1801_v12 = vadd.f32 %v1781_v60, %v1691_v25  ;;  %v1862_v46 = vpop.f32.mrb[152].mxu1  ;;  %v2718_v33 = vpop.f32.mrb[153].mxu0 }
 0x219   : > { %v2740_v47 = vpop.f32.mrb[153].mxu1  ;;  %v1784_v22 = vpop.f32.mrb[154].mxu0 }
 0x21a   : > { %v3599_v36 = vadd.f32 %v1862_v46, %v1801_v12  ;;  %v1802_v34 = vadd.f32 %v1784_v22, %v1692_v24  ;;  %v1865_v3 = vpop.f32.mrb[154].mxu1  ;;  %v2719_v17 = vpop.f32.mrb[155].mxu0  ;;  %v3608_v24 = vld [vmem:[%s3674_s3] ss:$0 sm:$0xff] }
 0x21b   : > { %v2741_v31 = vpop.f32.mrb[155].mxu1  ;;  %v1260_v41 = vadd.f32 %v3608_v24, %v3572_v13  ;;  %v1261_v61 = vadd.f32 %v3608_v24, %v3575_v39  ;;  %v1262_v27 = vadd.f32 %v3608_v24, %v3577_v32  ;;  %v1263_v47 = vadd.f32 %v3608_v24, %v3579_v38 }
 0x21c   : > { %v3601_v58 = vadd.f32 %v1865_v3, %v1802_v34 }
 0x21d   : > { %v1271_v34 = vmax.f32 %v1262_v27, 0.0  ;;  %v1272_v31 = vmax.f32 %v1263_v47, 0.0 }
 0x21f   : > { %v1789_v5 = vpop.f32.mrb[156].mxu0 }
 0x220   : > { %v1803_v20 = vadd.f32 %v1789_v5, %v1693_v6  ;;  %v1870_v7 = vpop.f32.mrb[156].mxu1  ;;  %v2722_v23 = vpop.f32.mrb[157].mxu0 }
 0x221   : > { %v2744_v37 = vpop.f32.mrb[157].mxu1  ;;  %v1792_v26 = vpop.f32.mrb[158].mxu0 }
 0x222   : > { %v3603_v57 = vadd.f32 %v1870_v7, %v1803_v20  ;;  %v1873_v25 = vpop.f32.mrb[158].mxu1  ;;  %v2723_v59 = vpop.f32.mrb[159].mxu0  ;;  %v1264_v26 = vadd.f32 %v3608_v24, %v3581_v9 }
 0x223   : > { %v2745_v8 = vpop.f32.mrb[159].mxu1 }
 0x227   : > { %v1919_v43 = vpop.f32.mrb[160].mxu0 }
 0x228   : > { %v1957_v0 = vadd.f32 %v1919_v43, %v1876_v4  ;;  %v2029_v40 = vpop.f32.mrb[160].mxu1  ;;  %v2750_v54 = vpop.f32.mrb[161].mxu0  ;;  %v1269_v4 = vmax.f32 %v1260_v41, 0.0 }
 0x229   : > { %v2772_v6 = vpop.f32.mrb[161].mxu1  ;;  %v1922_v28 = vpop.f32.mrb[162].mxu0  ;;  %v1265_v54 = vadd.f32 %v3608_v24, %v3583_v49 }
 0x22a   : > { %v2067_v48 = vadd.f32 %v2029_v40, %v1957_v0  ;;  %v1958_v29 = vadd.f32 %v1922_v28, %v1877_v55  ;;  %v2032_v30 = vpop.f32.mrb[162].mxu1  ;;  %v2751_v56 = vpop.f32.mrb[163].mxu0  ;;  %v1270_v55 = vmax.f32 %v1261_v61, 0.0  ;;  %v1273_v28 = vmax.f32 %v1264_v26, 0.0 }
 0x22b   : > { %v2773_v63 = vpop.f32.mrb[163].mxu1 }
 0x22c   : > { %v2076_v11 = vadd.f32 %v3608_v24, %v2067_v48  ;;  %v2068_v52 = vadd.f32 %v2032_v30, %v1958_v29  ;;  %v1274_v29 = vmax.f32 %v1265_v54, 0.0 }
 0x22e   : > { %v2085_v15 = vmax.f32 %v2076_v11, 0.0  ;;  %v2077_v45 = vadd.f32 %v3608_v24, %v2068_v52  ;;  %v1266_v52 = vadd.f32 %v3608_v24, %v3585_v16 }
 0x22f   : > { %v1927_v13 = vpop.f32.mrb[164].mxu0 }
 0x230   : > { %v2094_v53 = vmax.f32 %v1269_v4, %v2085_v15  ;;  %v2086_v14 = vmax.f32 %v2077_v45, 0.0  ;;  %v1959_v39 = vadd.f32 %v1927_v13, %v3591_v44  ;;  %v2037_v42 = vpop.f32.mrb[164].mxu1  ;;  %v2754_v35 = vpop.f32.mrb[165].mxu0 }
 0x231   : > { %v2776_v10 = vpop.f32.mrb[165].mxu1  ;;  %v1930_v21 = vpop.f32.mrb[166].mxu0 }
 0x232   : > { %2103 = vst.msk [vmem:[%s3620_s23] sm:$0xff] %vm253_vm2, %v2094_v53  ;;  %v2095_v2 = vmax.f32 %v1270_v55, %v2086_v14  ;;  %v2069_v18 = vadd.f32 %v2037_v42, %v1959_v39  ;;  %v1960_v60 = vadd.f32 %v1930_v21, %v3593_v50  ;;  %v2040_v12 = vpop.f32.mrb[166].mxu1  ;;  %v2755_v46 = vpop.f32.mrb[167].mxu0  ;;  %v1267_v14 = vadd.f32 %v3608_v24, %v3587_v51 }
 0x233   : > { %v2777_v33 = vpop.f32.mrb[167].mxu1  ;;  %v1275_v42 = vmax.f32 %v1266_v52, 0.0  ;;  %v1268_v46 = vadd.f32 %v3608_v24, %v3589_v1 }
 0x234   : > { %2104 = vst.msk [vmem:[%s3620_s23 + $0x8] sm:$0xff] %vm253_vm2, %v2095_v2  ;;  %v2078_v44 = vadd.f32 %v3608_v24, %v2069_v18  ;;  %v2070_v22 = vadd.f32 %v2040_v12, %v1960_v60  ;;  %v1276_v21 = vmax.f32 %v1267_v14, 0.0 }
 0x236   : > { %v2087_v32 = vmax.f32 %v2078_v44, 0.0  ;;  %v2079_v3 = vadd.f32 %v3608_v24, %v2070_v22 }
 0x237   : > { %v1935_v17 = vpop.f32.mrb[168].mxu0 }
 0x238   : > { %v2096_v5 = vmax.f32 %v1271_v34, %v2087_v32  ;;  %v2088_v50 = vmax.f32 %v2079_v3, 0.0  ;;  %v1961_v20 = vadd.f32 %v1935_v17, %v3595_v62  ;;  %v2045_v7 = vpop.f32.mrb[168].mxu1  ;;  %v2758_v23 = vpop.f32.mrb[169].mxu0 }
 0x239   : > { %v2780_v38 = vpop.f32.mrb[169].mxu1  ;;  %v1938_v37 = vpop.f32.mrb[170].mxu0 }
 0x23a   : > { %2105 = vst.msk [vmem:[%s3620_s23 + $0x10] sm:$0xff] %vm253_vm2, %v2096_v5  ;;  %v2097_v25 = vmax.f32 %v1272_v31, %v2088_v50  ;;  %v2071_v59 = vadd.f32 %v2045_v7, %v1961_v20  ;;  %v1962_v8 = vadd.f32 %v1938_v37, %v3597_v19  ;;  %v2048_v43 = vpop.f32.mrb[170].mxu1  ;;  %v2759_v0 = vpop.f32.mrb[171].mxu0 }
 0x23b   : > { %v2781_v40 = vpop.f32.mrb[171].mxu1 }
 0x23c   : > { %2106 = vst.msk [vmem:[%s3620_s23 + $0x18] sm:$0xff] %vm253_vm2, %v2097_v25  ;;  %v2080_v62 = vadd.f32 %v3608_v24, %v2071_v59  ;;  %v2072_v6 = vadd.f32 %v2048_v43, %v1962_v8 }
 0x23e   : > { %v2089_v9 = vmax.f32 %v2080_v62, 0.0  ;;  %v2081_v41 = vadd.f32 %v3608_v24, %v2072_v6 }
 0x23f   : > { %v1943_v48 = vpop.f32.mrb[172].mxu0 }
 0x240   : > { %v2098_v30 = vmax.f32 %v1273_v28, %v2089_v9  ;;  %v2090_v19 = vmax.f32 %v2081_v41, 0.0  ;;  %v1963_v56 = vadd.f32 %v1943_v48, %v3599_v36  ;;  %v2053_v63 = vpop.f32.mrb[172].mxu1  ;;  %v2762_v61 = vpop.f32.mrb[173].mxu0 }
 0x241   : > { %v2784_v49 = vpop.f32.mrb[173].mxu1  ;;  %v1946_v11 = vpop.f32.mrb[174].mxu0 }
 0x242   : > { %2107 = vst.msk [vmem:[%s3620_s23 + $0x20] sm:$0xff] %vm253_vm2, %v2098_v30  ;;  %v2099_v4 = vmax.f32 %v1274_v29, %v2090_v19  ;;  %v2073_v15 = vadd.f32 %v2053_v63, %v1963_v56  ;;  %v1964_v45 = vadd.f32 %v1946_v11, %v3601_v58  ;;  %v2056_v13 = vpop.f32.mrb[174].mxu1  ;;  %v2763_v55 = vpop.f32.mrb[175].mxu0 }
 0x243   : > { %v2785_v53 = vpop.f32.mrb[175].mxu1 }
 0x244   : > { %2108 = vst.msk [vmem:[%s3620_s23 + $0x28] sm:$0xff] %vm253_vm2, %v2099_v4  ;;  %v2082_v36 = vadd.f32 %v3608_v24, %v2073_v15  ;;  %v2074_v39 = vadd.f32 %v2056_v13, %v1964_v45 }
 0x246   : > { %v2091_v16 = vmax.f32 %v2082_v36, 0.0  ;;  %v2083_v35 = vadd.f32 %v3608_v24, %v2074_v39 }
 0x247   : > { %v1951_v10 = vpop.f32.mrb[176].mxu0 }
 0x248   : > { %v2100_v58 = vmax.f32 %v1275_v42, %v2091_v16  ;;  %v2092_v27 = vmax.f32 %v2083_v35, 0.0  ;;  %v1965_v2 = vadd.f32 %v1951_v10, %v3603_v57  ;;  %v2061_v18 = vpop.f32.mrb[176].mxu1  ;;  %v2766_v51 = vpop.f32.mrb[177].mxu0  ;;  %v1277_v57 = vmax.f32 %v1268_v46, 0.0 }
 0x249   : > { %v2788_v60 = vpop.f32.mrb[177].mxu1  ;;  %v1954_v12 = vpop.f32.mrb[178].mxu0 }
 0x24a   : > { %2109 = vst.msk [vmem:[%s3620_s23 + $0x30] sm:$0xff] %vm253_vm2, %v2100_v58  ;;  %v2101_v33 = vmax.f32 %v1276_v21, %v2092_v27  ;;  %v2075_v47 = vadd.f32 %v2061_v18, %v1965_v2  ;;  %v2064_v44 = vpop.f32.mrb[178].mxu1  ;;  %v2767_v22 = vpop.f32.mrb[179].mxu0 }
 0x24b   : > { %v2789_v34 = vpop.f32.mrb[179].mxu1 }
 0x24c   : > { %2110 = vst.msk [vmem:[%s3620_s23 + $0x38] sm:$0xff] %vm253_vm2, %v2101_v33  ;;  %v2084_v32 = vadd.f32 %v3608_v24, %v2075_v47 }
 0x24e   : > { %v2093_v3 = vmax.f32 %v2084_v32, 0.0 }
 0x250   : > { %v2102_v17 = vmax.f32 %v1277_v57, %v2093_v3 }
 0x252   : > { %2111 = vst.msk [vmem:[%s3620_s23 + $0x40] sm:$0xff] %vm253_vm2, %v2102_v17 }
 0x253 PF: > { %s14_s15 = sadd.s32 1, %s2814_s15  }
 0x254   : > { %p11_p4 = scmp.ge.s32.totalorder %s14_s15, 4  }
 0x256   :  { %13 = sbr.rel (!%p11_p4) target bundleno = 1 (0x1), region = 69 }

// kernel: phoneme_recognition_forward.9
= control target key start
LH: loop header
LB: loop body
LE: loop exit
PB: predicated region body
PF: predicated region fallthrough
CT: control target
= control target key end

     0   :  { %s2119_s15 = smov 0   ;;  %s2573_s0 = inlined_call_operand.vmem [shape: f32[2,58,2], index: 0, kind: input, shape index: {}]   ;;  %s2574_s1 = inlined_call_operand.vmem [shape: f32[2,58,2], index: 1, kind: input, shape index: {}]   ;;  %s2575_s2 = inlined_call_operand.vmem [shape: bf16[18,4], index: 2, kind: input, shape index: {}]   ;;  %s2576_s3 = inlined_call_operand.vmem [shape: f32[1,4], index: 3, kind: input, shape index: {}]   ;;  %s2577_s4 = inlined_call_operand.vmem [shape: f32[2,40,4], index: 4, kind: output, shape index: {}]  }
   0x1 LB: > { %s1668_s16 = sadd.s32 4294967295, %s2090_s15   ;;  %p1672_p0 = scmp.ge.s32.totalorder %s2090_s15, 1  ;;  %s2090_s15 = sphi %s2119_s15, %s14_s15  }
   0x2   : > { %p172_p1 = scmp.lt.s32.totalorder %s2090_s15, 3 }
   0x4   : > { %p173_p2 = pnand %p1672_p0, %p172_p1 }
   0x5   : > { %v2078_v0 = vld [vmem:[%s2575_s2] ss:$0 sps:$4 sm:$0x22] (!%p173_p2)   ;;  %v2092_v1 = vmov (!%p173_p2), 0.0   ;;  %vm251_vm0 = vcmask (!%p173_p2), 1040384   ;;  %p203_p3 = scmp.lt.s32.totalorder (!%p173_p2), %s1668_s16, 1 }
   0x6   : > { %176 = sbr.rel (%p173_p2) target bundleno = 450 (0x1c2), region = 36  ;;  %1815 = vmatprep.subr.bf16.mxu0 (!%p173_p2), %v2092_v1  ;;  %1829 = vmatprep.subr.bf16.mxu1 (!%p173_p2), %v2092_v1  ;;  %v227_v2 = vld [vmem:[%s2575_s2] sm:$0x1] (!%p173_p2)  ;;  %v240_v3 = vrot.slane (!%p173_p2), %v2078_v0, 1  ;;  %vm2093_vm1 = vmmov (!%p173_p2), 0   ;;  %vm241_vm2 = vcmask (!%p173_p2), 15360  }
   0x7   : > { %v2136_v4 = vsel (!%p173_p2), %vm251_vm0, %v227_v2, 0  ;;  %1817 = vmatprep.mubr.msk.bf16.mxu0 (!%p173_p2), %vm2093_vm1, %v2092_v1  ;;  %1831 = vmatprep.mubr.msk.bf16.mxu1 (!%p173_p2), %vm2093_vm1, %v2092_v1  ;;  %v2079_v5 = vld [vmem:[%s2575_s2] ss:$0 sps:$4 sm:$0x44] (!%p173_p2)   ;;  %v559_v33 = vld [vmem:[%s2575_s2 + $0x4] sm:$0x1] (!%p173_p2) }
   0x8   : > { %1830 = vmatpush3.bf16.msra.mxu1 (!%p173_p2), %v2136_v4  ;;  %v2149_v6 = vsel (!%p173_p2), %vm251_vm0, %v240_v3, 0  ;;  %v2080_v7 = vld [vmem:[%s2575_s2] ss:$0 sps:$4 sm:$0x88] (!%p173_p2)   ;;  %v391_v8 = vrot.slane (!%p173_p2), %v2079_v5, 2  ;;  %v2228_v37 = vsel (!%p173_p2), %vm251_vm0, %v559_v33, 0 }
   0x9   : > { %1857 = vmatprep.subr.bf16.mxu1 (!%p173_p2), %v2092_v1  ;;  %1816 = vmatpush3.bf16.msra.mxu0 (!%p173_p2), %v2149_v6  ;;  %v477_v9 = vrot.slane (!%p173_p2), %v2080_v7, 3  ;;  %v2081_v28 = vld [vmem:[%s2575_s2 + $0x4] ss:$0 sps:$4 sm:$0x22] (!%p173_p2)   ;;  %vm1595_vm3 = vcmask (!%p173_p2), 31744  }
   0xa   : > { %1843 = vmatprep.subr.bf16.mxu0 (!%p173_p2), %v2092_v1  ;;  %v2175_v15 = vsel (!%p173_p2), %vm251_vm0, %v391_v8, 0  ;;  %v645_v34 = vrot.slane (!%p173_p2), %v2081_v28, 1  ;;  %v2082_v49 = vld [vmem:[%s2575_s2 + $0x4] ss:$0 sps:$4 sm:$0x44] (!%p173_p2)  }
   0xb   : > { %v2178_v17 = vsel (!%p173_p2), %vm251_vm0, %v477_v9, 0  ;;  %v2083_v50 = vld [vmem:[%s2575_s2 + $0x4] ss:$0 sps:$4 sm:$0x88] (!%p173_p2)   ;;  %v731_v55 = vrot.slane (!%p173_p2), %v2082_v49, 2 }
   0xc   : > { %v2231_v38 = vsel (!%p173_p2), %vm251_vm0, %v645_v34, 0  ;;  %v817_v56 = vrot.slane (!%p173_p2), %v2083_v50, 3 }
   0xd   : > { %s2579_s16 = smov (!%p203_p3, %s1668_s16), 1  ;;  %v2283_v59 = vsel %vm251_vm0, %v731_v55, 0 }
   0xe   : > { %s1741_s25 = sshll.u32 %s2579_s16, 6  ;;  %v2286_v60 = vsel %vm251_vm0, %v817_v56, 0  ;;  %s2067_s20 = smul.u32 40, %s2579_s16 }
   0xf   : > { %s2160_s28 = scalar_lea.vmem %s2574_s1, %s1741_s25  ;;  %s2165_s5 = scalar_lea.vmem %s2573_s0, %s1741_s25 }
  0x10   : > { %v228_v10 = vld [vmem:[%s2160_s28] sm:$0xff]  ;;  %v229_v11 = vld [vmem:[%s2160_s28 + $0x8] sm:$0xff]  ;;  %v230_v18 = vld [vmem:[%s2160_s28 + $0x10] sm:$0xff]  ;;  %s2549_s23 = scalar_lea.vmem %s2577_s4, %s2067_s20 }
  0x11   : > { %v219_v12 = vld [vmem:[%s2165_s5] sm:$0xff]  ;;  %v2171_v13 = vpack.c.bf16 %v229_v11, %v228_v10  ;;  %v220_v14 = vld [vmem:[%s2165_s5 + $0x8] sm:$0xff]  ;;  %v231_v19 = vld [vmem:[%s2160_s28 + $0x18] sm:$0xff] }
  0x12   : > { %v224_v16 = vpack.c.bf16 %v220_v14, %v219_v12  ;;  %v221_v20 = vld [vmem:[%s2165_s5 + $0x10] sm:$0xff]  ;;  %v222_v21 = vld [vmem:[%s2165_s5 + $0x18] sm:$0xff]  ;;  %v2194_v22 = vpack.c.bf16 %v231_v19, %v230_v18  ;;  %v232_v24 = vld [vmem:[%s2160_s28 + $0x20] sm:$0xff] }
  0x13   : > { %1818 = vmatmul.mubr.msk.bf16.vlgmr.msra.gmra.mrb[0].mxu0 %vm241_vm2, %v2171_v13  ;;  %v225_v23 = vpack.c.bf16 %v222_v21, %v221_v20  ;;  %v223_v25 = vld [vmem:[%s2165_s5 + $0x20] sm:$0xff]  ;;  %v2206_v26 = vpack.c.bf16 %v232_v24, %v232_v24  ;;  %v380_v30 = vld [vmem:[%s2165_s5 + $0x9] sm:$0xff]  ;;  %v381_v39 = vld [vmem:[%s2165_s5 + $0x11] sm:$0xff] }
  0x14   : > { %1832 = vmatmul.mubr.msk.bf16.vlgmr.msra.gmra.mrb[0].mxu1 %vm241_vm2, %v224_v16  ;;  %1844 = vmatpush3.bf16.msra.mxu0 %v2175_v15  ;;  %v226_v27 = vpack.c.bf16 %v223_v25, %v223_v25  ;;  %v379_v29 = vld [vmem:[%s2165_s5 + $0x1] sm:$0xff]  ;;  %v466_v32 = vld [vmem:[%s2165_s5 + $0xd] sm:$0xff]  ;;  %v382_v40 = vld [vmem:[%s2165_s5 + $0x19] sm:$0xff] }
  0x15   : > { %1858 = vmatpush3.bf16.msra.mxu1 %v2178_v17  ;;  %1821 = vmatprep.mubr.msk.bf16.mxu0 %vm2093_vm1, %v2092_v1  ;;  %v465_v31 = vld [vmem:[%s2165_s5 + $0x5] sm:$0xff]  ;;  %v2225_v35 = vpack.c.bf16 %v380_v30, %v379_v29  ;;  %v467_v41 = vld [vmem:[%s2165_s5 + $0x15] sm:$0xff]  ;;  %v468_v42 = vld [vmem:[%s2165_s5 + $0x1d] sm:$0xff]  ;;  %v2247_v43 = vpack.c.bf16 %v382_v40, %v381_v39 }
  0x16   : > { %1835 = vmatprep.mubr.msk.bf16.mxu1 %vm2093_vm1, %v2092_v1  ;;  %1871 = vmatprep.subr.bf16.mxu0 %v2092_v1  ;;  %v470_v36 = vpack.c.bf16 %v466_v32, %v465_v31  ;;  %v471_v44 = vpack.c.bf16 %v468_v42, %v467_v41  ;;  %v383_v45 = vld [vmem:[%s2165_s5 + $0x21] sm:$0xff]  ;;  %v552_v52 = vld [vmem:[%s2160_s28 + $0xd] sm:$0xff]  ;;  %v553_v61 = vld [vmem:[%s2160_s28 + $0x15] sm:$0xff] }
  0x17   : > { %1885 = vmatprep.subr.bf16.mxu1 %v2092_v1  ;;  %v469_v46 = vld [vmem:[%s2165_s5 + $0x25] sm:$0xff]  ;;  %v2259_v47 = vpack.c.bf16 %v383_v45, %v383_v45  ;;  %v634_v54 = vld [vmem:[%s2165_s5 + $0xe] sm:$0xff]  ;;  %v554_v62 = vld [vmem:[%s2160_s28 + $0x1d] sm:$0xff] }
  0x18   : > { %v472_v48 = vpack.c.bf16 %v469_v46, %v469_v46  ;;  %v551_v51 = vld [vmem:[%s2160_s28 + $0x5] sm:$0xff]  ;;  %v635_v63 = vld [vmem:[%s2165_s5 + $0x16] sm:$0xff]  ;;  %v2303_v2 = vpack.c.bf16 %v554_v62, %v553_v61 }
  0x19   : > { %v633_v53 = vld [vmem:[%s2165_s5 + $0x6] sm:$0xff]  ;;  %v2278_v57 = vpack.c.bf16 %v552_v52, %v551_v51  ;;  %v636_v0 = vld [vmem:[%s2165_s5 + $0x1e] sm:$0xff]  ;;  %v720_v11 = vld [vmem:[%s2165_s5 + $0x12] sm:$0xff] }
  0x1a   : > { %v2280_v58 = vpack.c.bf16 %v634_v54, %v633_v53  ;;  %v2306_v3 = vpack.c.bf16 %v636_v0, %v635_v63  ;;  %v555_v5 = vld [vmem:[%s2160_s28 + $0x25] sm:$0xff]  ;;  %v806_v14 = vld [vmem:[%s2160_s28 + $0x12] sm:$0xff]  ;;  %v721_v21 = vld [vmem:[%s2165_s5 + $0x1a] sm:$0xff] }
  0x1b   : > { %1822 = vmatmul.mubr.msk.bf16.gmra.mrb[4].mxu0 %vm241_vm2, %v2194_v22  ;;  %v637_v7 = vld [vmem:[%s2165_s5 + $0x26] sm:$0xff]  ;;  %v2318_v8 = vpack.c.bf16 %v555_v5, %v555_v5  ;;  %v807_v24 = vld [vmem:[%s2160_s28 + $0x1a] sm:$0xff] }
  0x1c   : > { %1836 = vmatmul.mubr.msk.bf16.gmra.mrb[4].mxu1 %vm241_vm2, %v225_v23  ;;  %1825 = vmatprep.mubr.msk.bf16.mxu0 %vm2093_vm1, %v2092_v1  ;;  %v2320_v9 = vpack.c.bf16 %v637_v7, %v637_v7  ;;  %v719_v10 = vld [vmem:[%s2165_s5 + $0xa] sm:$0xff]  ;;  %v899_v16 = vld [vmem:[%s2575_s2 + $0x8] sm:$0x1]  ;;  %v892_v33 = vld [vmem:[%s2165_s5 + $0x13] sm:$0xff] }
  0x1d   : > { %1839 = vmatprep.mubr.msk.bf16.mxu1 %vm2093_vm1, %v2092_v1  ;;  %v805_v12 = vld [vmem:[%s2160_s28 + $0xa] sm:$0xff]  ;;  %v724_v18 = vpack.c.bf16 %v720_v11, %v719_v10  ;;  %v2340_v20 = vsel %vm251_vm0, %v899_v16, 0  ;;  %v722_v23 = vld [vmem:[%s2165_s5 + $0x22] sm:$0xff]  ;;  %v1503_v51 = vld [vmem:[%s2160_s28 + $0x13] sm:$0xff] }
  0x1e   : > { %v2337_v19 = vpack.c.bf16 %v806_v14, %v805_v12  ;;  %v808_v25 = vld [vmem:[%s2160_s28 + $0x22] sm:$0xff]  ;;  %v809_v29 = vld [vmem:[%s2160_s28 + $0x2a] sm:$0xff] }
  0x1f   : > { %v2357_v28 = vpack.c.bf16 %v808_v25, %v807_v24  ;;  %v2368_v31 = vpack.c.bf16 %v809_v29, %v809_v29  ;;  %v891_v32 = vld [vmem:[%s2165_s5 + $0xb] sm:$0xff]  ;;  %v894_v39 = vld [vmem:[%s2165_s5 + $0x23] sm:$0xff]  ;;  %v1504_v53 = vld [vmem:[%s2160_s28 + $0x1b] sm:$0xff] }
  0x20   : > { %v2379_v34 = vpack.c.bf16 %v892_v33, %v891_v32  ;;  %v1103_v41 = vld [vmem:[%s2160_s28 + $0x9] sm:$0xff]  ;;  %v1305_v46 = vld [vmem:[%s2160_s28 + $0x1e] sm:$0xff] }
  0x21   : > { %v1502_v50 = vld [vmem:[%s2160_s28 + $0xb] sm:$0xff]  ;;  %v1505_v54 = vld [vmem:[%s2160_s28 + $0x23] sm:$0xff] }
  0x22   : > { %v1507_v52 = vpack.c.bf16 %v1503_v51, %v1502_v50  ;;  %v1508_v55 = vpack.c.bf16 %v1505_v54, %v1504_v53  ;;  %v1506_v56 = vld [vmem:[%s2160_s28 + $0x2b] sm:$0xff] }
  0x23   : > { %1826 = vmatmul.mubr.msk.bf16.gmra.mrb[8].mxu0 %vm241_vm2, %v2206_v26 }
  0x24   : > { %1840 = vmatmul.mubr.msk.bf16.gmra.mrb[8].mxu1 %vm241_vm2, %v226_v27  ;;  %1845 = vmatprep.mubr.msk.bf16.mxu0 %vm2093_vm1, %v2092_v1  ;;  %v725_v27 = vpack.c.bf16 %v722_v23, %v721_v21 }
  0x25   : > { %1859 = vmatprep.mubr.msk.bf16.mxu1 %vm2093_vm1, %v2092_v1 }
  0x2b   : > { %1846 = vmatmul.mubr.msk.bf16.vlgmr.msra.gmra.mrb[12].mxu0 %vm241_vm2, %v2225_v35 }
  0x2c   : > { %1860 = vmatmul.mubr.msk.bf16.vlgmr.msra.gmra.mrb[12].mxu1 %vm241_vm2, %v470_v36  ;;  %1872 = vmatpush3.bf16.msra.mxu0 %v2228_v37  ;;  %v893_v36 = vld [vmem:[%s2165_s5 + $0x1b] sm:$0xff] }
  0x2d   : > { %1886 = vmatpush3.bf16.msra.mxu1 %v2231_v38  ;;  %1849 = vmatprep.mubr.msk.bf16.mxu0 %vm2093_vm1, %v2092_v1  ;;  %v2394_v40 = vpack.c.bf16 %v894_v39, %v893_v36 }
  0x2e   : > { %1863 = vmatprep.mubr.msk.bf16.mxu1 %vm2093_vm1, %v2092_v1  ;;  %1899 = vmatprep.subr.bf16.mxu0 %v2092_v1 }
  0x2f   : > { %1913 = vmatprep.subr.bf16.mxu1 %v2092_v1 }
  0x33   : > { %1850 = vmatmul.mubr.msk.bf16.gmra.mrb[16].mxu0 %vm241_vm2, %v2247_v43 }
  0x34   : > { %1864 = vmatmul.mubr.msk.bf16.gmra.mrb[16].mxu1 %vm241_vm2, %v471_v44  ;;  %1853 = vmatprep.mubr.msk.bf16.mxu0 %vm2093_vm1, %v2092_v1  ;;  %v1105_v44 = vld [vmem:[%s2160_s28 + $0x19] sm:$0xff] }
  0x35   : > { %1867 = vmatprep.mubr.msk.bf16.mxu1 %vm2093_vm1, %v2092_v1 }
  0x3b   : > { %1854 = vmatmul.mubr.msk.bf16.gmra.mrb[20].mxu0 %vm241_vm2, %v2259_v47 }
  0x3c   : > { %1868 = vmatmul.mubr.msk.bf16.gmra.mrb[20].mxu1 %vm241_vm2, %v472_v48  ;;  %1873 = vmatprep.mubr.msk.bf16.mxu0 %vm2093_vm1, %v2092_v1  ;;  %v1306_v48 = vld [vmem:[%s2160_s28 + $0x26] sm:$0xff] }
  0x3d   : > { %1887 = vmatprep.mubr.msk.bf16.mxu1 %vm2093_vm1, %v2092_v1  ;;  %v1309_v49 = vpack.c.bf16 %v1306_v48, %v1306_v48 }
  0x43   : > { %1874 = vmatmul.mubr.msk.bf16.vlgmr.msra.gmra.mrb[24].mxu0 %vm241_vm2, %v2278_v57 }
  0x44   : > { %1888 = vmatmul.mubr.msk.bf16.vlgmr.msra.gmra.mrb[24].mxu1 %vm241_vm2, %v2280_v58  ;;  %1900 = vmatpush3.bf16.msra.mxu0 %v2283_v59 }
  0x45   : > { %1914 = vmatpush3.bf16.msra.mxu1 %v2286_v60  ;;  %1877 = vmatprep.mubr.msk.bf16.mxu0 %vm2093_vm1, %v2092_v1 }
  0x46   : > { %1891 = vmatprep.mubr.msk.bf16.mxu1 %vm2093_vm1, %v2092_v1  ;;  %1927 = vmatprep.subr.bf16.mxu0 %v2092_v1 }
  0x47   : > { %1941 = vmatprep.subr.bf16.mxu1 %v2092_v1 }
  0x4b   : > { %1878 = vmatmul.mubr.msk.bf16.gmra.mrb[28].mxu0 %vm241_vm2, %v2303_v2 }
  0x4c   : > { %1892 = vmatmul.mubr.msk.bf16.gmra.mrb[28].mxu1 %vm241_vm2, %v2306_v3  ;;  %1881 = vmatprep.mubr.msk.bf16.mxu0 %vm2093_vm1, %v2092_v1 }
  0x4d   : > { %1895 = vmatprep.mubr.msk.bf16.mxu1 %vm2093_vm1, %v2092_v1 }
  0x53   : > { %1882 = vmatmul.mubr.msk.bf16.gmra.mrb[32].mxu0 %vm241_vm2, %v2318_v8 }
  0x54   : > { %1896 = vmatmul.mubr.msk.bf16.gmra.mrb[32].mxu1 %vm241_vm2, %v2320_v9  ;;  %1901 = vmatprep.mubr.msk.bf16.mxu0 %vm2093_vm1, %v2092_v1 }
  0x55   : > { %1915 = vmatprep.mubr.msk.bf16.mxu1 %vm2093_vm1, %v2092_v1 }
  0x5b   : > { %1902 = vmatmul.mubr.msk.bf16.vlgmr.msra.gmra.mrb[36].mxu0 %vm241_vm2, %v724_v18 }
  0x5c   : > { %1916 = vmatmul.mubr.msk.bf16.vlgmr.msra.gmra.mrb[36].mxu1 %vm241_vm2, %v2337_v19  ;;  %1928 = vmatpush3.bf16.msra.mxu0 %v2340_v20 }
  0x5d   : > { %1942 = vmatpush3.bf16.msra.mxu1 %v2149_v6  ;;  %1905 = vmatprep.mubr.msk.bf16.mxu0 %vm2093_vm1, %v2092_v1  ;;  %v723_v6 = vld [vmem:[%s2165_s5 + $0x2a] sm:$0xff] }
  0x5e   : > { %1919 = vmatprep.mubr.msk.bf16.mxu1 %vm2093_vm1, %v2092_v1  ;;  %1955 = vmatprep.subr.bf16.mxu0 %v2092_v1  ;;  %v726_v30 = vpack.c.bf16 %v723_v6, %v723_v6 }
  0x5f   : > { %1969 = vmatprep.subr.bf16.mxu1 %v2092_v1 }
  0x63   : > { %1906 = vmatmul.mubr.msk.bf16.gmra.mrb[40].mxu0 %vm241_vm2, %v725_v27 }
  0x64   : > { %1920 = vmatmul.mubr.msk.bf16.gmra.mrb[40].mxu1 %vm241_vm2, %v2357_v28  ;;  %1909 = vmatprep.mubr.msk.bf16.mxu0 %vm2093_vm1, %v2092_v1 }
  0x65   : > { %1923 = vmatprep.mubr.msk.bf16.mxu1 %vm2093_vm1, %v2092_v1 }
  0x6b   : > { %1910 = vmatmul.mubr.msk.bf16.gmra.mrb[44].mxu0 %vm241_vm2, %v726_v30 }
  0x6c   : > { %1924 = vmatmul.mubr.msk.bf16.gmra.mrb[44].mxu1 %vm241_vm2, %v2368_v31  ;;  %1929 = vmatprep.mubr.msk.bf16.mxu0 %vm2093_vm1, %v2092_v1 }
  0x6d   : > { %1943 = vmatprep.mubr.msk.bf16.mxu1 %vm2093_vm1, %v2092_v1 }
  0x73   : > { %1930 = vmatmul.mubr.msk.bf16.vlgmr.msra.gmra.mrb[48].mxu0 %vm241_vm2, %v2379_v34 }
  0x74   : > { %1944 = vmatmul.mubr.msk.bf16.vlgmr.msra.gmra.mrb[48].mxu1 %vm241_vm2, %v2225_v35  ;;  %1956 = vmatpush3.bf16.msra.mxu0 %v2136_v4  ;;  %v895_v4 = vld [vmem:[%s2165_s5 + $0x2b] sm:$0xff]  ;;  %v1102_v35 = vld [vmem:[%s2160_s28 + $0x1] sm:$0xff] }
  0x75   : > { %1970 = vmatpush3.bf16.msra.mxu1 %v2175_v15  ;;  %1933 = vmatprep.mubr.msk.bf16.mxu0 %vm2093_vm1, %v2092_v1  ;;  %v2406_v15 = vpack.c.bf16 %v895_v4, %v895_v4  ;;  %v1107_v42 = vpack.c.bf16 %v1103_v41, %v1102_v35 }
  0x76   : > { %1947 = vmatprep.mubr.msk.bf16.mxu1 %vm2093_vm1, %v2092_v1  ;;  %1983 = vmatprep.subr.bf16.mxu0 %v2092_v1 }
  0x77   : > { %1997 = vmatprep.subr.bf16.mxu1 %v2092_v1 }
  0x7b   : > { %1934 = vmatmul.mubr.msk.bf16.gmra.mrb[52].mxu0 %vm241_vm2, %v2394_v40 }
  0x7c   : > { %1948 = vmatmul.mubr.msk.bf16.gmra.mrb[52].mxu1 %vm241_vm2, %v2247_v43  ;;  %1937 = vmatprep.mubr.msk.bf16.mxu0 %vm2093_vm1, %v2092_v1  ;;  %v1104_v43 = vld [vmem:[%s2160_s28 + $0x11] sm:$0xff] }
  0x7d   : > { %1951 = vmatprep.mubr.msk.bf16.mxu1 %vm2093_vm1, %v2092_v1  ;;  %v1108_v45 = vpack.c.bf16 %v1105_v44, %v1104_v43 }
  0x83   : > { %1938 = vmatmul.mubr.msk.bf16.gmra.mrb[56].mxu0 %vm241_vm2, %v2406_v15 }
  0x84   : > { %1952 = vmatmul.mubr.msk.bf16.gmra.mrb[56].mxu1 %vm241_vm2, %v2259_v47  ;;  %1957 = vmatprep.mubr.msk.bf16.mxu0 %vm2093_vm1, %v2092_v1 }
  0x85   : > { %1971 = vmatprep.mubr.msk.bf16.mxu1 %vm2093_vm1, %v2092_v1 }
  0x8b   : > { %1958 = vmatmul.mubr.msk.bf16.vlgmr.msra.gmra.mrb[60].mxu0 %vm241_vm2, %v2171_v13  ;;  %v1106_v13 = vld [vmem:[%s2160_s28 + $0x21] sm:$0xff] }
  0x8c   : > { %1972 = vmatmul.mubr.msk.bf16.vlgmr.msra.gmra.mrb[60].mxu1 %vm241_vm2, %v1107_v42  ;;  %1984 = vmatpush3.bf16.msra.mxu0 %v2178_v17  ;;  %v1109_v17 = vpack.c.bf16 %v1106_v13, %v1106_v13 }
  0x8d   : > { %1998 = vmatpush3.bf16.msra.mxu1 %v2228_v37  ;;  %1961 = vmatprep.mubr.msk.bf16.mxu0 %vm2093_vm1, %v2092_v1 }
  0x8e   : > { %1975 = vmatprep.mubr.msk.bf16.mxu1 %vm2093_vm1, %v2092_v1  ;;  %2011 = vmatprep.subr.bf16.mxu0 %v2092_v1 }
  0x8f   : > { %2025 = vmatprep.subr.bf16.mxu1 %v2092_v1 }
  0x93   : > { %1962 = vmatmul.mubr.msk.bf16.gmra.mrb[64].mxu0 %vm241_vm2, %v2194_v22  ;;  %v1302_v22 = vld [vmem:[%s2160_s28 + $0x6] sm:$0xff] }
  0x94   : > { %1976 = vmatmul.mubr.msk.bf16.gmra.mrb[64].mxu1 %vm241_vm2, %v1108_v45  ;;  %1965 = vmatprep.mubr.msk.bf16.mxu0 %vm2093_vm1, %v2092_v1 }
  0x95   : > { %1979 = vmatprep.mubr.msk.bf16.mxu1 %vm2093_vm1, %v2092_v1 }
  0x9b   : > { %1966 = vmatmul.mubr.msk.bf16.gmra.mrb[68].mxu0 %vm241_vm2, %v2206_v26  ;;  %v1303_v26 = vld [vmem:[%s2160_s28 + $0xe] sm:$0xff] }
  0x9c   : > { %1980 = vmatmul.mubr.msk.bf16.gmra.mrb[68].mxu1 %vm241_vm2, %v1109_v17  ;;  %1985 = vmatprep.mubr.msk.bf16.mxu0 %vm2093_vm1, %v2092_v1  ;;  %v1307_v37 = vpack.c.bf16 %v1303_v26, %v1302_v22 }
  0x9d   : > { %1999 = vmatprep.mubr.msk.bf16.mxu1 %vm2093_vm1, %v2092_v1 }
  0xa3   : > { %1986 = vmatmul.mubr.msk.bf16.vlgmr.msra.gmra.mrb[72].mxu0 %vm241_vm2, %v2278_v57  ;;  %v1509_v57 = vpack.c.bf16 %v1506_v56, %v1506_v56 }
  0xa4   : > { %2000 = vmatmul.mubr.msk.bf16.vlgmr.msra.gmra.mrb[72].mxu1 %vm241_vm2, %v2280_v58  ;;  %2012 = vmatpush3.bf16.msra.mxu0 %v2231_v38  ;;  %v1304_v38 = vld [vmem:[%s2160_s28 + $0x16] sm:$0xff] }
  0xa5   : > { %2026 = vmatpush3.bf16.msra.mxu1 %v2283_v59  ;;  %1989 = vmatprep.mubr.msk.bf16.mxu0 %vm2093_vm1, %v2092_v1  ;;  %v1308_v47 = vpack.c.bf16 %v1305_v46, %v1304_v38 }
  0xa6   : > { %2003 = vmatprep.mubr.msk.bf16.mxu1 %vm2093_vm1, %v2092_v1  ;;  %2039 = vmatprep.subr.bf16.mxu0 %v2092_v1 }
  0xa7   : > { %2053 = vmatprep.subr.bf16.mxu1 %v2092_v1 }
  0xab   : > { %1990 = vmatmul.mubr.msk.bf16.gmra.mrb[76].mxu0 %vm241_vm2, %v2303_v2 }
  0xac   : > { %2004 = vmatmul.mubr.msk.bf16.gmra.mrb[76].mxu1 %vm241_vm2, %v2306_v3  ;;  %1993 = vmatprep.mubr.msk.bf16.mxu0 %vm2093_vm1, %v2092_v1 }
  0xad   : > { %2007 = vmatprep.mubr.msk.bf16.mxu1 %vm2093_vm1, %v2092_v1 }
  0xb3   : > { %1994 = vmatmul.mubr.msk.bf16.gmra.mrb[80].mxu0 %vm241_vm2, %v2318_v8 }
  0xb4   : > { %2008 = vmatmul.mubr.msk.bf16.gmra.mrb[80].mxu1 %vm241_vm2, %v2320_v9  ;;  %2013 = vmatprep.mubr.msk.bf16.mxu0 %vm2093_vm1, %v2092_v1 }
  0xb5   : > { %2027 = vmatprep.mubr.msk.bf16.mxu1 %vm2093_vm1, %v2092_v1 }
  0xbb   : > { %2014 = vmatmul.mubr.msk.bf16.vlgmr.msra.gmra.mrb[84].mxu0 %vm241_vm2, %v1307_v37 }
  0xbc   : > { %2028 = vmatmul.mubr.msk.bf16.vlgmr.msra.gmra.mrb[84].mxu1 %vm241_vm2, %v2337_v19  ;;  %2040 = vmatpush3.bf16.msra.mxu0 %v2286_v60 }
  0xbd   : > { %2054 = vmatpush3.bf16.msra.mxu1 %v2340_v20  ;;  %2017 = vmatprep.mubr.msk.bf16.mxu0 %vm2093_vm1, %v2092_v1 }
  0xbe   : > { %2031 = vmatprep.mubr.msk.bf16.mxu1 %vm2093_vm1, %v2092_v1 }
  0xc3   : > { %2018 = vmatmul.mubr.msk.bf16.gmra.mrb[88].mxu0 %vm241_vm2, %v1308_v47 }
  0xc4   : > { %2032 = vmatmul.mubr.msk.bf16.gmra.mrb[88].mxu1 %vm241_vm2, %v2357_v28  ;;  %2021 = vmatprep.mubr.msk.bf16.mxu0 %vm2093_vm1, %v2092_v1 }
  0xc5   : > { %2035 = vmatprep.mubr.msk.bf16.mxu1 %vm2093_vm1, %v2092_v1 }
  0xcb   : > { %2022 = vmatmul.mubr.msk.bf16.gmra.mrb[92].mxu0 %vm241_vm2, %v1309_v49 }
  0xcc   : > { %2036 = vmatmul.mubr.msk.bf16.gmra.mrb[92].mxu1 %vm241_vm2, %v2368_v31  ;;  %2041 = vmatprep.mubr.msk.bf16.mxu0 %vm2093_vm1, %v2092_v1 }
  0xcd   : > { %2055 = vmatprep.mubr.msk.bf16.mxu1 %vm2093_vm1, %v2092_v1 }
  0xd3   : > { %2042 = vmatmul.mubr.msk.bf16.vlgmr.msra.gmra.mrb[96].mxu0 %vm241_vm2, %v2379_v34 }
  0xd4   : > { %2056 = vmatmul.mubr.msk.bf16.vlgmr.msra.gmra.mrb[96].mxu1 %vm241_vm2, %v1507_v52  ;;  %2045 = vmatprep.mubr.msk.bf16.mxu0 %vm2093_vm1, %v2092_v1 }
  0xd5   : > { %2059 = vmatprep.mubr.msk.bf16.mxu1 %vm2093_vm1, %v2092_v1 }
  0xdb   : > { %2046 = vmatmul.mubr.msk.bf16.gmra.mrb[100].mxu0 %vm241_vm2, %v2394_v40 }
  0xdc   : > { %2060 = vmatmul.mubr.msk.bf16.gmra.mrb[100].mxu1 %vm241_vm2, %v1508_v55  ;;  %2049 = vmatprep.mubr.msk.bf16.mxu0 %vm2093_vm1, %v2092_v1 }
  0xdd   : > { %2063 = vmatprep.mubr.msk.bf16.mxu1 %vm2093_vm1, %v2092_v1 }
  0xe3   : > { %2050 = vmatmul.mubr.msk.bf16.gmra.mrb[104].mxu0 %vm241_vm2, %v2406_v15 }
  0xe4   : > { %2064 = vmatmul.mubr.msk.bf16.gmra.mrb[104].mxu1 %vm241_vm2, %v1509_v57 }
  0xe6   : > { %v289_v58 = vpop.f32.mrb[0].mxu0 }
  0xe7   : > { %v357_v59 = vpop.f32.mrb[0].mxu1  ;;  %v1819_v60 = vpop.f32.mrb[1].mxu0 }
  0xe8   : > { %v358_v61 = vadd.f32 %v357_v59, %v289_v58  ;;  %v1833_v62 = vpop.f32.mrb[1].mxu1  ;;  %v292_v63 = vpop.f32.mrb[2].mxu0 }
  0xe9   : > { %v360_v0 = vpop.f32.mrb[2].mxu1  ;;  %v1820_v2 = vpop.f32.mrb[3].mxu0 }
  0xea   : > { %v361_v3 = vadd.f32 %v360_v0, %v292_v63  ;;  %v1834_v5 = vpop.f32.mrb[3].mxu1 }
  0xee   : > { %v297_v7 = vpop.f32.mrb[4].mxu0 }
  0xef   : > { %v365_v8 = vpop.f32.mrb[4].mxu1  ;;  %v1823_v1 = vpop.f32.mrb[5].mxu0 }
  0xf0   : > { %v366_v9 = vadd.f32 %v365_v8, %v297_v7  ;;  %v1837_v10 = vpop.f32.mrb[5].mxu1  ;;  %v300_v11 = vpop.f32.mrb[6].mxu0 }
  0xf1   : > { %v368_v12 = vpop.f32.mrb[6].mxu1  ;;  %v1824_v14 = vpop.f32.mrb[7].mxu0 }
  0xf2   : > { %v369_v16 = vadd.f32 %v368_v12, %v300_v11  ;;  %v1838_v18 = vpop.f32.mrb[7].mxu1 }
  0xf6   : > { %v305_v19 = vpop.f32.mrb[8].mxu0 }
  0xf7   : > { %v373_v20 = vpop.f32.mrb[8].mxu1  ;;  %v1827_v21 = vpop.f32.mrb[9].mxu0 }
  0xf8   : > { %v374_v23 = vadd.f32 %v373_v20, %v305_v19  ;;  %v1841_v24 = vpop.f32.mrb[9].mxu1  ;;  %v308_v25 = vpop.f32.mrb[10].mxu0 }
  0xf9   : > { %v376_v27 = vpop.f32.mrb[10].mxu1  ;;  %v1828_v28 = vpop.f32.mrb[11].mxu0 }
  0xfa   : > { %v1842_v6 = vpop.f32.mrb[11].mxu1 }
  0xfe   : > { %v438_v29 = vpop.f32.mrb[12].mxu0 }
  0xff   : > { %v460_v30 = vadd.f32 %v438_v29, %v358_v61  ;;  %v524_v31 = vpop.f32.mrb[12].mxu1  ;;  %v1847_v32 = vpop.f32.mrb[13].mxu0 }
 0x100   : > { %v1861_v33 = vpop.f32.mrb[13].mxu1  ;;  %v441_v34 = vpop.f32.mrb[14].mxu0 }
 0x101   : > { %v546_v36 = vadd.f32 %v524_v31, %v460_v30  ;;  %v461_v39 = vadd.f32 %v441_v34, %v361_v3  ;;  %v527_v40 = vpop.f32.mrb[14].mxu1  ;;  %v1848_v4 = vpop.f32.mrb[15].mxu0 }
 0x102   : > { %v1862_v15 = vpop.f32.mrb[15].mxu1 }
 0x103   : > { %v547_v35 = vadd.f32 %v527_v40, %v461_v39 }
 0x106   : > { %v446_v41 = vpop.f32.mrb[16].mxu0 }
 0x107   : > { %v462_v42 = vadd.f32 %v446_v41, %v366_v9  ;;  %v532_v43 = vpop.f32.mrb[16].mxu1  ;;  %v1851_v44 = vpop.f32.mrb[17].mxu0 }
 0x108   : > { %v1865_v45 = vpop.f32.mrb[17].mxu1  ;;  %v449_v13 = vpop.f32.mrb[18].mxu0 }
 0x109   : > { %v548_v17 = vadd.f32 %v532_v43, %v462_v42  ;;  %v463_v22 = vadd.f32 %v449_v13, %v369_v16  ;;  %v535_v26 = vpop.f32.mrb[18].mxu1  ;;  %v1852_v37 = vpop.f32.mrb[19].mxu0 }
 0x10a   : > { %v1866_v38 = vpop.f32.mrb[19].mxu1 }
 0x10b   : > { %v549_v46 = vadd.f32 %v535_v26, %v463_v22 }
 0x10e   : > { %v454_v47 = vpop.f32.mrb[20].mxu0 }
 0x10f   : > { %v464_v48 = vadd.f32 %v454_v47, %v374_v23  ;;  %v540_v49 = vpop.f32.mrb[20].mxu1  ;;  %v1855_v50 = vpop.f32.mrb[21].mxu0 }
 0x110   : > { %v1869_v51 = vpop.f32.mrb[21].mxu1  ;;  %v457_v52 = vpop.f32.mrb[22].mxu0 }
 0x111   : > { %v550_v53 = vadd.f32 %v540_v49, %v464_v48  ;;  %v543_v54 = vpop.f32.mrb[22].mxu1  ;;  %v1856_v55 = vpop.f32.mrb[23].mxu0 }
 0x112   : > { %v1870_v56 = vpop.f32.mrb[23].mxu1 }
 0x116   : > { %v606_v57 = vpop.f32.mrb[24].mxu0 }
 0x117   : > { %v628_v58 = vadd.f32 %v606_v57, %v546_v36  ;;  %v692_v59 = vpop.f32.mrb[24].mxu1  ;;  %v1875_v60 = vpop.f32.mrb[25].mxu0 }
 0x118   : > { %v1889_v61 = vpop.f32.mrb[25].mxu1  ;;  %v609_v62 = vpop.f32.mrb[26].mxu0 }
 0x119   : > { %v714_v63 = vadd.f32 %v692_v59, %v628_v58  ;;  %v629_v0 = vadd.f32 %v609_v62, %v547_v35  ;;  %v695_v2 = vpop.f32.mrb[26].mxu1  ;;  %v1876_v3 = vpop.f32.mrb[27].mxu0 }
 0x11a   : > { %v1890_v5 = vpop.f32.mrb[27].mxu1 }
 0x11b   : > { %v715_v7 = vadd.f32 %v695_v2, %v629_v0 }
 0x11e   : > { %v614_v8 = vpop.f32.mrb[28].mxu0 }
 0x11f   : > { %v630_v1 = vadd.f32 %v614_v8, %v548_v17  ;;  %v700_v9 = vpop.f32.mrb[28].mxu1  ;;  %v1879_v10 = vpop.f32.mrb[29].mxu0 }
 0x120   : > { %v1893_v11 = vpop.f32.mrb[29].mxu1  ;;  %v617_v12 = vpop.f32.mrb[30].mxu0 }
 0x121   : > { %v716_v14 = vadd.f32 %v700_v9, %v630_v1  ;;  %v631_v16 = vadd.f32 %v617_v12, %v549_v46  ;;  %v703_v18 = vpop.f32.mrb[30].mxu1  ;;  %v1880_v19 = vpop.f32.mrb[31].mxu0 }
 0x122   : > { %v1894_v20 = vpop.f32.mrb[31].mxu1 }
 0x123   : > { %v717_v21 = vadd.f32 %v703_v18, %v631_v16 }
 0x126   : > { %v622_v23 = vpop.f32.mrb[32].mxu0 }
 0x127   : > { %v632_v24 = vadd.f32 %v622_v23, %v550_v53  ;;  %v708_v25 = vpop.f32.mrb[32].mxu1  ;;  %v1883_v27 = vpop.f32.mrb[33].mxu0 }
 0x128   : > { %v1897_v28 = vpop.f32.mrb[33].mxu1  ;;  %v625_v6 = vpop.f32.mrb[34].mxu0 }
 0x129   : > { %v718_v29 = vadd.f32 %v708_v25, %v632_v24  ;;  %v711_v30 = vpop.f32.mrb[34].mxu1  ;;  %v1884_v31 = vpop.f32.mrb[35].mxu0 }
 0x12a   : > { %v1898_v32 = vpop.f32.mrb[35].mxu1 }
 0x12e   : > { %v778_v33 = vpop.f32.mrb[36].mxu0 }
 0x12f   : > { %v800_v34 = vadd.f32 %v778_v33, %v714_v63  ;;  %v864_v36 = vpop.f32.mrb[36].mxu1  ;;  %v1903_v39 = vpop.f32.mrb[37].mxu0 }
 0x130   : > { %v1917_v40 = vpop.f32.mrb[37].mxu1  ;;  %v781_v4 = vpop.f32.mrb[38].mxu0 }
 0x131   : > { %v886_v15 = vadd.f32 %v864_v36, %v800_v34  ;;  %v801_v35 = vadd.f32 %v781_v4, %v715_v7  ;;  %v867_v41 = vpop.f32.mrb[38].mxu1  ;;  %v1904_v42 = vpop.f32.mrb[39].mxu0 }
 0x132   : > { %v1918_v43 = vpop.f32.mrb[39].mxu1 }
 0x133   : > { %v887_v44 = vadd.f32 %v867_v41, %v801_v35 }
 0x136   : > { %v786_v45 = vpop.f32.mrb[40].mxu0 }
 0x137   : > { %v802_v13 = vadd.f32 %v786_v45, %v716_v14  ;;  %v872_v17 = vpop.f32.mrb[40].mxu1  ;;  %v1907_v22 = vpop.f32.mrb[41].mxu0 }
 0x138   : > { %v1921_v26 = vpop.f32.mrb[41].mxu1  ;;  %v789_v37 = vpop.f32.mrb[42].mxu0 }
 0x139   : > { %v888_v38 = vadd.f32 %v872_v17, %v802_v13  ;;  %v803_v46 = vadd.f32 %v789_v37, %v717_v21  ;;  %v875_v47 = vpop.f32.mrb[42].mxu1  ;;  %v1908_v48 = vpop.f32.mrb[43].mxu0 }
 0x13a   : > { %v1922_v49 = vpop.f32.mrb[43].mxu1 }
 0x13b   : > { %v889_v50 = vadd.f32 %v875_v47, %v803_v46 }
 0x13e   : > { %v794_v51 = vpop.f32.mrb[44].mxu0 }
 0x13f   : > { %v804_v52 = vadd.f32 %v794_v51, %v718_v29  ;;  %v880_v53 = vpop.f32.mrb[44].mxu1  ;;  %v1911_v54 = vpop.f32.mrb[45].mxu0 }
 0x140   : > { %v1925_v55 = vpop.f32.mrb[45].mxu1  ;;  %v797_v56 = vpop.f32.mrb[46].mxu0 }
 0x141   : > { %v890_v57 = vadd.f32 %v880_v53, %v804_v52  ;;  %v883_v58 = vpop.f32.mrb[46].mxu1  ;;  %v1912_v59 = vpop.f32.mrb[47].mxu0 }
 0x142   : > { %v1926_v60 = vpop.f32.mrb[47].mxu1 }
 0x146   : > { %v946_v61 = vpop.f32.mrb[48].mxu0 }
 0x147   : > { %v2524_v62 = vadd.f32 %v946_v61, %v886_v15  ;;  %v1024_v63 = vpop.f32.mrb[48].mxu1  ;;  %v1931_v0 = vpop.f32.mrb[49].mxu0 }
 0x148   : > { %v1945_v2 = vpop.f32.mrb[49].mxu1  ;;  %v949_v3 = vpop.f32.mrb[50].mxu0 }
 0x149   : > { %v2526_v5 = vadd.f32 %v949_v3, %v887_v44  ;;  %v1027_v7 = vpop.f32.mrb[50].mxu1  ;;  %v1932_v8 = vpop.f32.mrb[51].mxu0 }
 0x14a   : > { %v1946_v1 = vpop.f32.mrb[51].mxu1 }
 0x14e   : > { %v954_v9 = vpop.f32.mrb[52].mxu0 }
 0x14f   : > { %v2528_v10 = vadd.f32 %v954_v9, %v888_v38  ;;  %v1032_v11 = vpop.f32.mrb[52].mxu1  ;;  %v1935_v12 = vpop.f32.mrb[53].mxu0 }
 0x150   : > { %v1949_v14 = vpop.f32.mrb[53].mxu1  ;;  %v957_v16 = vpop.f32.mrb[54].mxu0 }
 0x151   : > { %v2530_v18 = vadd.f32 %v957_v16, %v889_v50  ;;  %v1035_v19 = vpop.f32.mrb[54].mxu1  ;;  %v1936_v20 = vpop.f32.mrb[55].mxu0 }
 0x152   : > { %v1950_v21 = vpop.f32.mrb[55].mxu1 }
 0x156   : > { %v962_v23 = vpop.f32.mrb[56].mxu0 }
 0x157   : > { %v2532_v24 = vadd.f32 %v962_v23, %v890_v57  ;;  %v1040_v25 = vpop.f32.mrb[56].mxu1  ;;  %v1939_v27 = vpop.f32.mrb[57].mxu0 }
 0x158   : > { %v1953_v28 = vpop.f32.mrb[57].mxu1  ;;  %v965_v6 = vpop.f32.mrb[58].mxu0 }
 0x159   : > { %v1043_v29 = vpop.f32.mrb[58].mxu1  ;;  %v1940_v30 = vpop.f32.mrb[59].mxu0 }
 0x15a   : > { %v1954_v31 = vpop.f32.mrb[59].mxu1 }
 0x15e   : > { %v1080_v32 = vpop.f32.mrb[60].mxu0 }
 0x15f   : > { %v1081_v33 = vadd.f32 %v1080_v32, %v1024_v63  ;;  %v1153_v34 = vpop.f32.mrb[60].mxu1  ;;  %v1959_v36 = vpop.f32.mrb[61].mxu0 }
 0x160   : > { %v1973_v39 = vpop.f32.mrb[61].mxu1  ;;  %v1083_v40 = vpop.f32.mrb[62].mxu0 }
 0x161   : > { %v1175_v4 = vadd.f32 %v1153_v34, %v1081_v33  ;;  %v1084_v15 = vadd.f32 %v1083_v40, %v1027_v7  ;;  %v1156_v35 = vpop.f32.mrb[62].mxu1  ;;  %v1960_v41 = vpop.f32.mrb[63].mxu0 }
 0x162   : > { %v1974_v42 = vpop.f32.mrb[63].mxu1 }
 0x163   : > { %v1176_v43 = vadd.f32 %v1156_v35, %v1084_v15 }
 0x166   : > { %v1088_v44 = vpop.f32.mrb[64].mxu0 }
 0x167   : > { %v1089_v45 = vadd.f32 %v1088_v44, %v1032_v11  ;;  %v1161_v13 = vpop.f32.mrb[64].mxu1  ;;  %v1963_v17 = vpop.f32.mrb[65].mxu0 }
 0x168   : > { %v1977_v22 = vpop.f32.mrb[65].mxu1  ;;  %v1091_v26 = vpop.f32.mrb[66].mxu0 }
 0x169   : > { %v1177_v37 = vadd.f32 %v1161_v13, %v1089_v45  ;;  %v1092_v38 = vadd.f32 %v1091_v26, %v1035_v19  ;;  %v1164_v46 = vpop.f32.mrb[66].mxu1  ;;  %v1964_v47 = vpop.f32.mrb[67].mxu0 }
 0x16a   : > { %v1978_v48 = vpop.f32.mrb[67].mxu1 }
 0x16b   : > { %v1178_v49 = vadd.f32 %v1164_v46, %v1092_v38 }
 0x16e   : > { %v1096_v50 = vpop.f32.mrb[68].mxu0 }
 0x16f   : > { %v1097_v51 = vadd.f32 %v1096_v50, %v1040_v25  ;;  %v1169_v52 = vpop.f32.mrb[68].mxu1  ;;  %v1967_v53 = vpop.f32.mrb[69].mxu0 }
 0x170   : > { %v1981_v54 = vpop.f32.mrb[69].mxu1  ;;  %v1099_v55 = vpop.f32.mrb[70].mxu0 }
 0x171   : > { %v1179_v56 = vadd.f32 %v1169_v52, %v1097_v51  ;;  %v1172_v57 = vpop.f32.mrb[70].mxu1  ;;  %v1968_v58 = vpop.f32.mrb[71].mxu0 }
 0x172   : > { %v1982_v59 = vpop.f32.mrb[71].mxu1 }
 0x176   : > { %v1214_v60 = vpop.f32.mrb[72].mxu0 }
 0x177   : > { %v1236_v61 = vadd.f32 %v1214_v60, %v1175_v4  ;;  %v1275_v63 = vpop.f32.mrb[72].mxu1  ;;  %v1987_v0 = vpop.f32.mrb[73].mxu0 }
 0x178   : > { %v2001_v2 = vpop.f32.mrb[73].mxu1  ;;  %v1217_v3 = vpop.f32.mrb[74].mxu0 }
 0x179   : > { %v1297_v7 = vadd.f32 %v1275_v63, %v1236_v61  ;;  %v1237_v8 = vadd.f32 %v1217_v3, %v1176_v43  ;;  %v1278_v1 = vpop.f32.mrb[74].mxu1  ;;  %v1988_v9 = vpop.f32.mrb[75].mxu0 }
 0x17a   : > { %v2002_v11 = vpop.f32.mrb[75].mxu1  ;;  %v2537_v9 = vld [vmem:[%s2576_s3] ss:$0 sm:$0xff] }
 0x17b   : > { %v1298_v12 = vadd.f32 %v1278_v1, %v1237_v8 }
 0x17e   : > { %v1222_v14 = vpop.f32.mrb[76].mxu0 }
 0x17f   : > { %v1238_v16 = vadd.f32 %v1222_v14, %v1177_v37  ;;  %v1283_v19 = vpop.f32.mrb[76].mxu1  ;;  %v1991_v20 = vpop.f32.mrb[77].mxu0 }
 0x180   : > { %v2005_v21 = vpop.f32.mrb[77].mxu1  ;;  %v1225_v23 = vpop.f32.mrb[78].mxu0 }
 0x181   : > { %v1299_v25 = vadd.f32 %v1283_v19, %v1238_v16  ;;  %v1239_v27 = vadd.f32 %v1225_v23, %v1178_v49  ;;  %v1286_v28 = vpop.f32.mrb[78].mxu1  ;;  %v1992_v6 = vpop.f32.mrb[79].mxu0  ;;  %v980_v21 = vadd.f32 %v2537_v9, %v2524_v62 }
 0x182   : > { %v2006_v29 = vpop.f32.mrb[79].mxu1 }
 0x183   : > { %v1300_v30 = vadd.f32 %v1286_v28, %v1239_v27  ;;  %v981_v29 = vadd.f32 %v2537_v9, %v2526_v5 }
 0x186   : > { %v1230_v31 = vpop.f32.mrb[80].mxu0 }
 0x187   : > { %v1240_v32 = vadd.f32 %v1230_v31, %v1179_v56  ;;  %v1291_v33 = vpop.f32.mrb[80].mxu1  ;;  %v1995_v34 = vpop.f32.mrb[81].mxu0 }
 0x188   : > { %v2009_v36 = vpop.f32.mrb[81].mxu1  ;;  %v1233_v39 = vpop.f32.mrb[82].mxu0 }
 0x189   : > { %v1301_v40 = vadd.f32 %v1291_v33, %v1240_v32  ;;  %v1294_v4 = vpop.f32.mrb[82].mxu1  ;;  %v1996_v15 = vpop.f32.mrb[83].mxu0  ;;  %v985_v32 = vmax.f32 %v980_v21, 0.0  ;;  %v986_v36 = vmax.f32 %v981_v29, 0.0 }
 0x18a   : > { %v2010_v35 = vpop.f32.mrb[83].mxu1 }
 0x18e   : > { %v1353_v41 = vpop.f32.mrb[84].mxu0 }
 0x18f   : > { %v1375_v42 = vadd.f32 %v1353_v41, %v1297_v7  ;;  %v1414_v43 = vpop.f32.mrb[84].mxu1  ;;  %v2015_v44 = vpop.f32.mrb[85].mxu0 }
 0x190   : > { %v2029_v45 = vpop.f32.mrb[85].mxu1  ;;  %v1356_v13 = vpop.f32.mrb[86].mxu0 }
 0x191   : > { %v1436_v17 = vadd.f32 %v1414_v43, %v1375_v42  ;;  %v1376_v22 = vadd.f32 %v1356_v13, %v1298_v12  ;;  %v1417_v26 = vpop.f32.mrb[86].mxu1  ;;  %v2016_v37 = vpop.f32.mrb[87].mxu0  ;;  %v982_v42 = vadd.f32 %v2537_v9, %v2528_v10 }
 0x192   : > { %v2030_v38 = vpop.f32.mrb[87].mxu1 }
 0x193   : > { %v1437_v46 = vadd.f32 %v1417_v26, %v1376_v22  ;;  %v983_v26 = vadd.f32 %v2537_v9, %v2530_v18 }
 0x196   : > { %v1361_v47 = vpop.f32.mrb[88].mxu0 }
 0x197   : > { %v1377_v48 = vadd.f32 %v1361_v47, %v1299_v25  ;;  %v1422_v49 = vpop.f32.mrb[88].mxu1  ;;  %v2019_v50 = vpop.f32.mrb[89].mxu0 }
 0x198   : > { %v2033_v51 = vpop.f32.mrb[89].mxu1  ;;  %v1364_v52 = vpop.f32.mrb[90].mxu0 }
 0x199   : > { %v1438_v53 = vadd.f32 %v1422_v49, %v1377_v48  ;;  %v1378_v54 = vadd.f32 %v1364_v52, %v1300_v30  ;;  %v1425_v55 = vpop.f32.mrb[90].mxu1  ;;  %v2020_v56 = vpop.f32.mrb[91].mxu0  ;;  %v988_v49 = vmax.f32 %v983_v26, 0.0 }
 0x19a   : > { %v2034_v57 = vpop.f32.mrb[91].mxu1  ;;  %v984_v56 = vadd.f32 %v2537_v9, %v2532_v24 }
 0x19b   : > { %v1439_v58 = vadd.f32 %v1425_v55, %v1378_v54 }
 0x19e   : > { %v1369_v59 = vpop.f32.mrb[92].mxu0 }
 0x19f   : > { %v1379_v60 = vadd.f32 %v1369_v59, %v1301_v40  ;;  %v1430_v61 = vpop.f32.mrb[92].mxu1  ;;  %v2023_v63 = vpop.f32.mrb[93].mxu0 }
 0x1a0   : > { %v2037_v0 = vpop.f32.mrb[93].mxu1  ;;  %v1372_v2 = vpop.f32.mrb[94].mxu0 }
 0x1a1   : > { %v1440_v3 = vadd.f32 %v1430_v61, %v1379_v60  ;;  %v1433_v7 = vpop.f32.mrb[94].mxu1  ;;  %v2024_v8 = vpop.f32.mrb[95].mxu0  ;;  %v989_v0 = vmax.f32 %v984_v56, 0.0 }
 0x1a2   : > { %v2038_v1 = vpop.f32.mrb[95].mxu1 }
 0x1a6   : > { %v1475_v11 = vpop.f32.mrb[96].mxu0 }
 0x1a7   : > { %v1497_v12 = vadd.f32 %v1475_v11, %v1436_v17  ;;  %v1553_v14 = vpop.f32.mrb[96].mxu1  ;;  %v2043_v16 = vpop.f32.mrb[97].mxu0 }
 0x1a8   : > { %v2057_v19 = vpop.f32.mrb[97].mxu1  ;;  %v1478_v20 = vpop.f32.mrb[98].mxu0 }
 0x1a9   : > { %v1575_v23 = vadd.f32 %v1553_v14, %v1497_v12  ;;  %v1498_v25 = vadd.f32 %v1478_v20, %v1437_v46  ;;  %v1556_v27 = vpop.f32.mrb[98].mxu1  ;;  %v2044_v28 = vpop.f32.mrb[99].mxu0  ;;  %v987_v46 = vmax.f32 %v982_v42, 0.0 }
 0x1aa   : > { %v2058_v6 = vpop.f32.mrb[99].mxu1 }
 0x1ab   : > { %v1580_v30 = vadd.f32 %v2537_v9, %v1575_v23  ;;  %v1576_v31 = vadd.f32 %v1556_v27, %v1498_v25 }
 0x1ad   : > { %v1585_v33 = vmax.f32 %v1580_v30, 0.0  ;;  %v1581_v34 = vadd.f32 %v2537_v9, %v1576_v31 }
 0x1ae   : > { %v1483_v62 = vpop.f32.mrb[100].mxu0 }
 0x1af   : > { %v1590_v39 = vmax.f32 %v985_v32, %v1585_v33  ;;  %v1586_v40 = vmax.f32 %v1581_v34, 0.0  ;;  %v1499_v5 = vadd.f32 %v1483_v62, %v1438_v53  ;;  %v1561_v4 = vpop.f32.mrb[100].mxu1  ;;  %v2047_v15 = vpop.f32.mrb[101].mxu0 }
 0x1b0   : > { %v2061_v35 = vpop.f32.mrb[101].mxu1  ;;  %v1486_v41 = vpop.f32.mrb[102].mxu0 }
 0x1b1   : > { %1596 = vst.msk [vmem:[%s2549_s23] sm:$0xff] %vm1595_vm3, %v1590_v39  ;;  %v1591_v43 = vmax.f32 %v986_v36, %v1586_v40  ;;  %v1577_v44 = vadd.f32 %v1561_v4, %v1499_v5  ;;  %v1500_v45 = vadd.f32 %v1486_v41, %v1439_v58  ;;  %v1564_v13 = vpop.f32.mrb[102].mxu1  ;;  %v2048_v17 = vpop.f32.mrb[103].mxu0 }
 0x1b2   : > { %v2062_v22 = vpop.f32.mrb[103].mxu1 }
 0x1b3   : > { %1597 = vst.msk [vmem:[%s2549_s23 + $0x8] sm:$0xff] %vm1595_vm3, %v1591_v43  ;;  %v1582_v37 = vadd.f32 %v2537_v9, %v1577_v44  ;;  %v1578_v38 = vadd.f32 %v1564_v13, %v1500_v45 }
 0x1b5   : > { %v1587_v47 = vmax.f32 %v1582_v37, 0.0  ;;  %v1583_v10 = vadd.f32 %v2537_v9, %v1578_v38 }
 0x1b6   : > { %v1491_v48 = vpop.f32.mrb[104].mxu0 }
 0x1b7   : > { %v1592_v50 = vmax.f32 %v987_v46, %v1587_v47  ;;  %v1588_v51 = vmax.f32 %v1583_v10, 0.0  ;;  %v1501_v52 = vadd.f32 %v1491_v48, %v1440_v3  ;;  %v1569_v53 = vpop.f32.mrb[104].mxu1  ;;  %v2051_v54 = vpop.f32.mrb[105].mxu0 }
 0x1b8   : > { %v2065_v18 = vpop.f32.mrb[105].mxu1  ;;  %v1494_v55 = vpop.f32.mrb[106].mxu0 }
 0x1b9   : > { %1598 = vst.msk [vmem:[%s2549_s23 + $0x10] sm:$0xff] %vm1595_vm3, %v1592_v50  ;;  %v1593_v57 = vmax.f32 %v988_v49, %v1588_v51  ;;  %v1579_v58 = vadd.f32 %v1569_v53, %v1501_v52  ;;  %v1572_v59 = vpop.f32.mrb[106].mxu1  ;;  %v2052_v60 = vpop.f32.mrb[107].mxu0 }
 0x1ba   : > { %v2066_v61 = vpop.f32.mrb[107].mxu1 }
 0x1bb   : > { %1599 = vst.msk [vmem:[%s2549_s23 + $0x18] sm:$0xff] %vm1595_vm3, %v1593_v57  ;;  %v1584_v63 = vadd.f32 %v2537_v9, %v1579_v58 }
 0x1bd   : > { %v1589_v2 = vmax.f32 %v1584_v63, 0.0 }
 0x1bf   : > { %v1594_v3 = vmax.f32 %v989_v0, %v1589_v2 }
 0x1c1   : > { %1600 = vst.msk [vmem:[%s2549_s23 + $0x20] sm:$0xff] %vm1595_vm3, %v1594_v3 }
 0x1c2 PF: > { %s14_s15 = sadd.s32 1, %s2090_s15  }
 0x1c3   : > { %p11_p4 = scmp.ge.s32.totalorder %s14_s15, 4  }
 0x1c5   :  { %13 = sbr.rel (!%p11_p4) target bundleno = 1 (0x1), region = 69 }

// kernel: phoneme_recognition_forward.11
= control target key start
LH: loop header
LB: loop body
LE: loop exit
PB: predicated region body
PF: predicated region fallthrough
CT: control target
= control target key end

     0   :  { %v111_v0 = vmov 0.0   ;;  %vm112_vm0 = vmmov 0   ;;  %vm41_vm1 = vcmask 261120   ;;  %s154_s1 = inlined_call_operand.vmem [shape: bf16[32,128], index: 1, kind: input, shape index: {}]   ;;  %s155_s0 = inlined_call_operand.vmem [shape: f32[16,32], index: 0, kind: input, shape index: {}]   ;;  %s156_s2 = inlined_call_operand.vmem [shape: f32[1,128], index: 2, kind: input, shape index: {}]   ;;  %s157_s3 = inlined_call_operand.vmem [shape: f32[16,128], index: 3, kind: output, shape index: {}]  }
   0x1   :  { %99 = vmatprep.subr.bf16.mxu0 %v111_v0  ;;  %v109_v1 = vld [vmem:[%s154_s1] sm:$0xff]   ;;  %103 = vmatprep.mubr.msk.bf16.mxu0 %vm112_vm0, %v111_v0  ;;  %v110_v2 = vld [vmem:[%s154_s1 + $0x8] sm:$0xff]  }
   0x2   :  { %100 = vmatpush3.bf16.msra.mxu0 %v109_v1  ;;  %v15_v3 = vld [vmem:[%s155_s0] sm:$0xff]  ;;  %v16_v4 = vld [vmem:[%s155_s0 + $0x8] sm:$0xff] }
   0x3   :  { %101 = vmatprep.subr.bf16.mxu0 %v111_v0  ;;  %v17_v5 = vpack.c.bf16 %v16_v4, %v15_v3  ;;  %v92_v6 = vld [vmem:[%s156_s2] ss:$0 sm:$0xff] }
   0x6   :  { %102 = vmatpush3.bf16.msra.mxu0 %v110_v2 }
   0x9   :  { %104 = vmatmul.mubr.msk.bf16.vlgmr.msra.gmra.mrb[0].mxu0 %vm41_vm1, %v17_v5 }
  0xdc   :  { %v79_v7 = vpop.f32.mrb[0].mxu0 }
  0xdd   :  { %v80_v8 = vadd.f32 %v92_v6, %v79_v7  ;;  %v105_v9 = vpop.f32.mrb[1].mxu0 }
  0xde   :  { %v82_v10 = vpop.f32.mrb[2].mxu0 }
  0xdf   :  { %86 = vst [vmem:[%s157_s3] sm:$0xff] %v80_v8  ;;  %v83_v11 = vadd.f32 %v92_v6, %v82_v10  ;;  %v106_v12 = vpop.f32.mrb[3].mxu0 }
  0xe1   :  { %87 = vst [vmem:[%s157_s3 + $0x8] sm:$0xff] %v83_v11 }

// kernel: phoneme_recognition_forward.12
= control target key start
LH: loop header
LB: loop body
LE: loop exit
PB: predicated region body
PF: predicated region fallthrough
CT: control target
= control target key end

     0   :  { %s675_s18 = smov 0   ;;  %s720_s0 = inlined_call_operand.vmem [shape: f32[8,2,64], index: 0, kind: input, shape index: {}]   ;;  %s721_s1 = inlined_call_operand.vmem [shape: f32[8,2,64], index: 1, kind: input, shape index: {}]   ;;  %s722_s2 = inlined_call_operand.vmem [shape: bf16[16,64], index: 2, kind: input, shape index: {}]   ;;  %s723_s3 = inlined_call_operand.vmem [shape: bf16[16,64], index: 3, kind: input, shape index: {}]   ;;  %s724_s4 = inlined_call_operand.vmem [shape: f32[8,2,16], index: 4, kind: output, shape index: {0}]   ;;  %s725_s5 = inlined_call_operand.vmem [shape: f32[8,2,16], index: 5, kind: output, shape index: {1}]  }
   0x1 LB: > { %s561_s19 = sadd.s32 4294967295, %s635_s18   ;;  %p565_p0 = scmp.ge.s32.totalorder %s635_s18, 1  ;;  %s635_s18 = sphi %s675_s18, %s16_s18  }
   0x2   : > { %p204_p1 = scmp.lt.s32.totalorder %s635_s18, 9 }
   0x4   : > { %p205_p2 = pnand %p565_p0, %p204_p1 }
   0x5   : > { %p240_p3 = scmp.lt.s32.totalorder (!%p205_p2), %s561_s19, 7  ;;  %s244_s20 = ssub.s32 (!%p205_p2), 7, %s561_s19 }
   0x6   : > { %208 = sbr.rel (%p205_p2) target bundleno = 733 (0x2dd), region = 36  ;;  %p245_p4 = scmp.lt.s32.totalorder (!%p205_p2), %s244_s20, 7 }
   0x7   : > { %p570_p5 = scmp.ne.s32.totalorder (!%p205_p2), %s561_s19, 0 }
   0xd   : > { %s241_s21 = scalar_select %p240_p3, %s561_s19, 7 }
   0xe   : > { %s727_s20 = smov (!%p245_p4, %s244_s20), 7  ;;  %264 = sbr.rel (%p570_p5) target bundleno = 21 (0x15), region = 40 }
   0xf   : > { %s566_s22 = sshll.u32 %s241_s21, 1  ;;  %s567_s26 = sshll.u32 %s727_s20, 1  ;;  %vm265_vm0 = vcmask (!%p570_p5), 123904   ;;  %v637_v0 = vmov (!%p570_p5), 0.0  }
  0x10   : > { %s686_s25 = scalar_lea.vmem %s720_s0, %s566_s22  ;;  %s691_s29 = scalar_lea.vmem %s721_s1, %s567_s26  ;;  %266 = vst.msk [vmem:[#allocation2] sm:$0x3] (!%p570_p5), %vm265_vm0, %v637_v0  ;;  %267 = vst.msk [vmem:[#allocation3] sm:$0x3] (!%p570_p5), %vm265_vm0, %v637_v0 }
  0x11   : > { %s696_s7 = scalar_lea.vmem %s724_s4, %s566_s22  ;;  %s701_s10 = scalar_lea.vmem %s725_s5, %s567_s26  ;;  %268 = vst.msk [vmem:[#allocation4] sm:$0x3] (!%p570_p5), %vm265_vm0, %v637_v0  ;;  %269 = vst.msk [vmem:[#allocation5] sm:$0x3] (!%p570_p5), %vm265_vm0, %v637_v0 }
  0x15 PF: > { %v611_v1 = vld [vmem:[%s722_s2] sm:$0xff]   ;;  %v638_v2 = vmov 0.0   ;;  %vm639_vm1 = vmmov 0   ;;  %vm282_vm2 = vcmask 130048   ;;  %s640_s15 = smov 16   ;;  %s641_s16 = smov 96  }
  0x16   : > { %583 = vmatprep.subr.bf16.mxu0 %v638_v2  ;;  %589 = vmatprep.subr.bf16.mxu1 %v638_v2  ;;  %v612_v3 = vld [vmem:[%s723_s3] sm:$0xff]   ;;  %s642_s17 = smov 32   ;;  %s643_s19 = smov 112   ;;  %vm359_vm3 = vcmask 123904  }
  0x17   : > { %584 = vmatpush3.bf16.msra.mxu0 %v611_v1  ;;  %585 = vmatprep.mubr.msk.bf16.mxu0 %vm639_vm1, %v638_v2  ;;  %v271_v4 = vld [vmem:[#allocation2] sm:$0x3]  ;;  %v272_v8 = vld [vmem:[#allocation3] sm:$0x3]  ;;  %s644_s20 = smov 80  }
  0x18   : > { %v368_v5 = vld [vmem:[#allocation4] sm:$0x3]  ;;  %590 = vmatpush3.bf16.msra.mxu1 %v612_v3  ;;  %v273_v6 = vpack.c.bf16 %v271_v4, %v271_v4  ;;  %591 = vmatprep.mubr.msk.bf16.mxu1 %vm639_vm1, %v638_v2  ;;  %v369_v9 = vld [vmem:[#allocation5] sm:$0x3]  ;;  %v270_v10 = vld [vmem:[%s686_s25] sm:$0x3] }
  0x19   : > { %v370_v7 = vpack.c.bf16 %v368_v5, %v368_v5  ;;  %335 = vrot.lane.b32.xlu1 %v272_v8, %s640_s15  ;;  %v367_v11 = vld [vmem:[%s691_s29] sm:$0x3] }
  0x1a   : > { %586 = vmatmul.mubr.msk.bf16.vlgmr.msra.gmra.mrb[0].mxu0 %vm282_vm2, %v273_v6 }
  0x1b   : > { %592 = vmatmul.mubr.msk.bf16.vlgmr.msra.gmra.mrb[0].mxu1 %vm282_vm2, %v370_v7 }
  0x1d   : > { %431 = vrot.lane.b32.xlu1 %v369_v9, %s640_s15 }
  0x8b   : > { %v336_v36 = vpop.permute.xlu1 %335 }
  0x8f   : > { %v432_v38 = vpop.permute.xlu1 %431 }
  0xed   : > { %v320_v12 = vpop.f32.mrb[0].mxu0 }
  0xee   : > { %v326_v13 = vadd.f32 %v320_v12, %v270_v10  ;;  %v587_v14 = vpop.f32.mrb[1].mxu0  ;;  %v416_v15 = vpop.f32.mrb[0].mxu1 }
  0xef   : > { %v422_v16 = vadd.f32 %v416_v15, %v367_v11  ;;  %v323_v17 = vpop.f32.mrb[2].mxu0  ;;  %v593_v18 = vpop.f32.mrb[1].mxu1 }
  0xf0   : > { %613 = vtanh.f32 %v326_v13  ;;  %v588_v19 = vpop.f32.mrb[3].mxu0  ;;  %v419_v20 = vpop.f32.mrb[2].mxu1  ;;  %v573_v24 = vmul.f32 -1.442695, %v326_v13 }
  0xf1   : > { %v594_v21 = vpop.f32.mrb[3].mxu1  ;;  %615 = vtanh.f32 %v422_v16  ;;  %v576_v25 = vmul.f32 -1.442695, %v422_v16 }
  0xf2   : > { %617 = vpow2.f32 %v573_v24 }
  0xf3   : > { %619 = vpow2.f32 %v576_v25 }
  0xfa   : > { %v614_v22 = vpop.eup %613 }
  0xfb   : > { %340 = vrot.lane.b32.xlu0 %v614_v22, %s641_s16  ;;  %v616_v23 = vpop.eup %615 }
  0xfc   : > { %v618_v26 = vpop.eup %617 }
  0xfd   : > { %v330_v27 = vadd.f32 1.0, %v618_v26  ;;  %v620_v28 = vpop.eup %619 }
  0xfe   : > { %v426_v29 = vadd.f32 1.0, %v620_v28 }
  0xff   : > { %436 = vrot.lane.b32.xlu0 %v616_v23, %s641_s16  ;;  %621 = vrcp.f32 %v330_v27 }
 0x100   : > { %623 = vrcp.f32 %v426_v29 }
 0x109   : > { %v622_v30 = vpop.eup %621 }
 0x10a   : > { %v624_v33 = vpop.eup %623  ;;  %v338_v37 = vmul.f32 %v622_v30, %v336_v36 }
 0x10b   : > { %v434_v41 = vmul.f32 %v624_v33, %v432_v38 }
 0x16d   : > { %v341_v31 = vpop.permute.xlu0 %340 }
 0x16e   : > { %v343_v32 = vmul.f32 %v622_v30, %v341_v31 }
 0x170   : > { %345 = vrot.lane.b32.xlu0 %v343_v32, %s640_s15 }
 0x171   : > { %v437_v34 = vpop.permute.xlu0 %436 }
 0x172   : > { %v439_v35 = vmul.f32 %v624_v33, %v437_v34 }
 0x174   : > { %441 = vrot.lane.b32.xlu1 %v439_v35, %s640_s15 }
 0x1e2   : > { %v346_v39 = vpop.permute.xlu0 %345 }
 0x1e3   : > { %v348_v40 = vadd.f32 %v346_v39, %v338_v37 }
 0x1e5   : > { %625 = vtanh.f32 %v348_v40 }
 0x1e6   : > { %v442_v42 = vpop.permute.xlu1 %441 }
 0x1e7   : > { %v444_v43 = vadd.f32 %v442_v42, %v434_v41 }
 0x1e9   : > { %627 = vtanh.f32 %v444_v43 }
 0x1ef   : > { %v626_v44 = vpop.eup %625 }
 0x1f0   : > { %351 = vrot.lane.b32.xlu0 %v626_v44, %s642_s17 }
 0x1f3   : > { %v628_v45 = vpop.eup %627 }
 0x1f4   : > { %447 = vrot.lane.b32.xlu1 %v628_v45, %s642_s17 }
 0x1f8   : > { %362 = vrot.lane.b32.xlu1 %v348_v40, %s643_s19 }
 0x1fc   : > { %457 = vrot.lane.b32.xlu1 %v444_v43, %s643_s19 }
 0x262   : > { %v352_v46 = vpop.permute.xlu0 %351 }
 0x263   : > { %v354_v47 = vmul.f32 %v622_v30, %v352_v46 }
 0x265   : > { %356 = vrot.lane.b32.xlu0 %v354_v47, %s644_s20 }
 0x266   : > { %v448_v48 = vpop.permute.xlu1 %447 }
 0x267   : > { %v450_v49 = vmul.f32 %v624_v33, %v448_v48 }
 0x269   : > { %452 = vrot.lane.b32.xlu0 %v450_v49, %s644_s20 }
 0x26a   : > { %v363_v50 = vpop.permute.xlu1 %362 }
 0x26b   : > { %365 = vst.msk [vmem:[#allocation3] sm:$0x3] %vm359_vm3, %v363_v50 }
 0x26e   : > { %v458_v51 = vpop.permute.xlu1 %457 }
 0x26f   : > { %460 = vst.msk [vmem:[#allocation5] sm:$0x3] %vm359_vm3, %v458_v51 }
 0x2d7   : > { %v357_v52 = vpop.permute.xlu0 %356 }
 0x2d8   : > { %360 = vst.msk [vmem:[#allocation2] sm:$0x3] %vm359_vm3, %v357_v52  ;;  %366 = vst.msk [vmem:[%s696_s7] sm:$0x3] %vm359_vm3, %v357_v52 }
 0x2db   : > { %v453_v53 = vpop.permute.xlu0 %452 }
 0x2dc   : > { %455 = vst.msk [vmem:[#allocation4] sm:$0x3] %vm359_vm3, %v453_v53  ;;  %461 = vst.msk [vmem:[%s701_s10] sm:$0x3] %vm359_vm3, %v453_v53 }
 0x2dd PF: > { %s16_s18 = sadd.s32 1, %s635_s18  }
 0x2de   : > { %p13_p6 = scmp.ge.s32.totalorder %s16_s18, 10  }
 0x2e0   :  { %15 = sbr.rel (!%p13_p6) target bundleno = 1 (0x1), region = 85 }

</bundles_post_ra>
